<compile_context>
chip_gen: v7x
topology: tpu7x:2x2x1
jax: 0.10.0
libtpu: 0.0.40
codegen_flags: <defaults>
</compile_context>

<pallas_src>
import functools

import jax
import jax.numpy as jnp
from jax.experimental import pallas as pl
from jax.experimental.pallas import tpu as pltpu


# ----------------------------- Pallas kernel ------------------------------- #

def residual_block_kernel(x_ref, w1_ref, b1_ref, gamma_ref, beta_ref,
                          w2_ref, b2_ref, mask_ref, o_ref, hpad_ref,
                          *, K, Wp, L, lead, store_off, eps, slope,
                          inv_count, compute_dtype):
    """Fused conv1 + BN(batch stats) + LeakyReLU + conv2 + residual.

    Layouts (channels on sublanes, flattened spatial on lanes):
      x_ref    : (N, Cin, Lx)  zero-padded input; padded image starts at `lead`
      w1_ref   : (Cmid, K*K*Cin)   tap-stacked conv1 weights (compute_dtype)
      b1_ref   : (Cmid, 1)
      gamma/beta : (Cmid, 1)
      w2_ref   : (Cin, K*K*Cmid)   tap-stacked conv2 weights (compute_dtype)
      b2_ref   : (Cin, 1)
      mask_ref : (1, N*L)      1.0 on valid columns of the (H, Wp)-flat layout
      o_ref    : (N, Cin, L)   output, (H, Wp)-flat layout
      hpad_ref : (N, Cmid, Lx) VMEM scratch: zero-padded activation
    """
    N = x_ref.shape[0]
    Cmid = gamma_ref.shape[0]
    Lh = hpad_ref.shape[-1]
    offs = [ki * Wp + kj for ki in range(K) for kj in range(K)]

    # ---- conv1: tap-fused im2col -> one (Cmid, K*K*Cin) @ (K*K*Cin, N*L) ---- #
    xv = x_ref[...].astype(compute_dtype)                       # (N, Cin, Lx)
    cols1 = jnp.concatenate(
        [jnp.concatenate([xv[n, :, lead + o: lead + o + L] for o in offs],
                         axis=0)
         for n in range(N)], axis=1)                             # (K*K*Cin, N*L)
    y = jnp.dot(w1_ref[...], cols1,
                preferred_element_type=jnp.float32) + b1_ref[...]  # (Cmid, N*L)

    # ---- global train-mode BatchNorm statistics, fully in VMEM -------------- #
    m = mask_ref[...]                                            # (1, N*L)
    mean = jnp.sum(y * m, axis=-1, keepdims=True) * inv_count    # (Cmid, 1)
    d = (y - mean) * m                                           # centered (safe)
    var = jnp.sum(d * d, axis=-1, keepdims=True) * inv_count     # biased, like PyTorch
    scale = gamma_ref[...] * jax.lax.rsqrt(var + eps)            # (Cmid, 1)
    shift = beta_ref[...] - mean * scale

    # ---- BN affine + LeakyReLU --------------------------------------------- #
    h = y * scale + shift
    h = jnp.where(h >= 0, h, slope * h)
    h = h * m                                                    # zero slack cols

    # ---- scatter h into zero-padded activation (aligned stores, halo only) -- #
    hpad_ref[:, :, :store_off] = jnp.zeros((N, Cmid, store_off), compute_dtype)
    hpad_ref[:, :, store_off + L:] = jnp.zeros(
        (N, Cmid, Lh - store_off - L), compute_dtype)
    for n in range(N):
        hpad_ref[n, :, store_off:store_off + L] = \
            h[:, n * L:(n + 1) * L].astype(compute_dtype)

    # ---- conv2: tap-fused im2col + bias + residual -------------------------- #
    hp = hpad_ref[...]                                           # (N, Cmid, Lh)
    cols2 = jnp.concatenate(
        [jnp.concatenate([hp[n, :, lead + o: lead + o + L] for o in offs],
                         axis=0)
         for n in range(N)], axis=1)                             # (K*K*Cmid, N*L)
    out = jnp.dot(w2_ref[...], cols2,
                  preferred_element_type=jnp.float32) + b2_ref[...]  # (Cin, N*L)
    for n in range(N):
        identity = x_ref[n, :, store_off:store_off + L]          # aligned f32 slice
        o_ref[n] = out[:, n * L:(n + 1) * L] + identity


# ------------------------------- wrapper ------------------------------------ #

def residual_block_forward(x, params, *, kernel_size, stride, padding,
                           eps=1e-5, slope=0.2, compute_dtype=jnp.float32):
    """Forward of Residual_Block (training-mode BatchNorm batch statistics)."""
    assert stride == 1, "residual add requires stride=1 ('same' spatial dims)"
    w1, b1, gamma, beta, w2, b2 = params
    N, Cin, H, W = x.shape
    Cmid = w1.shape[0]
    K, pad = kernel_size, padding

    # over-pad columns so the flattened spatial axis L = H*Wp is lane-dense
    Wp = W + 2 * pad
    while (H * Wp) % 128:
        Wp += 1
    Hp = H + 2 * pad
    L = H * Wp                          # (H, Wp)-flat "overcomplete" layout
    off_img = pad * Wp + pad            # flat offset of pixel (0,0) in padded image
    lead = (-off_img) % 128             # leading zeros -> 128-aligned h scatter
    store_off = lead + off_img
    Lraw = max(lead + (K - 1) * Wp + (K - 1) + L,   # deepest tap read
               lead + Hp * Wp, store_off + L)
    Lx = ((Lraw + 127) // 128) * 128    # padded-input flat length

    x = x.astype(jnp.float32)
    xpad = jnp.pad(x, ((0, 0), (0, 0), (pad, pad), (pad, Wp - W - pad)))
    xflat = jnp.pad(xpad.reshape(N, Cin, Hp * Wp),
                    ((0, 0), (0, 0), (lead, Lx - lead - Hp * Wp)))

    # tap-stacked weights: column index = (ki*K + kj)*C + c
    w1s = jnp.transpose(w1, (0, 2, 3, 1)).reshape(Cmid, K * K * Cin).astype(compute_dtype)
    w2s = jnp.transpose(w2, (0, 2, 3, 1)).reshape(Cin, K * K * Cmid).astype(compute_dtype)
    b1c = b1.reshape(Cmid, 1).astype(jnp.float32)
    b2c = b2.reshape(Cin, 1).astype(jnp.float32)
    gammac = gamma.reshape(Cmid, 1).astype(jnp.float32)
    betac = beta.reshape(Cmid, 1).astype(jnp.float32)
    # valid-column mask of the (H, Wp)-flat layout, tiled over the batch lanes
    mask = jnp.tile(((jnp.arange(L) % Wp) < W).astype(jnp.float32),
                    N).reshape(1, N * L)

    kernel = functools.partial(
        residual_block_kernel, K=K, Wp=Wp, L=L, lead=lead, store_off=store_off,
        eps=eps, slope=slope, inv_count=1.0 / float(N * H * W),
        compute_dtype=compute_dtype)

    out_over = pl.pallas_call(
        kernel,
        grid=(1,),
        in_specs=[
            pl.BlockSpec((N, Cin, Lx), lambda i: (0, 0, 0)),          # padded input
            pl.BlockSpec((Cmid, K * K * Cin), lambda i: (0, 0)),      # conv1 weights
            pl.BlockSpec((Cmid, 1), lambda i: (0, 0)),                # conv1 bias
            pl.BlockSpec((Cmid, 1), lambda i: (0, 0)),                # bn gamma
            pl.BlockSpec((Cmid, 1), lambda i: (0, 0)),                # bn beta
            pl.BlockSpec((Cin, K * K * Cmid), lambda i: (0, 0)),      # conv2 weights
            pl.BlockSpec((Cin, 1), lambda i: (0, 0)),                 # conv2 bias
            pl.BlockSpec((1, N * L), lambda i: (0, 0)),               # valid mask
        ],
        out_specs=pl.BlockSpec((N, Cin, L), lambda i: (0, 0, 0)),
        out_shape=jax.ShapeDtypeStruct((N, Cin, L), jnp.float32),
        scratch_shapes=[pltpu.VMEM((N, Cmid, Lx), compute_dtype)],
        compiler_params=pltpu.CompilerParams(
            dimension_semantics=("arbitrary",)),
    )(xflat, w1s, b1c, gammac, betac, w2s, b2c, mask)

    # drop the slack columns; layout is already NCHW -> no transpose needed.
    return out_over.reshape(N, Cin, H, Wp)[:, :, :, :W]


# --------------------------- pure-JAX reference ----------------------------- #

def ref_forward(x, w1, b1, gamma, beta, w2, b2, pad, eps=1e-5, slope=0.2):
    dn = ('NCHW', 'OIHW', 'NCHW')
    h = jax.lax.conv_general_dilated(x, w1, (1, 1), [(pad, pad), (pad, pad)],
                                     dimension_numbers=dn) + b1[None, :, None, None]
    mean = h.mean(axis=(0, 2, 3), keepdims=True)
    var = ((h - mean) ** 2).mean(axis=(0, 2, 3), keepdims=True)
    h = (h - mean) / jnp.sqrt(var + eps) * gamma[None, :, None, None] + beta[None, :, None, None]
    h = jnp.where(h >= 0, h, slope * h)
    out = jax.lax.conv_general_dilated(h, w2, (1, 1), [(pad, pad), (pad, pad)],
                                       dimension_numbers=dn) + b2[None, :, None, None]
    return out + x


# ---------------------------------- main ------------------------------------ #

if __name__ == "__main__":
    # Residual_Block(in_filters=8, mid_filters=16, kernel_size=3, stride=1, padding=1)
    N, Cin, H, W = 2, 8, 16, 16
    Cmid, K, stride, pad = 16, 3, 1, 1

    key = jax.random.PRNGKey(0)
    k = jax.random.split(key, 7)
    x = jax.random.normal(k[0], (N, Cin, H, W), jnp.float32)

    w1 = 0.1 * jax.random.normal(k[1], (Cmid, Cin, K, K), jnp.float32)   # conv1.weight
    b1 = 0.1 * jax.random.normal(k[2], (Cmid,), jnp.float32)             # conv1.bias
    gamma = 1.0 + 0.1 * jax.random.normal(k[3], (Cmid,), jnp.float32)    # bn.weight
    beta = 0.1 * jax.random.normal(k[4], (Cmid,), jnp.float32)           # bn.bias
    w2 = 0.1 * jax.random.normal(k[5], (Cin, Cmid, K, K), jnp.float32)   # conv2.weight
    b2 = 0.1 * jax.random.normal(k[6], (Cin,), jnp.float32)              # conv2.bias

    params = (w1, b1, gamma, beta, w2, b2)

    fwd = jax.jit(functools.partial(residual_block_forward, kernel_size=K,
                                    stride=stride, padding=pad))
    out = jax.block_until_ready(fwd(x, params))

    ref = ref_forward(x, w1, b1, gamma, beta, w2, b2, pad)
    assert out.shape == (N, Cin, H, W)
    assert jnp.allclose(out, ref, rtol=1e-3, atol=1e-3), \
        f"max err {float(jnp.max(jnp.abs(out - ref)))}"

    # bf16 MXU-operand fast path; f32 accumulation + f32 BN/epilogue.
    fwd_bf16 = jax.jit(functools.partial(residual_block_forward, kernel_size=K,
                                         stride=stride, padding=pad,
                                         compute_dtype=jnp.bfloat16))
    out_bf16 = jax.block_until_ready(fwd_bf16(x, params))
    # validate the bf16 path against the f32 kernel output (not the XLA ref)
    assert float(jnp.max(jnp.abs(out_bf16 - out))) < 0.15

    print("KERNEL_OK")
</pallas_src>

<mosaic_0001>
module attributes {stable_mosaic.version = 11 : i64} {
  func.func @residual_block_kernel(%arg0: i32, %arg1: memref<2x8x640xf32, #tpu.memory_space<vmem>>, %arg2: memref<16x72xf32, #tpu.memory_space<vmem>>, %arg3: memref<16x1xf32, #tpu.memory_space<vmem>>, %arg4: memref<16x1xf32, #tpu.memory_space<vmem>>, %arg5: memref<16x1xf32, #tpu.memory_space<vmem>>, %arg6: memref<8x144xf32, #tpu.memory_space<vmem>>, %arg7: memref<8x1xf32, #tpu.memory_space<vmem>>, %arg8: memref<1x768xf32, #tpu.memory_space<vmem>>, %arg9: memref<2x8x384xf32, #tpu.memory_space<vmem>>, %arg10: memref<2x16x640xf32, #tpu.memory_space<vmem>>) attributes {dimension_semantics = [#tpu.dimension_semantics<arbitrary>], iteration_bounds = array<i64: 1>, scalar_prefetch = 0 : i64, scratch_operands = 1 : i64, tpu.core_type = #tpu.core_type<tc>, window_params = [{pipeline_mode = #tpu.pipeline_mode<synchronous>, transform_indices = @transform_0, window_bounds = array<i64: 2, 8, 640>}, {pipeline_mode = #tpu.pipeline_mode<synchronous>, transform_indices = @transform_1, window_bounds = array<i64: 16, 72>}, {pipeline_mode = #tpu.pipeline_mode<synchronous>, transform_indices = @transform_2, window_bounds = array<i64: 16, 1>}, {pipeline_mode = #tpu.pipeline_mode<synchronous>, transform_indices = @transform_3, window_bounds = array<i64: 16, 1>}, {pipeline_mode = #tpu.pipeline_mode<synchronous>, transform_indices = @transform_4, window_bounds = array<i64: 16, 1>}, {pipeline_mode = #tpu.pipeline_mode<synchronous>, transform_indices = @transform_5, window_bounds = array<i64: 8, 144>}, {pipeline_mode = #tpu.pipeline_mode<synchronous>, transform_indices = @transform_6, window_bounds = array<i64: 8, 1>}, {pipeline_mode = #tpu.pipeline_mode<synchronous>, transform_indices = @transform_7, window_bounds = array<i64: 1, 768>}, {pipeline_mode = #tpu.pipeline_mode<synchronous>, transform_indices = @transform_8, window_bounds = array<i64: 2, 8, 384>}]} {
    %c0 = arith.constant 0 : index
    %c0_0 = arith.constant 0 : index
    %c0_1 = arith.constant 0 : index
    %0 = vector.load %arg1[%c0, %c0_0, %c0_1] : memref<2x8x640xf32, #tpu.memory_space<vmem>>, vector<2x8x640xf32>
    %1 = vector.extract_strided_slice %0 {offsets = [0, 0, 103], sizes = [1, 8, 384], strides = [1, 1, 1]} : vector<2x8x640xf32> to vector<1x8x384xf32>
    %2 = vector.shape_cast %1 : vector<1x8x384xf32> to vector<8x384xf32>
    %3 = vector.extract_strided_slice %0 {offsets = [0, 0, 104], sizes = [1, 8, 384], strides = [1, 1, 1]} : vector<2x8x640xf32> to vector<1x8x384xf32>
    %4 = vector.shape_cast %3 : vector<1x8x384xf32> to vector<8x384xf32>
    %5 = vector.extract_strided_slice %0 {offsets = [0, 0, 105], sizes = [1, 8, 384], strides = [1, 1, 1]} : vector<2x8x640xf32> to vector<1x8x384xf32>
    %6 = vector.shape_cast %5 : vector<1x8x384xf32> to vector<8x384xf32>
    %7 = vector.extract_strided_slice %0 {offsets = [0, 0, 127], sizes = [1, 8, 384], strides = [1, 1, 1]} : vector<2x8x640xf32> to vector<1x8x384xf32>
    %8 = vector.shape_cast %7 : vector<1x8x384xf32> to vector<8x384xf32>
    %9 = vector.extract_strided_slice %0 {offsets = [0, 0, 128], sizes = [1, 8, 384], strides = [1, 1, 1]} : vector<2x8x640xf32> to vector<1x8x384xf32>
    %10 = vector.shape_cast %9 : vector<1x8x384xf32> to vector<8x384xf32>
    %11 = vector.extract_strided_slice %0 {offsets = [0, 0, 129], sizes = [1, 8, 384], strides = [1, 1, 1]} : vector<2x8x640xf32> to vector<1x8x384xf32>
    %12 = vector.shape_cast %11 : vector<1x8x384xf32> to vector<8x384xf32>
    %13 = vector.extract_strided_slice %0 {offsets = [0, 0, 151], sizes = [1, 8, 384], strides = [1, 1, 1]} : vector<2x8x640xf32> to vector<1x8x384xf32>
    %14 = vector.shape_cast %13 : vector<1x8x384xf32> to vector<8x384xf32>
    %15 = vector.extract_strided_slice %0 {offsets = [0, 0, 152], sizes = [1, 8, 384], strides = [1, 1, 1]} : vector<2x8x640xf32> to vector<1x8x384xf32>
    %16 = vector.shape_cast %15 : vector<1x8x384xf32> to vector<8x384xf32>
    %17 = vector.extract_strided_slice %0 {offsets = [0, 0, 153], sizes = [1, 8, 384], strides = [1, 1, 1]} : vector<2x8x640xf32> to vector<1x8x384xf32>
    %18 = vector.shape_cast %17 : vector<1x8x384xf32> to vector<8x384xf32>
    %19 = tpu.concatenate %2, %4, %6, %8, %10, %12, %14, %16, %18 in 0 : vector<8x384xf32>, vector<8x384xf32>, vector<8x384xf32>, vector<8x384xf32>, vector<8x384xf32>, vector<8x384xf32>, vector<8x384xf32>, vector<8x384xf32>, vector<8x384xf32> -> vector<72x384xf32>
    %20 = vector.extract_strided_slice %0 {offsets = [1, 0, 103], sizes = [1, 8, 384], strides = [1, 1, 1]} : vector<2x8x640xf32> to vector<1x8x384xf32>
    %21 = vector.shape_cast %20 : vector<1x8x384xf32> to vector<8x384xf32>
    %22 = vector.extract_strided_slice %0 {offsets = [1, 0, 104], sizes = [1, 8, 384], strides = [1, 1, 1]} : vector<2x8x640xf32> to vector<1x8x384xf32>
    %23 = vector.shape_cast %22 : vector<1x8x384xf32> to vector<8x384xf32>
    %24 = vector.extract_strided_slice %0 {offsets = [1, 0, 105], sizes = [1, 8, 384], strides = [1, 1, 1]} : vector<2x8x640xf32> to vector<1x8x384xf32>
    %25 = vector.shape_cast %24 : vector<1x8x384xf32> to vector<8x384xf32>
    %26 = vector.extract_strided_slice %0 {offsets = [1, 0, 127], sizes = [1, 8, 384], strides = [1, 1, 1]} : vector<2x8x640xf32> to vector<1x8x384xf32>
    %27 = vector.shape_cast %26 : vector<1x8x384xf32> to vector<8x384xf32>
    %28 = vector.extract_strided_slice %0 {offsets = [1, 0, 128], sizes = [1, 8, 384], strides = [1, 1, 1]} : vector<2x8x640xf32> to vector<1x8x384xf32>
    %29 = vector.shape_cast %28 : vector<1x8x384xf32> to vector<8x384xf32>
    %30 = vector.extract_strided_slice %0 {offsets = [1, 0, 129], sizes = [1, 8, 384], strides = [1, 1, 1]} : vector<2x8x640xf32> to vector<1x8x384xf32>
    %31 = vector.shape_cast %30 : vector<1x8x384xf32> to vector<8x384xf32>
    %32 = vector.extract_strided_slice %0 {offsets = [1, 0, 151], sizes = [1, 8, 384], strides = [1, 1, 1]} : vector<2x8x640xf32> to vector<1x8x384xf32>
    %33 = vector.shape_cast %32 : vector<1x8x384xf32> to vector<8x384xf32>
    %34 = vector.extract_strided_slice %0 {offsets = [1, 0, 152], sizes = [1, 8, 384], strides = [1, 1, 1]} : vector<2x8x640xf32> to vector<1x8x384xf32>
    %35 = vector.shape_cast %34 : vector<1x8x384xf32> to vector<8x384xf32>
    %36 = vector.extract_strided_slice %0 {offsets = [1, 0, 153], sizes = [1, 8, 384], strides = [1, 1, 1]} : vector<2x8x640xf32> to vector<1x8x384xf32>
    %37 = vector.shape_cast %36 : vector<1x8x384xf32> to vector<8x384xf32>
    %38 = tpu.concatenate %21, %23, %25, %27, %29, %31, %33, %35, %37 in 0 : vector<8x384xf32>, vector<8x384xf32>, vector<8x384xf32>, vector<8x384xf32>, vector<8x384xf32>, vector<8x384xf32>, vector<8x384xf32>, vector<8x384xf32>, vector<8x384xf32> -> vector<72x384xf32>
    %39 = tpu.concatenate %19, %38 in 1 : vector<72x384xf32>, vector<72x384xf32> -> vector<72x768xf32>
    %c0_2 = arith.constant 0 : index
    %c0_3 = arith.constant 0 : index
    %40 = vector.load %arg2[%c0_2, %c0_3] : memref<16x72xf32, #tpu.memory_space<vmem>>, vector<16x72xf32>
    %cst = arith.constant dense<0.000000e+00> : vector<16x768xf32>
    %41 = tpu.matmul %40, %39, %cst {dimension_numbers = #tpu.dot_dimension_numbers<[1], [0], [0], [1], [0, 0, 1, 1], [], []>} : vector<16x72xf32>, vector<72x768xf32>, vector<16x768xf32> -> vector<16x768xf32>
    %c0_4 = arith.constant 0 : index
    %c0_5 = arith.constant 0 : index
    %42 = vector.load %arg3[%c0_4, %c0_5] : memref<16x1xf32, #tpu.memory_space<vmem>>, vector<16x1xf32>
    %43 = vector.broadcast %42 : vector<16x1xf32> to vector<16x768xf32>
    %44 = arith.addf %41, %43 : vector<16x768xf32>
    %c0_6 = arith.constant 0 : index
    %c0_7 = arith.constant 0 : index
    %45 = vector.load %arg8[%c0_6, %c0_7] : memref<1x768xf32, #tpu.memory_space<vmem>>, vector<1x768xf32>
    %46 = vector.broadcast %45 : vector<1x768xf32> to vector<16x768xf32>
    %47 = arith.mulf %44, %46 : vector<16x768xf32>
    %cst_8 = arith.constant dense<0.000000e+00> : vector<16xf32>
    %48 = vector.multi_reduction <add>, %47, %cst_8 [1] : vector<16x768xf32> to vector<16xf32>
    %49 = vector.shape_cast %48 : vector<16xf32> to vector<16x1xf32>
    %cst_9 = arith.constant 0.001953125 : f32
    %50 = vector.broadcast %cst_9 : f32 to vector<16x1xf32>
    %51 = arith.mulf %49, %50 : vector<16x1xf32>
    %52 = vector.broadcast %51 : vector<16x1xf32> to vector<16x768xf32>
    %53 = arith.subf %44, %52 : vector<16x768xf32>
    %54 = vector.broadcast %45 : vector<1x768xf32> to vector<16x768xf32>
    %55 = arith.mulf %53, %54 : vector<16x768xf32>
    %56 = arith.mulf %55, %55 : vector<16x768xf32>
    %cst_10 = arith.constant dense<0.000000e+00> : vector<16xf32>
    %57 = vector.multi_reduction <add>, %56, %cst_10 [1] : vector<16x768xf32> to vector<16xf32>
    %58 = vector.shape_cast %57 : vector<16xf32> to vector<16x1xf32>
    %cst_11 = arith.constant 0.001953125 : f32
    %59 = vector.broadcast %cst_11 : f32 to vector<16x1xf32>
    %60 = arith.mulf %58, %59 : vector<16x1xf32>
    %c0_12 = arith.constant 0 : index
    %c0_13 = arith.constant 0 : index
    %61 = vector.load %arg4[%c0_12, %c0_13] : memref<16x1xf32, #tpu.memory_space<vmem>>, vector<16x1xf32>
    %cst_14 = arith.constant 9.99999974E-6 : f32
    %62 = vector.broadcast %cst_14 : f32 to vector<16x1xf32>
    %63 = arith.addf %60, %62 : vector<16x1xf32>
    %64 = math.rsqrt %63 : vector<16x1xf32>
    %65 = arith.mulf %61, %64 : vector<16x1xf32>
    %c0_15 = arith.constant 0 : index
    %c0_16 = arith.constant 0 : index
    %66 = vector.load %arg5[%c0_15, %c0_16] : memref<16x1xf32, #tpu.memory_space<vmem>>, vector<16x1xf32>
    %67 = arith.mulf %51, %65 : vector<16x1xf32>
    %68 = arith.subf %66, %67 : vector<16x1xf32>
    %69 = vector.broadcast %65 : vector<16x1xf32> to vector<16x768xf32>
    %70 = arith.mulf %44, %69 : vector<16x768xf32>
    %71 = vector.broadcast %68 : vector<16x1xf32> to vector<16x768xf32>
    %72 = arith.addf %70, %71 : vector<16x768xf32>
    %cst_17 = arith.constant 0.000000e+00 : f32
    %73 = vector.broadcast %cst_17 : f32 to vector<16x768xf32>
    %74 = arith.cmpf oge, %72, %73 : vector<16x768xf32>
    %cst_18 = arith.constant 2.000000e-01 : f32
    %75 = vector.broadcast %cst_18 : f32 to vector<16x768xf32>
    %76 = arith.mulf %75, %72 : vector<16x768xf32>
    %77 = arith.select %74, %72, %76 : vector<16x768xi1>, vector<16x768xf32>
    %78 = vector.broadcast %45 : vector<1x768xf32> to vector<16x768xf32>
    %79 = arith.mulf %77, %78 : vector<16x768xf32>
    %cst_19 = arith.constant 0.000000e+00 : f32
    %80 = vector.broadcast %cst_19 : f32 to vector<2x16x128xf32>
    %c0_20 = arith.constant 0 : index
    %c0_21 = arith.constant 0 : index
    %c0_22 = arith.constant 0 : index
    %81 = vector.load %arg10[%c0_20, %c0_21, %c0_22] : memref<2x16x640xf32, #tpu.memory_space<vmem>>, vector<2x16x128xf32>
    tpu.vector_store %arg10[%c0_20, %c0_21, %c0_22], %80 {strides = array<i32>} : memref<2x16x640xf32, #tpu.memory_space<vmem>>, vector<2x16x128xf32>,
    %cst_23 = arith.constant 0.000000e+00 : f32
    %82 = vector.broadcast %cst_23 : f32 to vector<2x16x128xf32>
    %c0_24 = arith.constant 0 : index
    %c0_25 = arith.constant 0 : index
    %c512 = arith.constant 512 : index
    %83 = vector.load %arg10[%c0_24, %c0_25, %c512] : memref<2x16x640xf32, #tpu.memory_space<vmem>>, vector<2x16x128xf32>
    tpu.vector_store %arg10[%c0_24, %c0_25, %c512], %82 {strides = array<i32>} : memref<2x16x640xf32, #tpu.memory_space<vmem>>, vector<2x16x128xf32>,
    %84 = vector.extract_strided_slice %79 {offsets = [0, 0], sizes = [16, 384], strides = [1, 1]} : vector<16x768xf32> to vector<16x384xf32>
    %c0_26 = arith.constant 0 : index
    %c0_27 = arith.constant 0 : index
    %c128 = arith.constant 128 : index
    %85 = vector.load %arg10[%c0_26, %c0_27, %c128] : memref<2x16x640xf32, #tpu.memory_space<vmem>>, vector<1x16x384xf32>
    %86 = vector.shape_cast %85 : vector<1x16x384xf32> to vector<16x384xf32>
    %87 = vector.shape_cast %84 : vector<16x384xf32> to vector<1x16x384xf32>
    tpu.vector_store %arg10[%c0_26, %c0_27, %c128], %87 {strides = array<i32>} : memref<2x16x640xf32, #tpu.memory_space<vmem>>, vector<1x16x384xf32>,
    %88 = vector.extract_strided_slice %79 {offsets = [0, 384], sizes = [16, 384], strides = [1, 1]} : vector<16x768xf32> to vector<16x384xf32>
    %c1 = arith.constant 1 : index
    %c0_28 = arith.constant 0 : index
    %c128_29 = arith.constant 128 : index
    %89 = vector.load %arg10[%c1, %c0_28, %c128_29] : memref<2x16x640xf32, #tpu.memory_space<vmem>>, vector<1x16x384xf32>
    %90 = vector.shape_cast %89 : vector<1x16x384xf32> to vector<16x384xf32>
    %91 = vector.shape_cast %88 : vector<16x384xf32> to vector<1x16x384xf32>
    tpu.vector_store %arg10[%c1, %c0_28, %c128_29], %91 {strides = array<i32>} : memref<2x16x640xf32, #tpu.memory_space<vmem>>, vector<1x16x384xf32>,
    %c0_30 = arith.constant 0 : index
    %c0_31 = arith.constant 0 : index
    %c0_32 = arith.constant 0 : index
    %92 = vector.load %arg10[%c0_30, %c0_31, %c0_32] : memref<2x16x640xf32, #tpu.memory_space<vmem>>, vector<2x16x640xf32>
    %93 = vector.extract_strided_slice %92 {offsets = [0, 0, 103], sizes = [1, 16, 384], strides = [1, 1, 1]} : vector<2x16x640xf32> to vector<1x16x384xf32>
    %94 = vector.shape_cast %93 : vector<1x16x384xf32> to vector<16x384xf32>
    %95 = vector.extract_strided_slice %92 {offsets = [0, 0, 104], sizes = [1, 16, 384], strides = [1, 1, 1]} : vector<2x16x640xf32> to vector<1x16x384xf32>
    %96 = vector.shape_cast %95 : vector<1x16x384xf32> to vector<16x384xf32>
    %97 = vector.extract_strided_slice %92 {offsets = [0, 0, 105], sizes = [1, 16, 384], strides = [1, 1, 1]} : vector<2x16x640xf32> to vector<1x16x384xf32>
    %98 = vector.shape_cast %97 : vector<1x16x384xf32> to vector<16x384xf32>
    %99 = vector.extract_strided_slice %92 {offsets = [0, 0, 127], sizes = [1, 16, 384], strides = [1, 1, 1]} : vector<2x16x640xf32> to vector<1x16x384xf32>
    %100 = vector.shape_cast %99 : vector<1x16x384xf32> to vector<16x384xf32>
    %101 = vector.extract_strided_slice %92 {offsets = [0, 0, 128], sizes = [1, 16, 384], strides = [1, 1, 1]} : vector<2x16x640xf32> to vector<1x16x384xf32>
    %102 = vector.shape_cast %101 : vector<1x16x384xf32> to vector<16x384xf32>
    %103 = vector.extract_strided_slice %92 {offsets = [0, 0, 129], sizes = [1, 16, 384], strides = [1, 1, 1]} : vector<2x16x640xf32> to vector<1x16x384xf32>
    %104 = vector.shape_cast %103 : vector<1x16x384xf32> to vector<16x384xf32>
    %105 = vector.extract_strided_slice %92 {offsets = [0, 0, 151], sizes = [1, 16, 384], strides = [1, 1, 1]} : vector<2x16x640xf32> to vector<1x16x384xf32>
    %106 = vector.shape_cast %105 : vector<1x16x384xf32> to vector<16x384xf32>
    %107 = vector.extract_strided_slice %92 {offsets = [0, 0, 152], sizes = [1, 16, 384], strides = [1, 1, 1]} : vector<2x16x640xf32> to vector<1x16x384xf32>
    %108 = vector.shape_cast %107 : vector<1x16x384xf32> to vector<16x384xf32>
    %109 = vector.extract_strided_slice %92 {offsets = [0, 0, 153], sizes = [1, 16, 384], strides = [1, 1, 1]} : vector<2x16x640xf32> to vector<1x16x384xf32>
    %110 = vector.shape_cast %109 : vector<1x16x384xf32> to vector<16x384xf32>
    %111 = tpu.concatenate %94, %96, %98, %100, %102, %104, %106, %108, %110 in 0 : vector<16x384xf32>, vector<16x384xf32>, vector<16x384xf32>, vector<16x384xf32>, vector<16x384xf32>, vector<16x384xf32>, vector<16x384xf32>, vector<16x384xf32>, vector<16x384xf32> -> vector<144x384xf32>
    %112 = vector.extract_strided_slice %92 {offsets = [1, 0, 103], sizes = [1, 16, 384], strides = [1, 1, 1]} : vector<2x16x640xf32> to vector<1x16x384xf32>
    %113 = vector.shape_cast %112 : vector<1x16x384xf32> to vector<16x384xf32>
    %114 = vector.extract_strided_slice %92 {offsets = [1, 0, 104], sizes = [1, 16, 384], strides = [1, 1, 1]} : vector<2x16x640xf32> to vector<1x16x384xf32>
    %115 = vector.shape_cast %114 : vector<1x16x384xf32> to vector<16x384xf32>
    %116 = vector.extract_strided_slice %92 {offsets = [1, 0, 105], sizes = [1, 16, 384], strides = [1, 1, 1]} : vector<2x16x640xf32> to vector<1x16x384xf32>
    %117 = vector.shape_cast %116 : vector<1x16x384xf32> to vector<16x384xf32>
    %118 = vector.extract_strided_slice %92 {offsets = [1, 0, 127], sizes = [1, 16, 384], strides = [1, 1, 1]} : vector<2x16x640xf32> to vector<1x16x384xf32>
    %119 = vector.shape_cast %118 : vector<1x16x384xf32> to vector<16x384xf32>
    %120 = vector.extract_strided_slice %92 {offsets = [1, 0, 128], sizes = [1, 16, 384], strides = [1, 1, 1]} : vector<2x16x640xf32> to vector<1x16x384xf32>
    %121 = vector.shape_cast %120 : vector<1x16x384xf32> to vector<16x384xf32>
    %122 = vector.extract_strided_slice %92 {offsets = [1, 0, 129], sizes = [1, 16, 384], strides = [1, 1, 1]} : vector<2x16x640xf32> to vector<1x16x384xf32>
    %123 = vector.shape_cast %122 : vector<1x16x384xf32> to vector<16x384xf32>
    %124 = vector.extract_strided_slice %92 {offsets = [1, 0, 151], sizes = [1, 16, 384], strides = [1, 1, 1]} : vector<2x16x640xf32> to vector<1x16x384xf32>
    %125 = vector.shape_cast %124 : vector<1x16x384xf32> to vector<16x384xf32>
    %126 = vector.extract_strided_slice %92 {offsets = [1, 0, 152], sizes = [1, 16, 384], strides = [1, 1, 1]} : vector<2x16x640xf32> to vector<1x16x384xf32>
    %127 = vector.shape_cast %126 : vector<1x16x384xf32> to vector<16x384xf32>
    %128 = vector.extract_strided_slice %92 {offsets = [1, 0, 153], sizes = [1, 16, 384], strides = [1, 1, 1]} : vector<2x16x640xf32> to vector<1x16x384xf32>
    %129 = vector.shape_cast %128 : vector<1x16x384xf32> to vector<16x384xf32>
    %130 = tpu.concatenate %113, %115, %117, %119, %121, %123, %125, %127, %129 in 0 : vector<16x384xf32>, vector<16x384xf32>, vector<16x384xf32>, vector<16x384xf32>, vector<16x384xf32>, vector<16x384xf32>, vector<16x384xf32>, vector<16x384xf32>, vector<16x384xf32> -> vector<144x384xf32>
    %131 = tpu.concatenate %111, %130 in 1 : vector<144x384xf32>, vector<144x384xf32> -> vector<144x768xf32>
    %c0_33 = arith.constant 0 : index
    %c0_34 = arith.constant 0 : index
    %132 = vector.load %arg6[%c0_33, %c0_34] : memref<8x144xf32, #tpu.memory_space<vmem>>, vector<8x144xf32>
    %cst_35 = arith.constant dense<0.000000e+00> : vector<8x768xf32>
    %133 = tpu.matmul %132, %131, %cst_35 {dimension_numbers = #tpu.dot_dimension_numbers<[1], [0], [0], [1], [0, 0, 1, 1], [], []>} : vector<8x144xf32>, vector<144x768xf32>, vector<8x768xf32> -> vector<8x768xf32>
    %c0_36 = arith.constant 0 : index
    %c0_37 = arith.constant 0 : index
    %134 = vector.load %arg7[%c0_36, %c0_37] : memref<8x1xf32, #tpu.memory_space<vmem>>, vector<8x1xf32>
    %135 = vector.broadcast %134 : vector<8x1xf32> to vector<8x768xf32>
    %136 = arith.addf %133, %135 : vector<8x768xf32>
    %c0_38 = arith.constant 0 : index
    %c0_39 = arith.constant 0 : index
    %c128_40 = arith.constant 128 : index
    %137 = vector.load %arg1[%c0_38, %c0_39, %c128_40] : memref<2x8x640xf32, #tpu.memory_space<vmem>>, vector<1x8x384xf32>
    %138 = vector.shape_cast %137 : vector<1x8x384xf32> to vector<8x384xf32>
    %139 = vector.extract_strided_slice %136 {offsets = [0, 0], sizes = [8, 384], strides = [1, 1]} : vector<8x768xf32> to vector<8x384xf32>
    %140 = arith.addf %139, %138 : vector<8x384xf32>
    %c0_41 = arith.constant 0 : index
    %c0_42 = arith.constant 0 : index
    %c0_43 = arith.constant 0 : index
    %141 = vector.load %arg9[%c0_41, %c0_42, %c0_43] : memref<2x8x384xf32, #tpu.memory_space<vmem>>, vector<1x8x384xf32>
    %142 = vector.shape_cast %141 : vector<1x8x384xf32> to vector<8x384xf32>
    %143 = vector.shape_cast %140 : vector<8x384xf32> to vector<1x8x384xf32>
    tpu.vector_store %arg9[%c0_41, %c0_42, %c0_43], %143 {strides = array<i32>} : memref<2x8x384xf32, #tpu.memory_space<vmem>>, vector<1x8x384xf32>,
    %c1_44 = arith.constant 1 : index
    %c0_45 = arith.constant 0 : index
    %c128_46 = arith.constant 128 : index
    %144 = vector.load %arg1[%c1_44, %c0_45, %c128_46] : memref<2x8x640xf32, #tpu.memory_space<vmem>>, vector<1x8x384xf32>
    %145 = vector.shape_cast %144 : vector<1x8x384xf32> to vector<8x384xf32>
    %146 = vector.extract_strided_slice %136 {offsets = [0, 384], sizes = [8, 384], strides = [1, 1]} : vector<8x768xf32> to vector<8x384xf32>
    %147 = arith.addf %146, %145 : vector<8x384xf32>
    %c1_47 = arith.constant 1 : index
    %c0_48 = arith.constant 0 : index
    %c0_49 = arith.constant 0 : index
    %148 = vector.load %arg9[%c1_47, %c0_48, %c0_49] : memref<2x8x384xf32, #tpu.memory_space<vmem>>, vector<1x8x384xf32>
    %149 = vector.shape_cast %148 : vector<1x8x384xf32> to vector<8x384xf32>
    %150 = vector.shape_cast %147 : vector<8x384xf32> to vector<1x8x384xf32>
    tpu.vector_store %arg9[%c1_47, %c0_48, %c0_49], %150 {strides = array<i32>} : memref<2x8x384xf32, #tpu.memory_space<vmem>>, vector<1x8x384xf32>,
    return
  }
  func.func @transform_0(%arg0: i32) -> (i32, i32, i32) {
    %c0_i32 = arith.constant 0 : i32
    %c0_i32_0 = arith.constant 0 : i32
    %c0_i32_1 = arith.constant 0 : i32
    %c0_i32_2 = arith.constant 0 : i32
    return %c0_i32, %c0_i32_0, %c0_i32_1 : i32, i32, i32
  }
  func.func @transform_1(%arg0: i32) -> (i32, i32) {
    %c0_i32 = arith.constant 0 : i32
    %c0_i32_0 = arith.constant 0 : i32
    %c0_i32_1 = arith.constant 0 : i32
    return %c0_i32, %c0_i32_0 : i32, i32
  }
  func.func @transform_2(%arg0: i32) -> (i32, i32) {
    %c0_i32 = arith.constant 0 : i32
    %c0_i32_0 = arith.constant 0 : i32
    %c0_i32_1 = arith.constant 0 : i32
    return %c0_i32, %c0_i32_0 : i32, i32
  }
  func.func @transform_3(%arg0: i32) -> (i32, i32) {
    %c0_i32 = arith.constant 0 : i32
    %c0_i32_0 = arith.constant 0 : i32
    %c0_i32_1 = arith.constant 0 : i32
    return %c0_i32, %c0_i32_0 : i32, i32
  }
  func.func @transform_4(%arg0: i32) -> (i32, i32) {
    %c0_i32 = arith.constant 0 : i32
    %c0_i32_0 = arith.constant 0 : i32
    %c0_i32_1 = arith.constant 0 : i32
    return %c0_i32, %c0_i32_0 : i32, i32
  }
  func.func @transform_5(%arg0: i32) -> (i32, i32) {
    %c0_i32 = arith.constant 0 : i32
    %c0_i32_0 = arith.constant 0 : i32
    %c0_i32_1 = arith.constant 0 : i32
    return %c0_i32, %c0_i32_0 : i32, i32
  }
  func.func @transform_6(%arg0: i32) -> (i32, i32) {
    %c0_i32 = arith.constant 0 : i32
    %c0_i32_0 = arith.constant 0 : i32
    %c0_i32_1 = arith.constant 0 : i32
    return %c0_i32, %c0_i32_0 : i32, i32
  }
  func.func @transform_7(%arg0: i32) -> (i32, i32) {
    %c0_i32 = arith.constant 0 : i32
    %c0_i32_0 = arith.constant 0 : i32
    %c0_i32_1 = arith.constant 0 : i32
    return %c0_i32, %c0_i32_0 : i32, i32
  }
  func.func @transform_8(%arg0: i32) -> (i32, i32, i32) {
    %c0_i32 = arith.constant 0 : i32
    %c0_i32_0 = arith.constant 0 : i32
    %c0_i32_1 = arith.constant 0 : i32
    %c0_i32_2 = arith.constant 0 : i32
    return %c0_i32, %c0_i32_0, %c0_i32_1 : i32, i32, i32
  }
}

</mosaic_0001>

<bundles_post_ra>
// kernel: residual_block_forward.1
= control target key start
LH: loop header
LB: loop body
LE: loop exit
PB: predicated region body
PF: predicated region fallthrough
CT: control target
= control target key end

     0   :  { %s3257_s13 = smov 126   ;;  %s3258_s14 = smov 127   ;;  %vm51_vm0 = vcmask 1039360   ;;  %vm63_vm1 = vcmask 1031168   ;;  %vm75_vm2 = vcmask 850944   ;;  %vm85_vm3 = vcmask 842752   ;;  %s5182_s0 = inlined_call_operand.vmem [shape: f32[2,8,640], index: 0, kind: input, shape index: {}]   ;;  %s5183_s2 = inlined_call_operand.vmem [shape: f32[16,1], index: 2, kind: input, shape index: {}]   ;;  %s5184_s1 = inlined_call_operand.vmem [shape: f32[16,72], index: 1, kind: input, shape index: {}]   ;;  %s5185_s7 = inlined_call_operand.vmem [shape: f32[1,768], index: 7, kind: input, shape index: {}]   ;;  %s5186_s3 = inlined_call_operand.vmem [shape: f32[16,1], index: 3, kind: input, shape index: {}]   ;;  %s5187_s4 = inlined_call_operand.vmem [shape: f32[16,1], index: 4, kind: input, shape index: {}]   ;;  %s5188_s5 = inlined_call_operand.vmem [shape: f32[8,144], index: 5, kind: input, shape index: {}]   ;;  %s5189_s6 = inlined_call_operand.vmem [shape: f32[8,1], index: 6, kind: input, shape index: {}]   ;;  %s5190_s8 = inlined_call_operand.vmem [shape: f32[2,8,384], index: 8, kind: output, shape index: {}]  }
   0x1   :  { %v30_v0 = vld [vmem:[%s5182_s0 + $0x8] sm:$0xff]  ;;  %v31_v1 = vld [vmem:[%s5182_s0 + $0x10] sm:$0xff]  ;;  %v3322_v2 = vld [vmem:[%s5182_s0] sm:$0xff]  ;;  %s3259_s17 = smov 104   ;;  %s3260_s18 = smov 103   ;;  %vm97_vm4 = vcmask 834560  }
   0x2   :  { %v2296_v3 = vpack.i.bf16 %v31_v1, %v30_v0  ;;  %v3327_v4 = vld [vmem:[%s5182_s0 + $0x18] sm:$0xff]  ;;  %v35_v6 = vld [vmem:[%s5182_s0 + $0x30] sm:$0xff]  ;;  %s3261_s19 = smov 102   ;;  %s3262_s20 = smov 80   ;;  %v37_v9 = vld [vmem:[%s5182_s0 + $0x40] sm:$0xff]  ;;  %vm121_vm5 = vcmask 646144  }
   0x3   :  { %v2301_v5 = vpack.i.bf16 %v3322_v2, %v3327_v4  ;;  %v2321_v7 = vpack.i.bf16 %v35_v6, %v3327_v4  ;;  %v36_v8 = vld [vmem:[%s5182_s0 + $0x38] sm:$0xff]  ;;  %v34_v10 = vld [vmem:[%s5182_s0 + $0x28] sm:$0xff]  ;;  %s3263_s27 = smov 79   ;;  %s3264_s28 = smov 78   ;;  %v33_v14 = vld [vmem:[%s5182_s0 + $0x20] sm:$0xff]  ;;  %vm109_vm6 = vcmask 654336  }
   0x4   :  { %2297 = vrot.lane.b32.xlu1 %v2296_v3, %s3257_s13  ;;  %2287 = vrot.lane.b32.xlu0 %v2296_v3, %s3258_s14  ;;  %v2361_v11 = vpack.i.bf16 %v37_v9, %v36_v8  ;;  %v2356_v12 = vpack.i.bf16 %v35_v6, %v34_v10  ;;  %v38_v13 = vld [vmem:[%s5182_s0 + $0x48] sm:$0xff]  ;;  %v2391_v16 = vpack.i.bf16 %v33_v14, %v36_v8  ;;  %s3265_s11 = smov 25   ;;  %vm133_vm7 = vcmask 637952  }
   0x5   :  { %v2396_v15 = vpack.i.bf16 %v38_v13, %v37_v9  ;;  %vm299_vm8 = vcmask 203776   ;;  %vm494_vm9 = vcmask 588800  }
   0x8   :  { %2302 = vrot.lane.b32.xlu1 %v2301_v5, %s3257_s13  ;;  %2292 = vrot.lane.b32.xlu0 %v2301_v5, %s3258_s14 }
   0xc   :  { %2312 = vrot.lane.b32.xlu1 %v2301_v5, %s3259_s17  ;;  %2307 = vrot.lane.b32.xlu0 %v2296_v3, %s3259_s17 }
  0x10   :  { %2322 = vrot.lane.b32.xlu1 %v2321_v7, %s3260_s18  ;;  %2317 = vrot.lane.b32.xlu0 %v2296_v3, %s3260_s18 }
  0x14   :  { %2332 = vrot.lane.b32.xlu1 %v2321_v7, %s3261_s19  ;;  %2327 = vrot.lane.b32.xlu0 %v2296_v3, %s3261_s19 }
  0x18   :  { %2342 = vrot.lane.b32.xlu1 %v2321_v7, %s3262_s20  ;;  %2337 = vrot.lane.b32.xlu0 %v2296_v3, %s3262_s20 }
  0x1c   :  { %2352 = vrot.lane.b32.xlu1 %v2321_v7, %s3263_s27  ;;  %2347 = vrot.lane.b32.xlu0 %v2296_v3, %s3263_s27 }
  0x20   :  { %2362 = vrot.lane.b32.xlu1 %v2361_v11, %s3258_s14  ;;  %2357 = vrot.lane.b32.xlu0 %v2356_v12, %s3258_s14 }
  0x24   :  { %127 = vrot.lane.b32.xlu1 %v31_v1, %s3264_s28  ;;  %125 = vrot.lane.b32.xlu0 %v30_v0, %s3264_s28 }
  0x28   :  { %2367 = vrot.lane.b32.xlu1 %v2356_v12, %s3257_s13  ;;  %129 = vrot.lane.b32.xlu0 %v3327_v4, %s3264_s28 }
  0x2c   :  { %2377 = vrot.lane.b32.xlu1 %v2356_v12, %s3259_s17  ;;  %2372 = vrot.lane.b32.xlu0 %v2361_v11, %s3257_s13 }
  0x30   :  { %2387 = vrot.lane.b32.xlu1 %v2361_v11, %s3260_s18  ;;  %2382 = vrot.lane.b32.xlu0 %v2361_v11, %s3259_s17 }
  0x34   :  { %2397 = vrot.lane.b32.xlu1 %v2396_v15, %s3261_s19  ;;  %2392 = vrot.lane.b32.xlu0 %v2391_v16, %s3261_s19 }
  0x38   :  { %2407 = vrot.lane.b32.xlu1 %v2391_v16, %s3263_s27  ;;  %2402 = vrot.lane.b32.xlu0 %v2391_v16, %s3262_s20 }
  0x3c   :  { %2412 = vrot.lane.b32.xlu0 %v2396_v15, %s3262_s20  ;;  %2417 = vrot.lane.b32.xlu1 %v2396_v15, %s3263_s27 }
  0x40   :  { %216 = vrot.lane.b32.xlu0 %v35_v6, %s3264_s28  ;;  %218 = vrot.lane.b32.xlu1 %v36_v8, %s3264_s28 }
  0x44   :  { %131 = vrot.lane.b32.xlu0 %v33_v14, %s3264_s28  ;;  %220 = vrot.lane.b32.xlu1 %v37_v9, %s3264_s28 }
  0x48   :  { %222 = vrot.lane.b32.xlu0 %v38_v13, %s3264_s28  ;;  %2422 = vrot.lane.b32.xlu1 %v2296_v3, %s3265_s11 }
  0x4c   :  { %2427 = vrot.lane.b32.xlu1 %v2356_v12, %s3265_s11  ;;  %2432 = vrot.lane.b32.xlu0 %v2361_v11, %s3265_s11 }
  0x76   :  { %v3389_v17 = vpop.permute.xlu1 %2297  ;;  %v2288_v18 = vpop.permute.xlu0 %2287 }
  0x77   :  { %v2300_v43 = vunpack.i.h.bf16 %v3389_v17  ;;  %v2290_v44 = vunpack.i.h.bf16 %v2288_v18  ;;  %v2289_v45 = vunpack.i.l.bf16 %v2288_v18  ;;  %v2299_v46 = vunpack.i.l.bf16 %v3389_v17 }
  0x79   :  { %v53_v55 = vsel %vm51_vm0, %v2289_v45, %v2290_v44  ;;  %v65_v56 = vsel %vm63_vm1, %v2299_v46, %v2300_v43 }
  0x7a   :  { %v2303_v19 = vpop.permute.xlu1 %2302  ;;  %v2293_v20 = vpop.permute.xlu0 %2292 }
  0x7b   :  { %v2294_v29 = vunpack.i.l.bf16 %v2293_v20  ;;  %v2295_v39 = vunpack.i.h.bf16 %v2293_v20  ;;  %v2304_v41 = vunpack.i.l.bf16 %v2303_v19  ;;  %v2305_v54 = vunpack.i.h.bf16 %v2303_v19 }
  0x7d   :  { %v2446_v33 = vpack.i.bf16 %v2294_v29, %v3327_v4  ;;  %v54_v52 = vsel %vm51_vm0, %v2290_v44, %v2294_v29  ;;  %v52_v53 = vsel %vm51_vm0, %v2295_v39, %v2289_v45  ;;  %v66_v60 = vsel %vm63_vm1, %v2300_v43, %v2304_v41 }
  0x7e   :  { %v3391_v21 = vpop.permute.xlu1 %2312  ;;  %v3393_v22 = vpop.permute.xlu0 %2307  ;;  %v2456_v58 = vpack.i.bf16 %v54_v52, %v53_v55  ;;  %v2461_v59 = vpack.i.bf16 %v52_v53, %v3322_v2  ;;  %v2466_v2 = vpack.i.bf16 %v66_v60, %v65_v56  ;;  %v64_v4 = vsel %vm63_vm1, %v2305_v54, %v2299_v46 }
  0x7f   :  { %v2314_v42 = vunpack.i.l.bf16 %v3391_v21  ;;  %v2310_v49 = vunpack.i.h.bf16 %v3393_v22  ;;  %v2309_v50 = vunpack.i.l.bf16 %v3393_v22  ;;  %v2315_v57 = vunpack.i.h.bf16 %v3391_v21 }
  0x80   :  { %v3266_v43 = vmov 0.0  }
  0x81   :  { %v2451_v48 = vpack.i.bf16 %v2314_v42, %v2304_v41  ;;  %v77_v63 = vsel %vm75_vm2, %v2309_v50, %v2310_v49  ;;  %v78_v0 = vsel %vm75_vm2, %v2310_v49, %v2314_v42  ;;  %v76_v8 = vsel %vm75_vm2, %v2315_v57, %v2309_v50  ;;  %565 = vmatprep.mubr.f32.mxu0 %v3266_v43 }
  0x82   :  { %v3395_v23 = vpop.permute.xlu1 %2322  ;;  %v3397_v24 = vpop.permute.xlu0 %2317  ;;  %v2471_v7 = vpack.i.bf16 %v78_v0, %v77_v63  ;;  %v2476_v15 = vpack.i.bf16 %v76_v8, %v64_v4  ;;  %642 = vmatprep.mubr.f32.mxu1 %v3266_v43 }
  0x83   :  { %v2319_v27 = vunpack.i.l.bf16 %v3397_v24  ;;  %v2324_v61 = vunpack.i.l.bf16 %v3395_v23  ;;  %v2320_v62 = vunpack.i.h.bf16 %v3397_v24 }
  0x85   :  { %v86_v11 = vsel %vm85_vm3, %v2319_v27, %v2320_v62  ;;  %v87_v12 = vsel %vm85_vm3, %v2320_v62, %v2324_v61 }
  0x86   :  { %v3399_v25 = vpop.permute.xlu1 %2332  ;;  %v3401_v26 = vpop.permute.xlu0 %2327  ;;  %v2481_v16 = vpack.i.bf16 %v87_v12, %v86_v11 }
  0x87   :  { %v2329_v28 = vunpack.i.l.bf16 %v3401_v26  ;;  %v2334_v5 = vunpack.i.l.bf16 %v3399_v25  ;;  %v2330_v6 = vunpack.i.h.bf16 %v3401_v26 }
  0x89   :  { %v2436_v30 = vpack.i.bf16 %v2329_v28, %v2319_v27  ;;  %v98_v17 = vsel %vm97_vm4, %v2329_v28, %v2330_v6  ;;  %v99_v18 = vsel %vm97_vm4, %v2330_v6, %v2334_v5 }
  0x8a   :  { %v3407_v31 = vpop.permute.xlu1 %2342  ;;  %v3409_v32 = vpop.permute.xlu0 %2337  ;;  %v2486_v27 = vpack.i.bf16 %v99_v18, %v98_v17 }
  0x8b   :  { %2437 = vrot.lane.b32.xlu1 %v2436_v30, %s3265_s11  ;;  %v2339_v35 = vunpack.i.l.bf16 %v3409_v32  ;;  %v2344_v19 = vunpack.i.l.bf16 %v3407_v31  ;;  %v2340_v20 = vunpack.i.h.bf16 %v3409_v32 }
  0x8e   :  { %v3413_v34 = vpop.permute.xlu0 %2347  ;;  %v3416_v36 = vpop.permute.xlu1 %2352 }
  0x8f   :  { %v2349_v37 = vunpack.i.l.bf16 %v3413_v34  ;;  %2447 = vrot.lane.b32.xlu1 %v2446_v33, %s3265_s11  ;;  %v2354_v9 = vunpack.i.l.bf16 %v3416_v36  ;;  %v2350_v10 = vunpack.i.h.bf16 %v3413_v34  ;;  %v110_v33 = vsel %vm109_vm6, %v2339_v35, %v2340_v20 }
  0x90   :  { %v111_v34 = vsel %vm109_vm6, %v2340_v20, %v2344_v19 }
  0x91   :  { %v2441_v38 = vpack.i.bf16 %v2349_v37, %v2339_v35  ;;  %v122_v21 = vsel %vm121_vm5, %v2349_v37, %v2350_v10  ;;  %v123_v22 = vsel %vm121_vm5, %v2350_v10, %v2354_v9  ;;  %v2491_v35 = vpack.i.bf16 %v111_v34, %v110_v33 }
  0x92   :  { %v3424_v40 = vpop.permute.xlu0 %2357  ;;  %v3430_v47 = vpop.permute.xlu1 %2362  ;;  %v2496_v28 = vpack.i.bf16 %v123_v22, %v122_v21  ;;  %v2345_v22 = vunpack.i.h.bf16 %v3407_v31 }
  0x93   :  { %2442 = vrot.lane.b32.xlu0 %v2441_v38, %s3265_s11  ;;  %v2365_v24 = vunpack.i.h.bf16 %v3430_v47  ;;  %v2364_v26 = vunpack.i.l.bf16 %v3430_v47  ;;  %v2360_v29 = vunpack.i.h.bf16 %v3424_v40  ;;  %v2359_v30 = vunpack.i.l.bf16 %v3424_v40 }
  0x95   :  { %v151_v40 = vsel %vm51_vm0, %v2364_v26, %v2365_v24  ;;  %v149_v44 = vsel %vm51_vm0, %v2359_v30, %v2360_v29  ;;  %v150_v45 = vsel %vm51_vm0, %v2360_v29, %v2364_v26 }
  0x96   :  { %v3434_v51 = vpop.permute.xlu0 %125  ;;  %v3450_v1 = vpop.permute.xlu1 %127  ;;  %v2501_v55 = vpack.i.bf16 %v150_v45, %v149_v44 }
  0x97   :  { %2452 = vrot.lane.b32.xlu0 %v2451_v48, %s3265_s11  ;;  %291 = vrot.lane.b32.xlu1 %v3434_v51, %s3265_s11  ;;  %v2506_v48 = vpack.i.bf16 %v2365_v24, %v151_v40  ;;  %v134_v0 = vsel %vm133_vm7, %v3434_v51, %v3450_v1  ;;  %v2325_v51 = vunpack.i.h.bf16 %v3395_v23  ;;  %v2355_v23 = vunpack.i.h.bf16 %v3416_v36 }
  0x9a   :  { %v3452_v3 = vpop.permute.xlu0 %129  ;;  %v2368_v13 = vpop.permute.xlu1 %2367 }
  0x9b   :  { %2457 = vrot.lane.b32.xlu0 %v2456_v58, %s3265_s11  ;;  %2462 = vrot.lane.b32.xlu1 %v2461_v59, %s3265_s11  ;;  %v135_v39 = vsel %vm133_vm7, %v3450_v1, %v3452_v3  ;;  %v2370_v46 = vunpack.i.h.bf16 %v2368_v13  ;;  %v2369_v47 = vunpack.i.l.bf16 %v2368_v13 }
  0x9d   :  { %v160_v58 = vsel %vm63_vm1, %v2369_v47, %v2370_v46 }
  0x9e   :  { %v3468_v14 = vpop.permute.xlu0 %2372  ;;  %v2378_v37 = vpop.permute.xlu1 %2377 }
  0x9f   :  { %2467 = vrot.lane.b32.xlu0 %v2466_v2, %s3265_s11  ;;  %2472 = vrot.lane.b32.xlu1 %v2471_v7, %s3265_s11  ;;  %v2380_v41 = vunpack.i.h.bf16 %v2378_v37  ;;  %v2379_v32 = vunpack.i.l.bf16 %v2378_v37  ;;  %v2374_v49 = vunpack.i.l.bf16 %v3468_v14  ;;  %v2375_v62 = vunpack.i.h.bf16 %v3468_v14 }
  0xa0   :  { %v2335_v7 = vunpack.i.h.bf16 %v3399_v25 }
  0xa1   :  { %v171_v52 = vsel %vm75_vm2, %v2379_v32, %v2380_v41  ;;  %v161_v59 = vsel %vm63_vm1, %v2370_v46, %v2374_v49  ;;  %v162_v11 = vsel %vm63_vm1, %v2374_v49, %v2375_v62 }
  0xa2   :  { %v2383_v38 = vpop.permute.xlu0 %2382  ;;  %v2388_v54 = vpop.permute.xlu1 %2387  ;;  %v2511_v4 = vpack.i.bf16 %v161_v59, %v160_v58 }
  0xa3   :  { %2477 = vrot.lane.b32.xlu0 %v2476_v15, %s3265_s11  ;;  %2482 = vrot.lane.b32.xlu1 %v2481_v16, %s3265_s11  ;;  %v2384_v42 = vunpack.i.l.bf16 %v2383_v38  ;;  %v2385_v50 = vunpack.i.h.bf16 %v2383_v38  ;;  %v2390_v8 = vunpack.i.h.bf16 %v2388_v54  ;;  %v2389_v10 = vunpack.i.l.bf16 %v2388_v54 }
  0xa4   :  { %v2521_v15 = vpack.i.bf16 %v2375_v62, %v162_v11  ;;  %v482_v62 = vld [vmem:[%s5183_s2] sm:$0xff] }
  0xa5   :  { %v172_v53 = vsel %vm75_vm2, %v2380_v41, %v2384_v42  ;;  %v173_v60 = vsel %vm75_vm2, %v2384_v42, %v2385_v50  ;;  %v181_v1 = vsel %vm85_vm3, %v2389_v10, %v2390_v8  ;;  %v180_v20 = vsel %vm85_vm3, %v2325_v51, %v2389_v10 }
  0xa6   :  { %v2393_v56 = vpop.permute.xlu0 %2392  ;;  %v2516_v57 = vpack.i.bf16 %v172_v53, %v171_v52  ;;  %v2398_v2 = vpop.permute.xlu1 %2397  ;;  %v2526_v6 = vpack.i.bf16 %v2385_v50, %v173_v60  ;;  %v2546_v21 = vpack.i.bf16 %v2390_v8, %v181_v1  ;;  %v3267_v60 = vmov 0  }
  0xa7   :  { %2487 = vrot.lane.b32.xlu0 %v2486_v27, %s3265_s11  ;;  %2497 = vrot.lane.b32.xlu1 %v2496_v28, %s3265_s11  ;;  %v2394_v63 = vunpack.i.l.bf16 %v2393_v56  ;;  %v2395_v17 = vunpack.i.h.bf16 %v2393_v56  ;;  %v2400_v24 = vunpack.i.h.bf16 %v2398_v2  ;;  %v2399_v26 = vunpack.i.l.bf16 %v2398_v2 }
  0xa8   :  { %v2531_v27 = vpack.i.bf16 %v180_v20, %v2325_v51  ;;  %2581 = vset.pattern.permute.xlu1 %v3267_v60  ;;  %2582 = vset.pattern.permute.xlu0 %v3267_v60 }
  0xa9   :  { %v191_v12 = vsel %vm97_vm4, %v2335_v7, %v2394_v63  ;;  %v100_v33 = vsel %vm97_vm4, %v2334_v5, %v2395_v17  ;;  %v192_v41 = vsel %vm97_vm4, %v2394_v63, %v2399_v26  ;;  %v193_v42 = vsel %vm97_vm4, %v2399_v26, %v2400_v24 }
  0xaa   :  { %v2403_v13 = vpop.permute.xlu0 %2402  ;;  %v2408_v14 = vpop.permute.xlu1 %2407  ;;  %v2536_v16 = vpack.i.bf16 %v191_v12, %v2335_v7  ;;  %v2551_v45 = vpack.i.bf16 %v193_v42, %v192_v41 }
  0xab   :  { %2492 = vrot.lane.b32.xlu0 %v2491_v35, %s3265_s11  ;;  %295 = vrot.lane.b32.xlu1 %v135_v39, %s3265_s11  ;;  %v2404_v18 = vunpack.i.l.bf16 %v2403_v13  ;;  %v2410_v29 = vunpack.i.h.bf16 %v2408_v14  ;;  %v2405_v30 = vunpack.i.h.bf16 %v2403_v13  ;;  %v2541_v39 = vpack.i.bf16 %v100_v33, %v2324_v61 }
  0xac   :  { %v2409_v32 = vunpack.i.l.bf16 %v2408_v14 }
  0xad   :  { %v202_v34 = vsel %vm109_vm6, %v2345_v22, %v2404_v18  ;;  %v112_v25 = vsel %vm109_vm6, %v2344_v19, %v2405_v30  ;;  %v124_v5 = vsel %vm121_vm5, %v2354_v9, %v2410_v29 }
  0xae   :  { %v2418_v28 = vpop.permute.xlu1 %2417  ;;  %v2556_v40 = vpack.i.bf16 %v202_v34, %v2345_v22  ;;  %v2413_v44 = vpop.permute.xlu0 %2412  ;;  %v2566_v46 = vpack.i.bf16 %v124_v5, %v112_v25  ;;  %v213_v19 = vsel %vm121_vm5, %v2355_v23, %v2409_v32 }
  0xaf   :  { %2502 = vrot.lane.b32.xlu0 %v2501_v55, %s3265_s11  ;;  %2507 = vrot.lane.b32.xlu1 %v2506_v48, %s3265_s11  ;;  %v2420_v37 = vunpack.i.h.bf16 %v2418_v28  ;;  %v2419_v38 = vunpack.i.l.bf16 %v2418_v28  ;;  %v2415_v31 = vunpack.i.h.bf16 %v2413_v44  ;;  %v2414_v47 = vunpack.i.l.bf16 %v2413_v44 }
  0xb0   :  { %v2561_v49 = vpack.i.bf16 %v213_v19, %v2355_v23 }
  0xb1   :  { %v214_v61 = vsel %vm121_vm5, %v2409_v32, %v2419_v38  ;;  %v215_v35 = vsel %vm121_vm5, %v2419_v38, %v2420_v37  ;;  %v203_v36 = vsel %vm109_vm6, %v2404_v18, %v2414_v47  ;;  %v204_v50 = vsel %vm109_vm6, %v2414_v47, %v2415_v31 }
  0xb2   :  { %v2576_v9 = vpack.i.bf16 %v215_v35, %v214_v61  ;;  %v219_v48 = vpop.permute.xlu1 %218  ;;  %v217_v52 = vpop.permute.xlu0 %216  ;;  %v2571_v54 = vpack.i.bf16 %v204_v50, %v203_v36 }
  0xb3   :  { %293 = vrot.lane.b32.xlu0 %v134_v0, %s3265_s11  ;;  %2517 = vrot.lane.b32.xlu1 %v2516_v57, %s3265_s11  ;;  %v224_v53 = vsel %vm133_vm7, %v217_v52, %v219_v48  ;;  %v483_v0 = vld [vmem:[%s5183_s2 + $0x8] sm:$0xff] }
  0xb6   :  { %v221_v55 = vpop.permute.xlu1 %220  ;;  %v132_v57 = vpop.permute.xlu0 %131 }
  0xb7   :  { %2512 = vrot.lane.b32.xlu0 %v2511_v4, %s3265_s11  ;;  %2527 = vrot.lane.b32.xlu1 %v2526_v6, %s3265_s11  ;;  %v225_v56 = vsel %vm133_vm7, %v219_v48, %v221_v55  ;;  %v136_v59 = vsel %vm133_vm7, %v3452_v3, %v132_v57 }
  0xba   :  { %v223_v58 = vpop.permute.xlu0 %222  ;;  %v3578_v3 = vpop.permute.xlu1 %2422 }
  0xbb   :  { %2522 = vrot.lane.b32.xlu0 %v2521_v15, %s3265_s11  ;;  %2537 = vrot.lane.b32.xlu1 %v2536_v16, %s3265_s11  ;;  %v226_v63 = vsel %vm133_vm7, %v221_v55, %v223_v58  ;;  %v2425_v12 = vunpack.i.h.bf16 %v3578_v3  ;;  %v2424_v13 = vunpack.i.l.bf16 %v3578_v3 }
  0xbd   :  { %v301_v18 = vsel %vm299_vm8, %v2424_v13, %v2425_v12 }
  0xbe   :  { %v3580_v2 = vpop.permute.xlu1 %2427  ;;  %v3582_v6 = vpop.permute.xlu0 %2432 }
  0xbf   :  { %2532 = vrot.lane.b32.xlu0 %v2531_v27, %s3265_s11  ;;  %2547 = vrot.lane.b32.xlu1 %v2546_v21, %s3265_s11 }
  0xc3   :  { %2542 = vrot.lane.b32.xlu0 %v2541_v39, %s3265_s11  ;;  %2557 = vrot.lane.b32.xlu1 %v2556_v40, %s3265_s11 }
  0xc7   :  { %2552 = vrot.lane.b32.xlu0 %v2551_v45, %s3265_s11  ;;  %2567 = vrot.lane.b32.xlu1 %v2566_v46, %s3265_s11 }
  0xcb   :  { %2562 = vrot.lane.b32.xlu0 %v2561_v49, %s3265_s11  ;;  %2577 = vrot.lane.b32.xlu1 %v2576_v9, %s3265_s11 }
  0xcf   :  { %2572 = vrot.lane.b32.xlu0 %v2571_v54, %s3265_s11  ;;  %420 = vrot.lane.b32.xlu1 %v224_v53, %s3265_s11  ;;  %v2430_v53 = vunpack.i.h.bf16 %v3580_v2 }
  0xd3   :  { %418 = vrot.lane.b32.xlu0 %v217_v52, %s3265_s11  ;;  %422 = vrot.lane.b32.xlu1 %v225_v56, %s3265_s11 }
  0xd7   :  { %297 = vrot.lane.b32.xlu0 %v136_v59, %s3265_s11  ;;  %486 = vperm.xlu1 %2581, %v482_v62  }
  0xdb   :  { %424 = vrot.lane.b32.xlu0 %v226_v63, %s3265_s11  ;;  %v2429_v63 = vunpack.i.l.bf16 %v3580_v2 }
  0xdf   :  { %491 = vperm.xlu0 %2582, %v483_v0   ;;  %v2435_v0 = vunpack.i.h.bf16 %v3582_v6 }
  0xfd   :  { %v2438_v4 = vpop.permute.xlu1 %2437 }
  0xfe   :  { %v2439_v35 = vunpack.i.l.bf16 %v2438_v4  ;;  %v2440_v31 = vunpack.i.h.bf16 %v2438_v4 }
 0x101   :  { %v3584_v7 = vpop.permute.xlu1 %2447 }
 0x102   :  { %v2450_v4 = vunpack.i.h.bf16 %v3584_v7 }
 0x105   :  { %v3586_v8 = vpop.permute.xlu0 %2442 }
 0x106   :  { %v2445_v58 = vunpack.i.h.bf16 %v3586_v8  ;;  %v2444_v59 = vunpack.i.l.bf16 %v3586_v8 }
 0x109   :  { %v3588_v10 = vpop.permute.xlu0 %2452  ;;  %v3590_v11 = vpop.permute.xlu1 %291 }
 0x10d   :  { %v3594_v51 = vpop.permute.xlu0 %2457  ;;  %v2463_v1 = vpop.permute.xlu1 %2462 }
 0x10e   :  { %v2460_v14 = vunpack.i.h.bf16 %v3594_v51  ;;  %v2459_v15 = vunpack.i.l.bf16 %v3594_v51  ;;  %v2465_v16 = vunpack.i.h.bf16 %v2463_v1  ;;  %v2464_v17 = vunpack.i.l.bf16 %v2463_v1 }
 0x110   :  { %v304_v20 = vsel %vm299_vm8, %v2459_v15, %v2460_v14  ;;  %v300_v21 = vsel %vm299_vm8, %v2464_v17, %v2424_v13  ;;  %v303_v22 = vsel %vm299_vm8, %v2465_v16, %v2459_v15  ;;  %v2449_v13 = vunpack.i.l.bf16 %v3584_v7 }
 0x111   :  { %v3606_v24 = vpop.permute.xlu0 %2467  ;;  %v3608_v26 = vpop.permute.xlu1 %2472  ;;  %v2119_v27 = vpack.c.bf16 %v304_v20, %v301_v18  ;;  %v2121_v28 = vpack.c.bf16 %v303_v22, %v300_v21  ;;  %v2434_v16 = vunpack.i.l.bf16 %v3582_v6  ;;  %v305_v21 = vsel %vm299_vm8, %v2460_v14, %v2450_v4 }
 0x112   :  { %v2470_v29 = vunpack.i.h.bf16 %v3606_v24  ;;  %v2469_v30 = vunpack.i.l.bf16 %v3606_v24  ;;  %v2475_v33 = vunpack.i.h.bf16 %v3608_v26  ;;  %v2474_v34 = vunpack.i.l.bf16 %v3608_v26 }
 0x113   :  { %2120 = vmatprep.subr.bf16.mxu0 %v2119_v27  ;;  %v302_v6 = vsel %vm299_vm8, %v2425_v12, %v2449_v13  ;;  %v3682_v12 = vld [vmem:[%s5184_s1] sm:$0xff] }
 0x114   :  { %2122 = vmatpush1.bf16.msra.mxu0 %v2121_v28  ;;  %v307_v37 = vsel %vm299_vm8, %v2469_v30, %v2470_v29  ;;  %v310_v38 = vsel %vm299_vm8, %v2474_v34, %v2475_v33 }
 0x115   :  { %v2478_v39 = vpop.permute.xlu0 %2477  ;;  %v3620_v40 = vpop.permute.xlu1 %2482  ;;  %v2123_v41 = vpack.c.bf16 %v310_v38, %v307_v37 }
 0x116   :  { %v2480_v32 = vunpack.i.h.bf16 %v2478_v39  ;;  %v2479_v42 = vunpack.i.l.bf16 %v2478_v39  ;;  %v2485_v25 = vunpack.i.h.bf16 %v3620_v40  ;;  %v2484_v5 = vunpack.i.l.bf16 %v3620_v40 }
 0x117   :  { %2124 = vmatprep.subr.bf16.mxu0 %v2123_v41 }
 0x118   :  { %v306_v23 = vsel %vm299_vm8, %v2479_v42, %v2469_v30  ;;  %v309_v61 = vsel %vm299_vm8, %v2480_v32, %v2474_v34  ;;  %v313_v9 = vsel %vm299_vm8, %v2484_v5, %v2485_v25  ;;  %v312_v48 = vsel %vm299_vm8, %v2439_v35, %v2484_v5 }
 0x119   :  { %v3626_v44 = vpop.permute.xlu0 %2487  ;;  %v3628_v45 = vpop.permute.xlu1 %2497  ;;  %v2125_v46 = vpack.c.bf16 %v309_v61, %v306_v23  ;;  %v426_v34 = vsel %vm299_vm8, %v2429_v63, %v2430_v53  ;;  %v2137_v32 = vpack.c.bf16 %v305_v21, %v302_v6  ;;  %v428_v42 = vsel %vm299_vm8, %v2434_v16, %v2435_v0 }
 0x11a   :  { %v2490_v47 = vunpack.i.h.bf16 %v3626_v44  ;;  %v2489_v19 = vunpack.i.l.bf16 %v3626_v44  ;;  %v2500_v49 = vunpack.i.h.bf16 %v3628_v45  ;;  %v2499_v36 = vunpack.i.l.bf16 %v3628_v45 }
 0x11b   :  { %2126 = vmatpush1.bf16.msra.mxu0 %v2125_v46  ;;  %v427_v35 = vsel %vm299_vm8, %v2430_v53, %v2434_v16  ;;  %v2455_v46 = vunpack.i.h.bf16 %v3588_v10 }
 0x11c   :  { %v316_v50 = vsel %vm299_vm8, %v2489_v19, %v2490_v47  ;;  %v315_v52 = vsel %vm299_vm8, %v2440_v31, %v2489_v19  ;;  %v322_v8 = vsel %vm299_vm8, %v2499_v36, %v2500_v49  ;;  %v321_v2 = vsel %vm299_vm8, %v2445_v58, %v2499_v36  ;;  %v3700_v58 = vld [vmem:[%s5184_s1 + $0x8] sm:$0xff] }
 0x11d   :  { %v3643_v54 = vpop.permute.xlu0 %2492  ;;  %v3645_v55 = vpop.permute.xlu1 %295  ;;  %v2127_v56 = vpack.c.bf16 %v316_v50, %v313_v9  ;;  %v2129_v57 = vpack.c.bf16 %v315_v52, %v312_v48  ;;  %v2454_v31 = vunpack.i.l.bf16 %v3588_v10  ;;  %v311_v10 = vsel %vm299_vm8, %v2475_v33, %v2455_v46 }
 0x11e   :  { %v2495_v60 = vunpack.i.h.bf16 %v3643_v54  ;;  %v2494_v62 = vunpack.i.l.bf16 %v3643_v54 }
 0x11f   :  { %2128 = vmatprep.subr.bf16.mxu0 %v2127_v56  ;;  %v308_v50 = vsel %vm299_vm8, %v2470_v29, %v2454_v31 }
 0x120   :  { %2130 = vmatpush1.bf16.msra.mxu0 %v2129_v57  ;;  %v319_v1 = vsel %vm299_vm8, %v2494_v62, %v2495_v60  ;;  %v318_v15 = vsel %vm299_vm8, %v2444_v59, %v2494_v62  ;;  %v2141_v26 = vpack.c.bf16 %v311_v10, %v308_v50 }
 0x121   :  { %v2503_v17 = vpop.permute.xlu0 %2502  ;;  %v2508_v18 = vpop.permute.xlu1 %2507  ;;  %v2131_v20 = vpack.c.bf16 %v322_v8, %v319_v1  ;;  %v2133_v7 = vpack.c.bf16 %v321_v2, %v318_v15 }
 0x122   :  { %v2505_v22 = vunpack.i.h.bf16 %v2503_v17  ;;  %v2504_v27 = vunpack.i.l.bf16 %v2503_v17  ;;  %v2510_v28 = vunpack.i.h.bf16 %v2508_v18  ;;  %v2509_v30 = vunpack.i.l.bf16 %v2508_v18 }
 0x123   :  { %2132 = vmatprep.subr.bf16.mxu0 %v2131_v20 }
 0x124   :  { %2134 = vmatpush1.bf16.msra.mxu0 %v2133_v7  ;;  %v429_v37 = vsel %vm299_vm8, %v2504_v27, %v2505_v22  ;;  %v431_v38 = vsel %vm299_vm8, %v2509_v30, %v2510_v28  ;;  %v430_v51 = vsel %vm299_vm8, %v2505_v22, %v2509_v30 }
 0x125   :  { %v294_v14 = vpop.permute.xlu0 %293  ;;  %v2518_v39 = vpop.permute.xlu1 %2517  ;;  %v2135_v41 = vpack.c.bf16 %v429_v37, %v426_v34  ;;  %v2151_v19 = vpack.c.bf16 %v431_v38, %v428_v42  ;;  %v2153_v9 = vpack.c.bf16 %v430_v51, %v427_v35 }
 0x126   :  { %v2520_v5 = vunpack.i.h.bf16 %v2518_v39  ;;  %v2519_v23 = vunpack.i.l.bf16 %v2518_v39  ;;  %v325_v61 = vsel %vm299_vm8, %v294_v14, %v3645_v55  ;;  %v324_v3 = vsel %vm299_vm8, %v3590_v11, %v294_v14 }
 0x127   :  { %517 = vmatprep.subr.mxu0 %v325_v61  ;;  %2136 = vmatprep.subr.bf16.mxu1 %v2135_v41 }
 0x128   :  { %518 = vmatpush1.msra.mxu0 %v324_v3  ;;  %2138 = vmatpush1.bf16.msra.mxu1 %v2137_v32  ;;  %v435_v11 = vsel %vm299_vm8, %v2519_v23, %v2520_v5 }
 0x129   :  { %v2513_v48 = vpop.permute.xlu0 %2512  ;;  %v2528_v36 = vpop.permute.xlu1 %2527  ;;  %2152 = vmatprep.subr.bf16.mxu0 %v2151_v19  ;;  %2104 = vmatmul.mubr.msk.f32.vlgmr.msra.gmra.mrb[0].mxu0 %vm494_vm9, %v3682_v12 }
 0x12a   :  { %v2515_v52 = vunpack.i.h.bf16 %v2513_v48  ;;  %v2514_v53 = vunpack.i.l.bf16 %v2513_v48  ;;  %v2530_v56 = vunpack.i.h.bf16 %v2528_v36  ;;  %v2529_v57 = vunpack.i.l.bf16 %v2528_v36  ;;  %2154 = vmatpush1.bf16.msra.mxu0 %v2153_v9  ;;  %571 = vmatprep.mubr.f32.mxu0 %v3266_v43 }
 0x12c   :  { %v432_v24 = vsel %vm299_vm8, %v2514_v53, %v2515_v52  ;;  %v436_v33 = vsel %vm299_vm8, %v2520_v5, %v2529_v57  ;;  %v437_v4 = vsel %vm299_vm8, %v2529_v57, %v2530_v56 }
 0x12d   :  { %v2523_v59 = vpop.permute.xlu0 %2522  ;;  %v2538_v29 = vpop.permute.xlu1 %2537  ;;  %v2139_v62 = vpack.c.bf16 %v435_v11, %v432_v24  ;;  %2105 = vmatmul.mubr.msk.f32.gmra.mrb[2].mxu0 %vm494_vm9, %v3700_v58 }
 0x12e   :  { %v2525_v63 = vunpack.i.h.bf16 %v2523_v59  ;;  %v2524_v0 = vunpack.i.l.bf16 %v2523_v59  ;;  %719 = vmatprep.mubr.f32.mxu0 %v3266_v43  ;;  %v2540_v1 = vunpack.i.h.bf16 %v2538_v29  ;;  %v2539_v8 = vunpack.i.l.bf16 %v2538_v29 }
 0x12f   :  { %2140 = vmatprep.subr.bf16.mxu1 %v2139_v62 }
 0x130   :  { %v433_v13 = vsel %vm299_vm8, %v2515_v52, %v2524_v0  ;;  %2142 = vmatpush1.bf16.msra.mxu1 %v2141_v26  ;;  %v434_v15 = vsel %vm299_vm8, %v2524_v0, %v2525_v63  ;;  %v441_v22 = vsel %vm299_vm8, %v2539_v8, %v2540_v1 }
 0x131   :  { %v2533_v2 = vpop.permute.xlu0 %2532  ;;  %v2548_v16 = vpop.permute.xlu1 %2547  ;;  %v2155_v17 = vpack.c.bf16 %v437_v4, %v434_v15  ;;  %v2157_v18 = vpack.c.bf16 %v436_v33, %v433_v13 }
 0x132   :  { %v2535_v20 = vunpack.i.h.bf16 %v2533_v2  ;;  %v2534_v7 = vunpack.i.l.bf16 %v2533_v2  ;;  %v2550_v6 = vunpack.i.h.bf16 %v2548_v16  ;;  %v2549_v38 = vunpack.i.l.bf16 %v2548_v16 }
 0x133   :  { %2156 = vmatprep.subr.bf16.mxu0 %v2155_v17 }
 0x134   :  { %2158 = vmatpush1.bf16.msra.mxu0 %v2157_v18  ;;  %v438_v21 = vsel %vm299_vm8, %v2534_v7, %v2535_v20  ;;  %v439_v23 = vsel %vm299_vm8, %v2535_v20, %v2549_v38  ;;  %v440_v35 = vsel %vm299_vm8, %v2549_v38, %v2550_v6  ;;  %v734_v7 = vlaneseq }
 0x135   :  { %v2543_v27 = vpop.permute.xlu0 %2542  ;;  %v2558_v28 = vpop.permute.xlu1 %2557  ;;  %v2143_v30 = vpack.c.bf16 %v441_v22, %v438_v21 }
 0x136   :  { %v2545_v34 = vunpack.i.h.bf16 %v2543_v27  ;;  %v2544_v37 = vunpack.i.l.bf16 %v2543_v27  ;;  %v2560_v46 = vunpack.i.h.bf16 %v2558_v28  ;;  %v2559_v40 = vunpack.i.l.bf16 %v2558_v28  ;;  %v732_v27 = vld [vmem:[%s5185_s7] sm:$0x3f] }
 0x137   :  { %2144 = vmatprep.subr.bf16.mxu1 %v2143_v30  ;;  %v735_v21 = vshrl.u32 %v734_v7, 7 }
 0x138   :  { %v314_v51 = vsel %vm299_vm8, %v2485_v25, %v2544_v37  ;;  %v317_v14 = vsel %vm299_vm8, %v2490_v47, %v2545_v34  ;;  %v444_v53 = vsel %vm299_vm8, %v2559_v40, %v2560_v46 }
 0x139   :  { %v2553_v39 = vpop.permute.xlu0 %2552  ;;  %v2568_v41 = vpop.permute.xlu1 %2567  ;;  %v2145_v32 = vpack.c.bf16 %v317_v14, %v314_v51  ;;  %v736_v22 = vsub.s32 0, %v735_v21  ;;  %v740_v28 = vsub.s32 1, %v735_v21  ;;  %v744_v38 = vsub.s32 2, %v735_v21 }
 0x13a   :  { %v2555_v42 = vunpack.i.h.bf16 %v2553_v39  ;;  %v2554_v5 = vunpack.i.l.bf16 %v2553_v39  ;;  %v2570_v61 = vunpack.i.h.bf16 %v2568_v41  ;;  %v2569_v3 = vunpack.i.l.bf16 %v2568_v41 }
 0x13b   :  { %2146 = vmatpush1.bf16.msra.mxu1 %v2145_v32  ;;  %v3752_v34 = vrot.slane %v732_v27, %v736_v22  ;;  %v748_v51 = vsub.s32 3, %v735_v21 }
 0x13c   :  { %v442_v25 = vsel %vm299_vm8, %v2540_v1, %v2554_v5  ;;  %v443_v44 = vsel %vm299_vm8, %v2554_v5, %v2555_v42  ;;  %v320_v11 = vsel %vm299_vm8, %v2495_v60, %v2569_v3  ;;  %v323_v50 = vsel %vm299_vm8, %v2500_v49, %v2570_v61 }
 0x13d   :  { %v2563_v31 = vpop.permute.xlu0 %2562  ;;  %v2578_v47 = vpop.permute.xlu1 %2577  ;;  %v2159_v19 = vpack.c.bf16 %v443_v44, %v440_v35  ;;  %v2161_v9 = vpack.c.bf16 %v442_v25, %v439_v23  ;;  %v2149_v62 = vpack.c.bf16 %v323_v50, %v320_v11  ;;  %v3768_v42 = vrot.slane %v732_v27, %v744_v38 }
 0x13e   :  { %v2565_v48 = vunpack.i.h.bf16 %v2563_v31  ;;  %v2564_v36 = vunpack.i.l.bf16 %v2563_v31  ;;  %v2580_v10 = vunpack.i.h.bf16 %v2578_v47  ;;  %v2579_v52 = vunpack.i.l.bf16 %v2578_v47 }
 0x13f   :  { %2160 = vmatprep.subr.bf16.mxu0 %v2159_v19  ;;  %v3770_v23 = vrot.slane %v732_v27, %v748_v51  ;;  %v752_v61 = vsub.s32 4, %v735_v21  ;;  %v756_v25 = vsub.s32 5, %v735_v21 }
 0x140   :  { %2162 = vmatpush1.bf16.msra.mxu0 %v2161_v9  ;;  %v447_v56 = vsel %vm299_vm8, %v2564_v36, %v2565_v48  ;;  %v448_v54 = vsel %vm299_vm8, %v2565_v48, %v2579_v52  ;;  %v449_v49 = vsel %vm299_vm8, %v2579_v52, %v2580_v10 }
 0x141   :  { %v2573_v57 = vpop.permute.xlu0 %2572  ;;  %v2147_v24 = vpack.c.bf16 %v447_v56, %v444_v53  ;;  %v421_v26 = vpop.permute.xlu1 %420  ;;  %v3784_v48 = vrot.slane %v732_v27, %v752_v61  ;;  %v3788_v53 = vrot.slane %v732_v27, %v756_v25 }
 0x142   :  { %v2575_v59 = vunpack.i.h.bf16 %v2573_v57  ;;  %v2574_v29 = vunpack.i.l.bf16 %v2573_v57 }
 0x143   :  { %2148 = vmatprep.subr.bf16.mxu1 %v2147_v24 }
 0x144   :  { %v445_v60 = vsel %vm299_vm8, %v2560_v46, %v2574_v29  ;;  %2150 = vmatpush1.bf16.msra.mxu1 %v2149_v62  ;;  %v446_v45 = vsel %vm299_vm8, %v2574_v29, %v2575_v59 }
 0x145   :  { %v419_v33 = vpop.permute.xlu0 %418  ;;  %v2163_v63 = vpack.c.bf16 %v449_v49, %v446_v45  ;;  %v2165_v0 = vpack.c.bf16 %v448_v54, %v445_v60  ;;  %v423_v8 = vpop.permute.xlu1 %422 }
 0x146   :  { %v450_v4 = vsel %vm299_vm8, %v419_v33, %v421_v26  ;;  %v451_v16 = vsel %vm299_vm8, %v421_v26, %v423_v8 }
 0x147   :  { %594 = vmatprep.subr.mxu1 %v450_v4  ;;  %2164 = vmatprep.subr.bf16.mxu0 %v2163_v63 }
 0x148   :  { %2166 = vmatpush1.bf16.msra.mxu0 %v2165_v0 }
 0x149   :  { %v298_v13 = vpop.permute.xlu0 %297 }
 0x14a   :  { %v326_v1 = vsel %vm299_vm8, %v3645_v55, %v298_v13 }
 0x14b   :  { %595 = vmatpush1.msra.mxu1 %v326_v1 }
 0x14c   :  { %2106 = vmatmul.mubr.msk.f32.vlgmr.msra.gmra.mrb[0].mxu1 %vm494_vm9, %v3682_v12 }
 0x14d   :  { %v425_v15 = vpop.permute.xlu0 %424  ;;  %648 = vmatprep.mubr.f32.mxu1 %v3266_v43 }
 0x14e   :  { %v452_v2 = vsel %vm299_vm8, %v423_v8, %v425_v15 }
 0x14f   :  { %671 = vmatprep.subr.mxu0 %v452_v2 }
 0x150   :  { %2107 = vmatmul.mubr.msk.f32.gmra.mrb[2].mxu1 %vm494_vm9, %v3700_v58  ;;  %672 = vmatpush1.msra.mxu0 %v451_v16 }
 0x151   :  { %2108 = vmatmul.mubr.msk.f32.vlgmr.msra.gmra.mrb[4].mxu0 %vm494_vm9, %v3682_v12 }
 0x152   :  { %725 = vmatprep.mubr.f32.mxu0 %v3266_v43 }
 0x155   :  { %2109 = vmatmul.mubr.msk.f32.gmra.mrb[6].mxu0 %vm494_vm9, %v3700_v58  ;;  %v3758_v58 = vrot.slane %v732_v27, %v740_v28 }
 0x156   :  { %v487_v30 = vpop.permute.xlu1 %486 }
 0x15e   :  { %v492_v12 = vpop.permute.xlu0 %491 }
 0x1fc   :  { %v567_v55 = vpop.f32.mrb[0].mxu0 }
 0x1fd   :  { %v569_v17 = vpop.f32.mrb[1].mxu0  ;;  %v3754_v37 = vadd.f32 %v567_v55, %v487_v30 }
 0x1fe   :  { %v3756_v6 = vadd.f32 %v569_v17, %v487_v30 }
 0x1ff   :  { %v764_v41 = vmul.f32 %v3752_v34, %v3754_v37 }
 0x200   :  { %v573_v18 = vpop.f32.mrb[2].mxu0  ;;  %v765_v32 = vmul.f32 %v3758_v58, %v3756_v6 }
 0x201   :  { %v575_v20 = vpop.f32.mrb[3].mxu0  ;;  %v3760_v14 = vadd.f32 %v573_v18, %v492_v12 }
 0x202   :  { %v3762_v39 = vadd.f32 %v575_v20, %v492_v12  ;;  %v776_v31 = vadd.f32 %v765_v32, %v764_v41 }
 0x203   :  { %v770_v35 = vmul.f32 %v3752_v34, %v3760_v14 }
 0x204   :  { %v771_v46 = vmul.f32 %v3758_v58, %v3762_v39 }
 0x206   :  { %v783_v11 = vadd.f32 %v771_v46, %v770_v35 }
 0x21f   :  { %v644_v5 = vpop.f32.mrb[0].mxu1 }
 0x220   :  { %v3772_v3 = vadd.f32 %v644_v5, %v487_v30  ;;  %v646_v40 = vpop.f32.mrb[1].mxu1 }
 0x221   :  { %v3778_v44 = vadd.f32 %v646_v40, %v487_v30 }
 0x222   :  { %v766_v47 = vmul.f32 %v3768_v42, %v3772_v3 }
 0x223   :  { %v767_v19 = vmul.f32 %v3770_v23, %v3778_v44  ;;  %v650_v9 = vpop.f32.mrb[2].mxu1 }
 0x224   :  { %v777_v36 = vadd.f32 %v776_v31, %v766_v47  ;;  %v3786_v50 = vadd.f32 %v650_v9, %v492_v12  ;;  %v721_v10 = vpop.f32.mrb[4].mxu0  ;;  %v652_v52 = vpop.f32.mrb[3].mxu1 }
 0x225   :  { %v3790_v56 = vadd.f32 %v721_v10, %v487_v30  ;;  %v3792_v57 = vadd.f32 %v652_v52, %v492_v12  ;;  %v723_v24 = vpop.f32.mrb[5].mxu0 }
 0x226   :  { %v772_v59 = vmul.f32 %v3768_v42, %v3786_v50  ;;  %v3796_v29 = vadd.f32 %v723_v24, %v487_v30  ;;  %v778_v62 = vadd.f32 %v777_v36, %v767_v19 }
 0x227   :  { %v768_v54 = vmul.f32 %v3784_v48, %v3790_v56  ;;  %v773_v60 = vmul.f32 %v3770_v23, %v3792_v57 }
 0x228   :  { %v784_v45 = vadd.f32 %v783_v11, %v772_v59  ;;  %v727_v49 = vpop.f32.mrb[6].mxu0  ;;  %v769_v26 = vmul.f32 %v3788_v53, %v3796_v29 }
 0x229   :  { %v3804_v33 = vadd.f32 %v727_v49, %v492_v12  ;;  %v729_v63 = vpop.f32.mrb[7].mxu0  ;;  %v779_v0 = vadd.f32 %v778_v62, %v768_v54 }
 0x22a   :  { %v3806_v4 = vadd.f32 %v729_v63, %v492_v12  ;;  %v785_v13 = vadd.f32 %v784_v45, %v773_v60 }
 0x22b   :  { %v774_v1 = vmul.f32 %v3784_v48, %v3804_v33  ;;  %v780_v8 = vadd.f32 %v779_v0, %v769_v26 }
 0x22c   :  { %v775_v15 = vmul.f32 %v3788_v53, %v3806_v4 }
 0x22d   :  { %781 = vadd.xlane.f32.xlu1 %v780_v8  ;;  %v786_v2 = vadd.f32 %v785_v13, %v774_v1 }
 0x22f   :  { %v787_v16 = vadd.f32 %v786_v2, %v775_v15 }
 0x231   :  { %788 = vadd.xlane.f32.xlu0 %v787_v16 }
 0x247   :  { %2584 = vrot.lane.b32.xlu0 %v3266_v43, %s3265_s11 }
 0x2ba   :  { %v782_v55 = vpop.xlane.xlu1 %781 }
 0x2bb   :  { %v3814_v17 = vmul.f32 0.001953125, %v782_v55 }
 0x2bd   :  { %v792_v18 = vsub.f32 %v3754_v37, %v3814_v17  ;;  %v793_v20 = vsub.f32 %v3756_v6, %v3814_v17  ;;  %v794_v7 = vsub.f32 %v3772_v3, %v3814_v17  ;;  %v795_v21 = vsub.f32 %v3778_v44, %v3814_v17 }
 0x2be   :  { %v789_v22 = vpop.xlane.xlu0 %788  ;;  %v796_v27 = vsub.f32 %v3790_v56, %v3814_v17  ;;  %v797_v51 = vsub.f32 %v3796_v29, %v3814_v17 }
 0x2bf   :  { %v3826_v28 = vmul.f32 0.001953125, %v789_v22  ;;  %v804_v30 = vmul.f32 %v792_v18, %v3752_v34  ;;  %v805_v12 = vmul.f32 %v793_v20, %v3758_v58  ;;  %v806_v38 = vmul.f32 %v794_v7, %v3768_v42 }
 0x2c0   :  { %v807_v41 = vmul.f32 %v795_v21, %v3770_v23  ;;  %v808_v35 = vmul.f32 %v796_v27, %v3784_v48  ;;  %v809_v11 = vmul.f32 %v797_v51, %v3788_v53 }
 0x2c1   :  { %v816_v32 = vmul.f32 %v804_v30, %v804_v30  ;;  %v817_v5 = vmul.f32 %v805_v12, %v805_v12  ;;  %v798_v61 = vsub.f32 %v3760_v14, %v3826_v28  ;;  %v799_v46 = vsub.f32 %v3762_v39, %v3826_v28 }
 0x2c2   :  { %v818_v40 = vmul.f32 %v806_v38, %v806_v38  ;;  %v800_v31 = vsub.f32 %v3786_v50, %v3826_v28  ;;  %v801_v47 = vsub.f32 %v3792_v57, %v3826_v28  ;;  %v802_v19 = vsub.f32 %v3804_v33, %v3826_v28  ;;  %v3854_v22 = vpop.permute.xlu0 %2584 }
 0x2c3   :  { %v828_v25 = vadd.f32 %v817_v5, %v816_v32  ;;  %v810_v9 = vmul.f32 %v798_v61, %v3752_v34  ;;  %v811_v36 = vmul.f32 %v799_v46, %v3758_v58  ;;  %v819_v10 = vmul.f32 %v807_v41, %v807_v41  ;;  %v844_v32 = vld [vmem:[%s5186_s3] sm:$0xff]  ;;  %v845_v46 = vld [vmem:[%s5186_s3 + $0x8] sm:$0xff] }
 0x2c4   :  { %v812_v24 = vmul.f32 %v800_v31, %v3768_v42  ;;  %v803_v59 = vsub.f32 %v3806_v4, %v3826_v28  ;;  %v813_v62 = vmul.f32 %v801_v47, %v3770_v23  ;;  %v820_v45 = vmul.f32 %v808_v35, %v808_v35  ;;  %v852_v35 = vld [vmem:[%s5187_s4] sm:$0xff] }
 0x2c5   :  { %v829_v52 = vadd.f32 %v828_v25, %v818_v40  ;;  %v822_v54 = vmul.f32 %v810_v9, %v810_v9  ;;  %v823_v60 = vmul.f32 %v811_v36, %v811_v36  ;;  %v814_v26 = vmul.f32 %v802_v19, %v3784_v48  ;;  %v853_v19 = vld [vmem:[%s5187_s4 + $0x8] sm:$0xff] }
 0x2c6   :  { %v824_v63 = vmul.f32 %v812_v24, %v812_v24  ;;  %v821_v13 = vmul.f32 %v809_v11, %v809_v11  ;;  %v815_v8 = vmul.f32 %v803_v59, %v3788_v53  ;;  %v825_v15 = vmul.f32 %v813_v62, %v813_v62 }
 0x2c7   :  { %v830_v49 = vadd.f32 %v829_v52, %v819_v10  ;;  %v835_v0 = vadd.f32 %v823_v60, %v822_v54  ;;  %v826_v55 = vmul.f32 %v814_v26, %v814_v26 }
 0x2c8   :  { %v827_v20 = vmul.f32 %v815_v8, %v815_v8 }
 0x2c9   :  { %v831_v1 = vadd.f32 %v830_v49, %v820_v45  ;;  %v836_v2 = vadd.f32 %v835_v0, %v824_v63 }
 0x2cb   :  { %v832_v16 = vadd.f32 %v831_v1, %v821_v13  ;;  %v837_v18 = vadd.f32 %v836_v2, %v825_v15 }
 0x2cd   :  { %833 = vadd.xlane.f32.xlu1 %v832_v16  ;;  %v838_v7 = vadd.f32 %v837_v18, %v826_v55 }
 0x2cf   :  { %v839_v21 = vadd.f32 %v838_v7, %v827_v20 }
 0x2d1   :  { %840 = vadd.xlane.f32.xlu0 %v839_v21 }
 0x35a   :  { %v834_v27 = vpop.xlane.xlu1 %833 }
 0x35b   :  { %v842_v30 = vmul.f32 0.001953125, %v834_v27 }
 0x35d   :  { %v846_v12 = vadd.f32 1e-05, %v842_v30 }
 0x35e   :  { %v841_v38 = vpop.xlane.xlu0 %840 }
 0x35f   :  { %3253 = vrsqrt.f32 %v846_v12  ;;  %v843_v51 = vmul.f32 0.001953125, %v841_v38 }
 0x361   :  { %v847_v41 = vadd.f32 1e-05, %v843_v51 }
 0x363   :  { %3255 = vrsqrt.f32 %v847_v41 }
 0x369   :  { %v3254_v5 = vpop.eup %3253 }
 0x36a   :  { %v850_v61 = vmul.f32 %v3254_v5, %v844_v32 }
 0x36c   :  { %860 = vperm.xlu1 %2581, %v850_v61   ;;  %v854_v40 = vmul.f32 %v850_v61, %v3814_v17 }
 0x36d   :  { %v3256_v25 = vpop.eup %3255 }
 0x36e   :  { %v856_v31 = vsub.f32 %v852_v35, %v854_v40  ;;  %v851_v47 = vmul.f32 %v3256_v25, %v845_v46 }
 0x370   :  { %882 = vperm.xlu1 %2581, %v856_v31   ;;  %865 = vperm.xlu0 %2582, %v851_v47   ;;  %v855_v9 = vmul.f32 %v851_v47, %v3826_v28 }
 0x372   :  { %v857_v36 = vsub.f32 %v853_v19, %v855_v9 }
 0x374   :  { %887 = vperm.xlu1 %2581, %v857_v36  }
 0x3eb   :  { %v861_v11 = vpop.permute.xlu1 %860 }
 0x3ec   :  { %v868_v10 = vmul.f32 %v861_v11, %v3754_v37  ;;  %v869_v52 = vmul.f32 %v861_v11, %v3756_v6  ;;  %v870_v17 = vmul.f32 %v861_v11, %v3772_v3  ;;  %v871_v55 = vmul.f32 %v861_v11, %v3778_v44 }
 0x3ed   :  { %v872_v21 = vmul.f32 %v861_v11, %v3790_v56  ;;  %v873_v27 = vmul.f32 %v861_v11, %v3796_v29 }
 0x3ef   :  { %v883_v24 = vpop.permute.xlu1 %882  ;;  %v3878_v3 = vpop.permute.xlu0 %865 }
 0x3f0   :  { %v890_v59 = vadd.f32 %v883_v24, %v868_v10  ;;  %v891_v62 = vadd.f32 %v883_v24, %v869_v52  ;;  %v892_v54 = vadd.f32 %v883_v24, %v870_v17  ;;  %v876_v15 = vmul.f32 %v3878_v3, %v3786_v50 }
 0x3f1   :  { %v893_v20 = vadd.f32 %v883_v24, %v871_v55  ;;  %v894_v12 = vadd.f32 %v883_v24, %v872_v21  ;;  %v895_v38 = vadd.f32 %v883_v24, %v873_v27  ;;  %v875_v47 = vmul.f32 %v3878_v3, %v3762_v39 }
 0x3f2   :  { %v914_v60 = vmul.f32 0.2, %v890_v59  ;;  %v915_v45 = vmul.f32 0.2, %v891_v62  ;;  %v916_v49 = vmul.f32 0.2, %v892_v54  ;;  %v874_v9 = vmul.f32 %v3878_v3, %v3760_v14 }
 0x3f3   :  { %vm902_vm10 = vcmp.ge.f32.partialorder %v890_v59, 0.0  ;;  %vm903_vm11 = vcmp.ge.f32.partialorder %v891_v62, 0.0  ;;  %vm904_vm12 = vcmp.ge.f32.partialorder %v892_v54, 0.0  ;;  %v3880_v13 = vpop.permute.xlu1 %887  ;;  %v917_v44 = vmul.f32 0.2, %v893_v20 }
 0x3f4   :  { %v926_v28 = vsel %vm902_vm10, %v890_v59, %v914_v60  ;;  %v927_v26 = vsel %vm903_vm11, %v891_v62, %v915_v45  ;;  %v928_v63 = vsel %vm904_vm12, %v892_v54, %v916_v49  ;;  %v898_v2 = vadd.f32 %v3880_v13, %v876_v15 }
 0x3f5   :  { %v938_v0 = vmul.f32 %v926_v28, %v3752_v34  ;;  %v939_v37 = vmul.f32 %v927_v26, %v3758_v58  ;;  %v3876_v6 = vmul.f32 %v928_v63, %v3768_v42  ;;  %vm905_vm14 = vcmp.ge.f32.partialorder %v893_v20, 0.0 }
 0x3f6   :  { %v922_v16 = vmul.f32 0.2, %v898_v2  ;;  %vm910_vm13 = vcmp.ge.f32.partialorder %v898_v2, 0.0  ;;  %v918_v51 = vmul.f32 0.2, %v894_v12  ;;  %v929_v32 = vsel %vm905_vm14, %v893_v20, %v917_v44 }
 0x3f7   :  { %v2593_v1 = vpack.i.bf16 %v3876_v6, %v939_v37  ;;  %v2588_v8 = vpack.i.bf16 %v938_v0, %v3266_v43  ;;  %v2623_v50 = vpack.i.bf16 %v939_v37, %v938_v0  ;;  %v2628_v30 = vpack.i.bf16 %v3266_v43, %v3876_v6 }
 0x3f8   :  { %v934_v18 = vsel %vm910_vm13, %v898_v2, %v922_v16  ;;  %v919_v41 = vmul.f32 0.2, %v895_v38  ;;  %vm906_vm15 = vcmp.ge.f32.partialorder %v894_v12, 0.0  ;;  %vm907_vm9 = vcmp.ge.f32.partialorder %v895_v38, 0.0 }
 0x3f9   :  { %2594 = vrot.lane.b32.xlu1 %v2593_v1, %s3258_s14  ;;  %2589 = vrot.lane.b32.xlu0 %v2588_v8, %s3258_s14  ;;  %v3895_v7 = vmul.f32 %v934_v18, %v3768_v42  ;;  %v941_v56 = vmul.f32 %v929_v32, %v3770_v23  ;;  %v930_v29 = vsel %vm906_vm15, %v894_v12, %v918_v51  ;;  %vm1863_vm15 = vcmask 130048  }
 0x3fa   :  { %v931_v5 = vsel %vm907_vm9, %v895_v38, %v919_v41  ;;  %v942_v61 = vmul.f32 %v930_v29, %v3784_v48  ;;  %v897_v19 = vadd.f32 %v3880_v13, %v875_v47  ;;  %v896_v36 = vadd.f32 %v3880_v13, %v874_v9 }
 0x3fb   :  { %v2928_v42 = vpack.i.bf16 %v3895_v7, %v3876_v6  ;;  %v3914_v35 = vmul.f32 %v931_v5, %v3788_v53  ;;  %v2663_v46 = vpack.i.bf16 %v941_v56, %v3266_v43  ;;  %v878_v60 = vmul.f32 %v3878_v3, %v3804_v33 }
 0x3fc   :  { %v2693_v25 = vpack.i.bf16 %v942_v61, %v941_v56  ;;  %v921_v11 = vmul.f32 0.2, %v897_v19  ;;  %vm909_vm10 = vcmp.ge.f32.partialorder %v897_v19, 0.0  ;;  %v920_v10 = vmul.f32 0.2, %v896_v36 }
 0x3fd   :  { %2604 = vrot.lane.b32.xlu1 %v2593_v1, %s3257_s13  ;;  %2599 = vrot.lane.b32.xlu0 %v2588_v8, %s3257_s13  ;;  %v2668_v40 = vpack.i.bf16 %v3914_v35, %v942_v61  ;;  %v2703_v31 = vpack.i.bf16 %v3266_v43, %v3914_v35  ;;  %vm908_vm11 = vcmp.ge.f32.partialorder %v896_v36, 0.0  ;;  %v879_v45 = vmul.f32 %v3878_v3, %v3806_v4 }
 0x3fe   :  { %v933_v52 = vsel %vm909_vm10, %v897_v19, %v921_v11  ;;  %v932_v17 = vsel %vm908_vm11, %v896_v36, %v920_v10  ;;  %v2798_v49 = vpack.i.bf16 %v3266_v43, %v3895_v7  ;;  %v900_v28 = vadd.f32 %v3880_v13, %v878_v60 }
 0x3ff   :  { %v945_v39 = vmul.f32 %v933_v52, %v3758_v58  ;;  %v944_v14 = vmul.f32 %v932_v17, %v3752_v34  ;;  %v877_v34 = vmul.f32 %v3878_v3, %v3792_v57  ;;  %v901_v57 = vadd.f32 %v3880_v13, %v879_v45 }
 0x400   :  { %v924_v63 = vmul.f32 0.2, %v900_v28  ;;  %vm912_vm13 = vcmp.ge.f32.partialorder %v900_v28, 0.0 }
 0x401   :  { %2614 = vrot.lane.b32.xlu1 %v2593_v1, %s3259_s17  ;;  %2609 = vrot.lane.b32.xlu0 %v2588_v8, %s3259_s17  ;;  %v2758_v24 = vpack.i.bf16 %v3895_v7, %v945_v39  ;;  %v2753_v59 = vpack.i.bf16 %v944_v14, %v3266_v43  ;;  %v2783_v58 = vpack.i.bf16 %v944_v14, %v3876_v6  ;;  %v925_v0 = vmul.f32 0.2, %v901_v57 }
 0x402   :  { %v2793_v62 = vpack.i.bf16 %v945_v39, %v944_v14  ;;  %v899_v54 = vadd.f32 %v3880_v13, %v877_v34  ;;  %vm913_vm14 = vcmp.ge.f32.partialorder %v901_v57, 0.0  ;;  %v936_v4 = vsel %vm912_vm13, %v900_v28, %v924_v63 }
 0x403   :  { %v937_v3 = vsel %vm913_vm14, %v901_v57, %v925_v0  ;;  %v948_v13 = vmul.f32 %v936_v4, %v3784_v48 }
 0x404   :  { %v923_v26 = vmul.f32 0.2, %v899_v54  ;;  %vm911_vm12 = vcmp.ge.f32.partialorder %v899_v54, 0.0  ;;  %v949_v1 = vmul.f32 %v937_v3, %v3788_v53 }
 0x405   :  { %2624 = vrot.lane.b32.xlu1 %v2623_v50, %s3261_s19  ;;  %2619 = vrot.lane.b32.xlu0 %v2623_v50, %s3260_s18 }
 0x406   :  { %v935_v37 = vsel %vm911_vm12, %v899_v54, %v923_v26  ;;  %v2838_v15 = vpack.i.bf16 %v949_v1, %v948_v13 }
 0x407   :  { %v947_v33 = vmul.f32 %v935_v37, %v3770_v23  ;;  %v2878_v23 = vpack.i.bf16 %v3266_v43, %v949_v1 }
 0x409   :  { %2634 = vrot.lane.b32.xlu1 %v2623_v50, %s3262_s20  ;;  %2629 = vrot.lane.b32.xlu0 %v2628_v30, %s3261_s19  ;;  %v2833_v8 = vpack.i.bf16 %v947_v33, %v3266_v43  ;;  %v2863_v48 = vpack.i.bf16 %v947_v33, %v3914_v35  ;;  %v2873_v16 = vpack.i.bf16 %v948_v13, %v947_v33 }
 0x40d   :  { %2644 = vrot.lane.b32.xlu1 %v2623_v50, %s3263_s27  ;;  %2639 = vrot.lane.b32.xlu0 %v2628_v30, %s3262_s20 }
 0x411   :  { %2654 = vrot.lane.b32.xlu1 %v2623_v50, %s3264_s28  ;;  %2649 = vrot.lane.b32.xlu0 %v2628_v30, %s3263_s27 }
 0x415   :  { %2664 = vrot.lane.b32.xlu1 %v2663_v46, %s3258_s14  ;;  %2659 = vrot.lane.b32.xlu0 %v2628_v30, %s3264_s28 }
 0x419   :  { %2674 = vrot.lane.b32.xlu1 %v2663_v46, %s3257_s13  ;;  %2669 = vrot.lane.b32.xlu0 %v2668_v40, %s3258_s14 }
 0x41d   :  { %2684 = vrot.lane.b32.xlu1 %v2663_v46, %s3259_s17  ;;  %2679 = vrot.lane.b32.xlu0 %v2668_v40, %s3257_s13 }
 0x421   :  { %2694 = vrot.lane.b32.xlu1 %v2693_v25, %s3260_s18  ;;  %2689 = vrot.lane.b32.xlu0 %v2668_v40, %s3259_s17 }
 0x425   :  { %2704 = vrot.lane.b32.xlu1 %v2703_v31, %s3261_s19  ;;  %2699 = vrot.lane.b32.xlu0 %v2693_v25, %s3261_s19 }
 0x429   :  { %2719 = vrot.lane.b32.xlu1 %v2703_v31, %s3262_s20  ;;  %2709 = vrot.lane.b32.xlu0 %v2623_v50, %s3265_s11 }
 0x42d   :  { %2724 = vrot.lane.b32.xlu1 %v2693_v25, %s3263_s27  ;;  %2714 = vrot.lane.b32.xlu0 %v2693_v25, %s3262_s20 }
 0x431   :  { %2739 = vrot.lane.b32.xlu1 %v2703_v31, %s3264_s28  ;;  %2729 = vrot.lane.b32.xlu0 %v2703_v31, %s3263_s27 }
 0x435   :  { %2744 = vrot.lane.b32.xlu1 %v2663_v46, %s3265_s11  ;;  %2734 = vrot.lane.b32.xlu0 %v2693_v25, %s3264_s28 }
 0x439   :  { %2749 = vrot.lane.b32.xlu0 %v2668_v40, %s3265_s11  ;;  %2759 = vrot.lane.b32.xlu1 %v2758_v24, %s3258_s14 }
 0x43d   :  { %2769 = vrot.lane.b32.xlu1 %v2758_v24, %s3257_s13  ;;  %2754 = vrot.lane.b32.xlu0 %v2753_v59, %s3258_s14 }
 0x441   :  { %2779 = vrot.lane.b32.xlu1 %v2758_v24, %s3259_s17  ;;  %2764 = vrot.lane.b32.xlu0 %v2753_v59, %s3257_s13 }
 0x445   :  { %2784 = vrot.lane.b32.xlu1 %v2783_v58, %s3260_s18  ;;  %2774 = vrot.lane.b32.xlu0 %v2753_v59, %s3259_s17 }
 0x449   :  { %2794 = vrot.lane.b32.xlu1 %v2793_v62, %s3261_s19  ;;  %2789 = vrot.lane.b32.xlu0 %v2758_v24, %s3260_s18 }
 0x44d   :  { %2804 = vrot.lane.b32.xlu1 %v2793_v62, %s3262_s20  ;;  %2799 = vrot.lane.b32.xlu0 %v2798_v49, %s3261_s19 }
 0x451   :  { %2814 = vrot.lane.b32.xlu1 %v2793_v62, %s3263_s27  ;;  %2809 = vrot.lane.b32.xlu0 %v2798_v49, %s3262_s20 }
 0x455   :  { %2824 = vrot.lane.b32.xlu1 %v2793_v62, %s3264_s28  ;;  %2819 = vrot.lane.b32.xlu0 %v2798_v49, %s3263_s27 }
 0x459   :  { %2834 = vrot.lane.b32.xlu1 %v2833_v8, %s3258_s14  ;;  %2829 = vrot.lane.b32.xlu0 %v2798_v49, %s3264_s28 }
 0x45d   :  { %2844 = vrot.lane.b32.xlu1 %v2833_v8, %s3257_s13  ;;  %2839 = vrot.lane.b32.xlu0 %v2838_v15, %s3258_s14 }
 0x461   :  { %2854 = vrot.lane.b32.xlu1 %v2833_v8, %s3259_s17  ;;  %2849 = vrot.lane.b32.xlu0 %v2838_v15, %s3257_s13 }
 0x465   :  { %2869 = vrot.lane.b32.xlu1 %v2838_v15, %s3260_s18  ;;  %2859 = vrot.lane.b32.xlu0 %v2838_v15, %s3259_s17 }
 0x469   :  { %2879 = vrot.lane.b32.xlu1 %v2878_v23, %s3261_s19  ;;  %2864 = vrot.lane.b32.xlu0 %v2863_v48, %s3260_s18 }
 0x46b   :  { %v3992_v53 = vpop.permute.xlu0 %2589  ;;  %v3994_v2 = vpop.permute.xlu1 %2594 }
 0x46c   :  { %v5199_v38 = vunpack.i.h.bf16 %v3992_v53  ;;  %v2596_v44 = vunpack.i.l.bf16 %v3994_v2  ;;  %v5192_v32 = vunpack.i.h.bf16 %v3994_v2 }
 0x46d   :  { %2884 = vrot.lane.b32.xlu1 %v2793_v62, %s3265_s11  ;;  %2874 = vrot.lane.b32.xlu0 %v2873_v16, %s3261_s19 }
 0x46e   :  { %v1016_v5 = vsel %vm51_vm0, %v5199_v38, %v2596_v44  ;;  %v1017_v40 = vsel %vm51_vm0, %v2596_v44, %v5192_v32 }
 0x46f   :  { %v3998_v55 = vpop.permute.xlu0 %2599  ;;  %v4000_v18 = vpop.permute.xlu1 %2604  ;;  %v2933_v36 = vpack.i.bf16 %v1017_v40, %v1016_v5 }
 0x470   :  { %v2602_v27 = vunpack.i.h.bf16 %v3998_v55  ;;  %v5202_v30 = vunpack.i.h.bf16 %v4000_v18  ;;  %v2606_v12 = vunpack.i.l.bf16 %v4000_v18 }
 0x471   :  { %2894 = vrot.lane.b32.xlu1 %v2878_v23, %s3262_s20  ;;  %2889 = vrot.lane.b32.xlu0 %v2873_v16, %s3262_s20 }
 0x472   :  { %v1038_v56 = vsel %vm63_vm1, %v2602_v27, %v2606_v12  ;;  %v1039_v29 = vsel %vm63_vm1, %v2606_v12, %v5202_v30 }
 0x473   :  { %v4004_v43 = vpop.permute.xlu0 %2609  ;;  %v4006_v50 = vpop.permute.xlu1 %2614  ;;  %v2938_v46 = vpack.i.bf16 %v1039_v29, %v1038_v56 }
 0x474   :  { %v5196_v25 = vunpack.i.h.bf16 %v4004_v43  ;;  %v2617_v31 = vunpack.i.h.bf16 %v4006_v50  ;;  %v2616_v47 = vunpack.i.l.bf16 %v4006_v50 }
 0x475   :  { %2899 = vrot.lane.b32.xlu1 %v2873_v16, %s3263_s27  ;;  %2904 = vrot.lane.b32.xlu0 %v2878_v23, %s3263_s27 }
 0x476   :  { %v1060_v11 = vsel %vm75_vm2, %v5196_v25, %v2616_v47  ;;  %v1061_v10 = vsel %vm75_vm2, %v2616_v47, %v2617_v31 }
 0x477   :  { %v4010_v20 = vpop.permute.xlu0 %2619  ;;  %v4012_v21 = vpop.permute.xlu1 %2624  ;;  %v2943_v17 = vpack.i.bf16 %v1061_v10, %v1060_v11 }
 0x478   :  { %v2627_v6 = vunpack.i.h.bf16 %v4012_v21  ;;  %v2626_v7 = vunpack.i.l.bf16 %v4012_v21 }
 0x479   :  { %2914 = vrot.lane.b32.xlu1 %v2878_v23, %s3264_s28  ;;  %2909 = vrot.lane.b32.xlu0 %v2873_v16, %s3264_s28 }
 0x47a   :  { %v1099_v59 = vsel %vm97_vm4, %v2626_v7, %v2627_v6 }
 0x47b   :  { %v4021_v51 = vpop.permute.xlu0 %2629  ;;  %v4023_v41 = vpop.permute.xlu1 %2634 }
 0x47c   :  { %v2631_v52 = vunpack.i.l.bf16 %v4021_v51  ;;  %v2637_v50 = vunpack.i.h.bf16 %v4023_v41 }
 0x47d   :  { %2919 = vrot.lane.b32.xlu1 %v2833_v8, %s3265_s11  ;;  %2924 = vrot.lane.b32.xlu0 %v2838_v15, %s3265_s11 }
 0x47e   :  { %v1100_v14 = vsel %vm97_vm4, %v2627_v6, %v2631_v52 }
 0x47f   :  { %v4037_v61 = vpop.permute.xlu0 %2639  ;;  %v4039_v35 = vpop.permute.xlu1 %2644  ;;  %v2953_v60 = vpack.i.bf16 %v1100_v14, %v1099_v59 }
 0x480   :  { %v2647_v58 = vunpack.i.h.bf16 %v4039_v35  ;;  %v5205_v34 = vunpack.i.l.bf16 %v4039_v35 }
 0x481   :  { %2929 = vrot.lane.b32.xlu1 %v2928_v42, %s3265_s11  ;;  %2939 = vrot.lane.b32.xlu0 %v2938_v46, %s3265_s11 }
 0x482   :  { %v1143_v57 = vsel %vm121_vm5, %v5205_v34, %v2647_v58  ;;  %v2642_v34 = vunpack.i.h.bf16 %v4037_v61 }
 0x483   :  { %v4052_v19 = vpop.permute.xlu0 %2649  ;;  %v4054_v9 = vpop.permute.xlu1 %2654 }
 0x484   :  { %v5204_v24 = vunpack.i.l.bf16 %v4052_v19 }
 0x485   :  { %2934 = vrot.lane.b32.xlu1 %v2933_v36, %s3265_s11 }
 0x486   :  { %v1144_v45 = vsel %vm121_vm5, %v2647_v58, %v5204_v24 }
 0x487   :  { %v4066_v42 = vpop.permute.xlu0 %2659  ;;  %v4068_v39 = vpop.permute.xlu1 %2664  ;;  %v2963_v0 = vpack.i.bf16 %v1144_v45, %v1143_v57 }
 0x488   :  { %v2661_v25 = vunpack.i.l.bf16 %v4066_v42  ;;  %v2667_v21 = vunpack.i.h.bf16 %v4068_v39 }
 0x489   :  { %2944 = vrot.lane.b32.xlu1 %v2943_v17, %s3265_s11 }
 0x48b   :  { %v4080_v62 = vpop.permute.xlu0 %2669  ;;  %v2675_v54 = vpop.permute.xlu1 %2674 }
 0x48c   :  { %v2672_v49 = vunpack.i.h.bf16 %v4080_v62  ;;  %v2671_v28 = vunpack.i.l.bf16 %v4080_v62  ;;  %v2677_v4 = vunpack.i.h.bf16 %v2675_v54  ;;  %v2676_v3 = vunpack.i.l.bf16 %v2675_v54 }
 0x48d   :  { %2954 = vrot.lane.b32.xlu1 %v2953_v60, %s3265_s11 }
 0x48e   :  { %v1197_v37 = vsel %vm51_vm0, %v2671_v28, %v2672_v49  ;;  %v1217_v16 = vsel %vm63_vm1, %v2676_v3, %v2677_v4 }
 0x48f   :  { %v4091_v26 = vpop.permute.xlu0 %2679  ;;  %v4093_v63 = vpop.permute.xlu1 %2684  ;;  %v2978_v13 = vpack.i.bf16 %v2672_v49, %v1197_v37 }
 0x490   :  { %v2681_v33 = vunpack.i.l.bf16 %v4091_v26 }
 0x491   :  { %2964 = vrot.lane.b32.xlu1 %v2963_v0, %s3265_s11 }
 0x492   :  { %v1218_v15 = vsel %vm63_vm1, %v2677_v4, %v2681_v33 }
 0x493   :  { %v4100_v1 = vpop.permute.xlu0 %2689  ;;  %v4102_v8 = vpop.permute.xlu1 %2694  ;;  %v2983_v56 = vpack.i.bf16 %v1218_v15, %v1217_v16 }
 0x494   :  { %v2692_v23 = vunpack.i.h.bf16 %v4100_v1  ;;  %v5201_v48 = vunpack.i.l.bf16 %v4100_v1  ;;  %v5194_v5 = vunpack.i.h.bf16 %v4102_v8  ;;  %v2696_v46 = vunpack.i.l.bf16 %v4102_v8 }
 0x495   :  { %2979 = vrot.lane.b32.xlu1 %v2978_v13, %s3265_s11 }
 0x496   :  { %v1241_v29 = vsel %vm75_vm2, %v5201_v48, %v2692_v23  ;;  %v1257_v11 = vsel %vm85_vm3, %v2696_v46, %v5194_v5 }
 0x497   :  { %v4111_v12 = vpop.permute.xlu0 %2699  ;;  %v2705_v44 = vpop.permute.xlu1 %2704  ;;  %v2998_v40 = vpack.i.bf16 %v2692_v23, %v1241_v29  ;;  %v3003_v14 = vpack.i.bf16 %v1257_v11, %v2696_v46  ;;  %v2601_v29 = vunpack.i.l.bf16 %v3998_v55  ;;  %v2632_v55 = vunpack.i.h.bf16 %v4021_v51 }
 0x498   :  { %v5195_v10 = vunpack.i.h.bf16 %v4111_v12  ;;  %v2707_v6 = vunpack.i.h.bf16 %v2705_v44  ;;  %v2706_v17 = vunpack.i.l.bf16 %v2705_v44 }
 0x499   :  { %2984 = vrot.lane.b32.xlu1 %v2983_v56, %s3265_s11 }
 0x49a   :  { %v1280_v54 = vsel %vm97_vm4, %v5195_v10, %v2706_v17  ;;  %v1281_v60 = vsel %vm97_vm4, %v2706_v17, %v2707_v6 }
 0x49b   :  { %v4119_v47 = vpop.permute.xlu0 %2709  ;;  %v4121_v36 = vpop.permute.xlu1 %2719  ;;  %v3018_v37 = vpack.i.bf16 %v1281_v60, %v1280_v54  ;;  %v2622_v54 = vunpack.i.h.bf16 %v4010_v20  ;;  %v5198_v60 = vunpack.i.l.bf16 %v4010_v20 }
 0x49d   :  { %2999 = vrot.lane.b32.xlu1 %v2998_v40, %s3265_s11 }
 0x49f   :  { %v4128_v59 = vpop.permute.xlu0 %2714  ;;  %v4130_v58 = vpop.permute.xlu1 %2724 }
 0x4a0   :  { %v5193_v45 = vunpack.i.h.bf16 %v4128_v59  ;;  %v2716_v49 = vunpack.i.l.bf16 %v4128_v59 }
 0x4a1   :  { %3004 = vrot.lane.b32.xlu1 %v3003_v14, %s3265_s11  ;;  %v4171_v14 = vsel %vm63_vm1, %v2601_v29, %v2602_v27 }
 0x4a2   :  { %v1301_v4 = vsel %vm109_vm6, %v2716_v49, %v5193_v45 }
 0x4a3   :  { %v4139_v57 = vpop.permute.xlu0 %2729  ;;  %v4141_v0 = vpop.permute.xlu1 %2739  ;;  %v3023_v3 = vpack.i.bf16 %v1301_v4, %v2716_v49 }
 0x4a5   :  { %3019 = vrot.lane.b32.xlu1 %v3018_v37, %s3265_s11 }
 0x4a7   :  { %v4147_v13 = vpop.permute.xlu0 %2734  ;;  %v4149_v15 = vpop.permute.xlu1 %2744 }
 0x4a9   :  { %3024 = vrot.lane.b32.xlu1 %v3023_v3, %s3265_s11  ;;  %v2641_v3 = vunpack.i.l.bf16 %v4037_v61 }
 0x4ab   :  { %v4152_v23 = vpop.permute.xlu0 %2749  ;;  %v4154_v16 = vpop.permute.xlu1 %2759  ;;  %v1122_v10 = vsel %vm109_vm6, %v2637_v50, %v2641_v3  ;;  %v4256_v62 = vsel %vm109_vm6, %v2641_v3, %v2642_v34  ;;  %v5252_v34 = vunpack.i.l.bf16 %v4039_v35 }
 0x4af   :  { %v4156_v44 = vpop.permute.xlu0 %2754  ;;  %v4158_v56 = vpop.permute.xlu1 %2769 }
 0x4b3   :  { %v4161_v46 = vpop.permute.xlu0 %2764  ;;  %v4163_v40 = vpop.permute.xlu1 %2779 }
 0x4b4   :  { %v5197_v11 = vunpack.i.h.bf16 %v4161_v46  ;;  %v2766_v6 = vunpack.i.l.bf16 %v4161_v46  ;;  %v5191_v17 = vunpack.i.h.bf16 %v4163_v40 }
 0x4b6   :  { %v4178_v49 = vsel %vm63_vm1, %v2766_v6, %v5197_v11  ;;  %v4184_v37 = vpack.i.bf16 %v5191_v17, %v2617_v31  ;;  %v1077_v6 = vsel %vm85_vm3, %v5198_v60, %v2622_v54  ;;  %v5203_v31 = vunpack.i.l.bf16 %v4023_v41 }
 0x4b7   :  { %v4188_v27 = vpop.permute.xlu0 %2774  ;;  %v4190_v4 = vpop.permute.xlu1 %2784 }
 0x4b8   :  { %v5200_v29 = vunpack.i.l.bf16 %v4190_v4  ;;  %v1121_v38 = vsel %vm109_vm6, %v5203_v31, %v2637_v50 }
 0x4ba   :  { %v1078_v17 = vsel %vm85_vm3, %v2622_v54, %v5200_v29  ;;  %v2657_v54 = vunpack.i.h.bf16 %v4054_v9  ;;  %v5206_v29 = vunpack.i.l.bf16 %v4054_v9 }
 0x4bb   :  { %v2948_v32 = vpack.i.bf16 %v1078_v17, %v1077_v6  ;;  %v4203_v45 = vpop.permute.xlu0 %2789  ;;  %v2795_v5 = vpop.permute.xlu1 %2794 }
 0x4bc   :  { %v2797_v11 = vunpack.i.h.bf16 %v2795_v5  ;;  %v2796_v60 = vunpack.i.l.bf16 %v2795_v5  ;;  %v2958_v5 = vpack.i.bf16 %v1122_v10, %v1121_v38  ;;  %v1166_v50 = vsel %vm133_vm7, %v2657_v54, %v2661_v25 }
 0x4bd   :  { %2949 = vrot.lane.b32.xlu0 %v2948_v32, %s3265_s11  ;;  %v4223_v32 = vsel %vm97_vm4, %v2631_v52, %v2632_v55  ;;  %v2652_v38 = vunpack.i.h.bf16 %v4052_v19  ;;  %v1165_v51 = vsel %vm133_vm7, %v5206_v29, %v2657_v54  ;;  %v2772_v10 = vunpack.i.h.bf16 %v4158_v56 }
 0x4be   :  { %v4214_v17 = vsel %vm97_vm4, %v2796_v60, %v2797_v11  ;;  %v3038_v6 = vpack.i.bf16 %v2796_v60, %v2626_v7  ;;  %5250 = vst [vmem:[#allocation3_spill] sm:$0xff] %v4223_v32  ;;  %v2666_v7 = vunpack.i.l.bf16 %v4068_v39  ;;  %v2682_v60 = vunpack.i.h.bf16 %v4091_v26 }
 0x4bf   :  { %v2800_v48 = vpop.permute.xlu0 %2799  ;;  %v4218_v30 = vpop.permute.xlu1 %2804  ;;  %v1196_v39 = vsel %vm51_vm0, %v2667_v21, %v2671_v28  ;;  %v2968_v54 = vpack.i.bf16 %v1166_v50, %v1165_v51 }
 0x4c0   :  { %v2802_v31 = vunpack.i.h.bf16 %v2800_v48  ;;  %v2801_v24 = vunpack.i.l.bf16 %v2800_v48  ;;  %3039 = vrot.lane.b32.xlu1 %v3038_v6, %s3265_s11  ;;  %v1195_v28 = vsel %vm51_vm0, %v2666_v7, %v2667_v21  ;;  %v1219_v48 = vsel %vm63_vm1, %v2681_v33, %v2682_v60 }
 0x4c1   :  { %2959 = vrot.lane.b32.xlu0 %v2958_v5, %s3265_s11  ;;  %v2973_v7 = vpack.i.bf16 %v1196_v39, %v1195_v28  ;;  %v2988_v35 = vpack.i.bf16 %v2682_v60, %v1219_v48  ;;  %v5255_v39 = vunpack.i.h.bf16 %v4000_v18  ;;  %v2756_v60 = vunpack.i.l.bf16 %v4156_v44 }
 0x4c2   :  { %v4239_v52 = vsel %vm97_vm4, %v2801_v24, %v2802_v31  ;;  %v4242_v61 = vsel %vm97_vm4, %v2797_v11, %v2801_v24 }
 0x4c3   :  { %5251 = vst [vmem:[#allocation4_spill] sm:$0xff] %v4239_v52  ;;  %v4251_v55 = vpop.permute.xlu0 %2809  ;;  %v2815_v6 = vpop.permute.xlu1 %2814  ;;  %v3063_v28 = vpack.i.bf16 %v2772_v10, %v5255_v39  ;;  %v2591_v39 = vunpack.i.l.bf16 %v3992_v53  ;;  %v2722_v52 = vunpack.i.h.bf16 %v4121_v36 }
 0x4c4   :  { %v2812_v31 = vunpack.i.h.bf16 %v4251_v55  ;;  %v5207_v5 = vunpack.i.l.bf16 %v4251_v55  ;;  %v2817_v24 = vunpack.i.h.bf16 %v2815_v6  ;;  %v2816_v11 = vunpack.i.l.bf16 %v2815_v6 }
 0x4c5   :  { %2969 = vrot.lane.b32.xlu0 %v2968_v54, %s3265_s11  ;;  %v5253_v6 = vunpack.i.l.bf16 %v4052_v19  ;;  %v2792_v19 = vunpack.i.h.bf16 %v4203_v45 }
 0x4c6   :  { %v4267_v50 = vsel %vm109_vm6, %v5207_v5, %v2812_v31  ;;  %v4270_v51 = vsel %vm121_vm5, %v2816_v11, %v2817_v24  ;;  %v3048_v3 = vpack.i.bf16 %v2816_v11, %v5252_v34  ;;  %v2662_v5 = vunpack.i.h.bf16 %v4066_v42 }
 0x4c7   :  { %v2820_v21 = vpop.permute.xlu0 %2819  ;;  %v4276_v33 = vpop.permute.xlu1 %2824  ;;  %v4281_v54 = vsel %vm121_vm5, %v5253_v6, %v2652_v38  ;;  %v2687_v11 = vunpack.i.h.bf16 %v4093_v63  ;;  %v2686_v34 = vunpack.i.l.bf16 %v4093_v63  ;;  %v5257_v6 = vunpack.i.l.bf16 %v4100_v1 }
 0x4c8   :  { %5254 = vst [vmem:[#allocation5_spill] sm:$0xff] %v4281_v54  ;;  %v2822_v31 = vunpack.i.h.bf16 %v2820_v21  ;;  %v2821_v29 = vunpack.i.l.bf16 %v2820_v21  ;;  %3049 = vrot.lane.b32.xlu1 %v3048_v3, %s3265_s11  ;;  %v5208_v3 = vunpack.i.h.bf16 %v4156_v44  ;;  %v4318_v63 = vsel %vm133_vm7, %v2661_v25, %v2662_v5 }
 0x4c9   :  { %2974 = vrot.lane.b32.xlu0 %v2973_v7, %s3265_s11  ;;  %v1239_v48 = vsel %vm75_vm2, %v2686_v34, %v2687_v11  ;;  %v5258_v1 = vunpack.i.l.bf16 %v4190_v4 }
 0x4ca   :  { %v4292_v38 = vsel %vm121_vm5, %v2821_v29, %v2822_v31  ;;  %v4295_v21 = vsel %vm121_vm5, %v2817_v24, %v2821_v29  ;;  %v1240_v31 = vsel %vm75_vm2, %v2687_v11, %v5257_v6  ;;  %v5259_v11 = vunpack.i.h.bf16 %v3992_v53 }
 0x4cb   :  { %5256 = vst [vmem:[#allocation6_spill] sm:$0xff] %v4292_v38  ;;  %v4303_v18 = vpop.permute.xlu0 %2829  ;;  %v4305_v7 = vpop.permute.xlu1 %2834  ;;  %v3073_v6 = vpack.i.bf16 %v2792_v19, %v5258_v1  ;;  %v2993_v5 = vpack.i.bf16 %v1240_v31, %v1239_v48  ;;  %v2611_v53 = vunpack.i.l.bf16 %v4004_v43 }
 0x4cc   :  { %v2832_v29 = vunpack.i.h.bf16 %v4303_v18  ;;  %v5209_v24 = vunpack.i.l.bf16 %v4303_v18  ;;  %3064 = vrot.lane.b32.xlu1 %v3063_v28, %s3265_s11  ;;  %v1018_v28 = vsel %vm51_vm0, %v2756_v60, %v5208_v3  ;;  %v1015_v34 = vsel %vm51_vm0, %v2591_v39, %v5259_v11 }
 0x4cd   :  { %2989 = vrot.lane.b32.xlu0 %v2988_v35, %s3265_s11  ;;  %v3083_v1 = vpack.i.bf16 %v1018_v28, %v1015_v34  ;;  %v5260_v60 = vunpack.i.h.bf16 %v4161_v46  ;;  %v5210_v3 = vunpack.i.h.bf16 %v4188_v27  ;;  %v2701_v11 = vunpack.i.l.bf16 %v4111_v12 }
 0x4ce   :  { %v4326_v26 = vsel %vm133_vm7, %v5209_v24, %v2832_v29  ;;  %v2771_v29 = vunpack.i.l.bf16 %v4158_v56  ;;  %v2776_v24 = vunpack.i.l.bf16 %v4188_v27  ;;  %v5262_v34 = vunpack.i.h.bf16 %v4004_v43 }
 0x4cf   :  { %v4333_v35 = vpop.permute.xlu0 %2839  ;;  %v4335_v25 = vpop.permute.xlu1 %2844  ;;  %v5263_v43 = vunpack.i.h.bf16 %v4111_v12 }
 0x4d0   :  { %3074 = vrot.lane.b32.xlu1 %v3073_v6, %s3265_s11  ;;  %v1041_v42 = vsel %vm63_vm1, %v5260_v60, %v2771_v29  ;;  %v1042_v56 = vsel %vm63_vm1, %v2771_v29, %v2772_v10  ;;  %v1062_v46 = vsel %vm75_vm2, %v2776_v24, %v5210_v3  ;;  %v2791_v6 = vunpack.i.l.bf16 %v4203_v45 }
 0x4d1   :  { %2994 = vrot.lane.b32.xlu0 %v2993_v5, %s3265_s11  ;;  %v3088_v39 = vpack.i.bf16 %v1042_v56, %v1041_v42  ;;  %v5211_v10 = vunpack.i.h.bf16 %v4190_v4  ;;  %v2732_v29 = vunpack.i.h.bf16 %v4139_v57  ;;  %v2731_v24 = vunpack.i.l.bf16 %v4139_v57 }
 0x4d2   :  { %v1080_v60 = vsel %vm85_vm3, %v2791_v6, %v2792_v19  ;;  %v2587_v19 = vunpack.i.h.bf16 %v3854_v22 }
 0x4d3   :  { %v4348_v48 = vpop.permute.xlu0 %2849  ;;  %v4350_v31 = vpop.permute.xlu1 %2854  ;;  %v1079_v45 = vsel %vm85_vm3, %v5211_v10, %v2791_v6  ;;  %v2586_v6 = vunpack.i.l.bf16 %v3854_v22  ;;  %v5264_v10 = vunpack.i.h.bf16 %v4102_v8  ;;  %v1325_v57 = vsel %vm121_vm5, %v2731_v24, %v2732_v29 }
 0x4d4   :  { %5261 = vst [vmem:[#allocation7_spill] sm:$0xff] %v4350_v31  ;;  %3084 = vrot.lane.b32.xlu1 %v3083_v1, %s3265_s11  ;;  %v1059_v1 = vsel %vm75_vm2, %v2611_v53, %v5262_v34  ;;  %v1279_v53 = vsel %vm97_vm4, %v2701_v11, %v5263_v43  ;;  %v2711_v34 = vunpack.i.l.bf16 %v4119_v47  ;;  %v3113_v3 = vpack.i.bf16 %v1080_v60, %v1079_v45 }
 0x4d5   :  { %v3108_v42 = vpack.i.bf16 %v1062_v46, %v1059_v1  ;;  %v5216_v1 = vunpack.i.h.bf16 %v4130_v58  ;;  %v3013_v43 = vpack.i.bf16 %v1279_v53, %v2701_v11  ;;  %v2721_v22 = vunpack.i.l.bf16 %v4121_v36 }
 0x4d6   :  { %v1495_v11 = vsel %vm299_vm8, %v2586_v6, %v2711_v34  ;;  %v2807_v45 = vunpack.i.h.bf16 %v4218_v30  ;;  %v2806_v29 = vunpack.i.l.bf16 %v4218_v30  ;;  %v2737_v36 = vunpack.i.h.bf16 %v4147_v13 }
 0x4d7   :  { %v4359_v28 = vpop.permute.xlu0 %2859  ;;  %v4361_v5 = vpop.permute.xlu1 %2869  ;;  %v2736_v6 = vunpack.i.l.bf16 %v4147_v13  ;;  %v2837_v13 = vunpack.i.h.bf16 %v4305_v7 }
 0x4d8   :  { %3089 = vrot.lane.b32.xlu1 %v3088_v39, %s3265_s11 }
 0x4db   :  { %v4375_v56 = vpop.permute.xlu0 %2864  ;;  %v4377_v39 = vpop.permute.xlu1 %2879 }
 0x4dc   :  { %v2866_v46 = vunpack.i.l.bf16 %v4375_v56  ;;  %3109 = vrot.lane.b32.xlu1 %v3108_v42, %s3265_s11  ;;  %v1324_v42 = vsel %vm121_vm5, %v5216_v1, %v2731_v24  ;;  %v5265_v24 = vunpack.i.h.bf16 %v4119_v47 }
 0x4de   :  { %v1258_v12 = vsel %vm85_vm3, %v5264_v10, %v2866_v46  ;;  %v1496_v60 = vsel %vm299_vm8, %v2711_v34, %v5265_v24  ;;  %v5267_v24 = vunpack.i.h.bf16 %v4128_v59 }
 0x4df   :  { %v3008_v54 = vpack.i.bf16 %v2866_v46, %v1258_v12  ;;  %v4396_v38 = vpop.permute.xlu0 %2874  ;;  %v4398_v32 = vpop.permute.xlu1 %2884  ;;  %v3118_v46 = vpack.i.bf16 %v1325_v57, %v1324_v42  ;;  %v5266_v12 = vunpack.i.l.bf16 %v4251_v55  ;;  %v1303_v55 = vsel %vm109_vm6, %v2721_v22, %v2722_v52 }
 0x4e0   :  { %v2887_v8 = vunpack.i.h.bf16 %v4398_v32  ;;  %v2886_v10 = vunpack.i.l.bf16 %v4398_v32  ;;  %3114 = vrot.lane.b32.xlu1 %v3113_v3, %s3265_s11  ;;  %v1302_v57 = vsel %vm109_vm6, %v5267_v24, %v2721_v22  ;;  %v2746_v22 = vunpack.i.l.bf16 %v4149_v15 }
 0x4e1   :  { %3009 = vrot.lane.b32.xlu0 %v3008_v54, %s3265_s11  ;;  %v1125_v30 = vsel %vm109_vm6, %v2807_v45, %v5266_v12  ;;  %v2761_v32 = vunpack.i.l.bf16 %v4154_v16 }
 0x4e2   :  { %v1498_v53 = vsel %vm299_vm8, %v2587_v19, %v2886_v10  ;;  %v1499_v3 = vsel %vm299_vm8, %v2886_v10, %v2887_v8  ;;  %v1124_v19 = vsel %vm109_vm6, %v2806_v29, %v2807_v45  ;;  %v1345_v10 = vsel %vm133_vm7, %v2736_v6, %v2737_v36 }
 0x4e3   :  { %v2169_v54 = vpack.c.bf16 %v1498_v53, %v1495_v11  ;;  %v4421_v1 = vpop.permute.xlu0 %2889  ;;  %v4423_v31 = vpop.permute.xlu1 %2894  ;;  %v2167_v34 = vpack.c.bf16 %v1499_v3, %v1496_v60  ;;  %v3128_v42 = vpack.i.bf16 %v1125_v30, %v1124_v19  ;;  %v3028_v60 = vpack.i.bf16 %v1303_v55, %v1302_v57 }
 0x4e4   :  { %3119 = vrot.lane.b32.xlu1 %v3118_v46, %s3265_s11  ;;  %v2827_v45 = vunpack.i.h.bf16 %v4276_v33  ;;  %v2826_v53 = vunpack.i.l.bf16 %v4276_v33  ;;  %v3133_v52 = vpack.i.bf16 %v1345_v10, %v2736_v6  ;;  %v5268_v46 = vunpack.i.l.bf16 %v4010_v20 }
 0x4e5   :  { %2168 = vmatprep.subr.bf16.mxu1 %v2167_v34  ;;  %3014 = vrot.lane.b32.xlu0 %v3013_v43, %s3265_s11  ;;  %v2747_v43 = vunpack.i.h.bf16 %v4149_v15  ;;  %v5269_v3 = vunpack.i.h.bf16 %v4190_v4  ;;  %v5270_v30 = vunpack.i.l.bf16 %v4303_v18  ;;  %v2842_v34 = vunpack.i.h.bf16 %v4333_v35 }
 0x4e6   :  { %2170 = vmatpush1.bf16.msra.mxu1 %v2169_v54  ;;  %v2841_v33 = vunpack.i.l.bf16 %v4333_v35  ;;  %v5231_v15 = vunpack.i.l.bf16 %v4152_v23  ;;  %v1168_v20 = vsel %vm133_vm7, %v2826_v53, %v2827_v45  ;;  %v2851_v18 = vunpack.i.l.bf16 %v4348_v48 }
 0x4e7   :  { %v4435_v11 = vpop.permute.xlu0 %2904  ;;  %v4437_v59 = vpop.permute.xlu1 %2899  ;;  %v3033_v12 = vpack.i.bf16 %v5269_v3, %v5268_v46  ;;  %v1169_v54 = vsel %vm133_vm7, %v2827_v45, %v5270_v30  ;;  %v5271_v57 = vunpack.i.l.bf16 %v4023_v41 }
 0x4e8   :  { %3129 = vrot.lane.b32.xlu1 %v3128_v42, %s3265_s11  ;;  %v3148_v4 = vpack.i.bf16 %v1169_v54, %v1168_v20  ;;  %v1200_v55 = vsel %vm51_vm0, %v2841_v33, %v2842_v34  ;;  %v4477_v41 = vsel %vm299_vm8, %v2747_v43, %v5231_v15 }
 0x4e9   :  { %3029 = vrot.lane.b32.xlu0 %v3028_v60, %s3265_s11  ;;  %v3043_v19 = vpack.i.bf16 %v2806_v29, %v5271_v57  ;;  %v1747_v60 = vsel %vm299_vm8, %v2746_v22, %v2747_v43  ;;  %v2762_v29 = vunpack.i.h.bf16 %v4154_v16  ;;  %v2846_v22 = vunpack.i.l.bf16 %v4335_v25 }
 0x4ea   :  { %v3158_v54 = vpack.i.bf16 %v2842_v34, %v1200_v55  ;;  %v2862_v57 = vunpack.i.h.bf16 %v4359_v28 }
 0x4eb   :  { %v4454_v24 = vpop.permute.xlu0 %2909  ;;  %v4456_v6 = vpop.permute.xlu1 %2914  ;;  %v1020_v16 = vsel %vm51_vm0, %v2761_v32, %v2762_v29 }
 0x4ec   :  { %3134 = vrot.lane.b32.xlu1 %v3133_v52, %s3265_s11  ;;  %v2847_v52 = vunpack.i.h.bf16 %v4335_v25 }
 0x4ed   :  { %3034 = vrot.lane.b32.xlu0 %v3033_v12, %s3265_s11  ;;  %v5272_v12 = vunpack.i.l.bf16 %v4054_v9  ;;  %v2861_v9 = vunpack.i.l.bf16 %v4359_v28 }
 0x4ee   :  { %v1221_v20 = vsel %vm63_vm1, %v2847_v52, %v2851_v18 }
 0x4ef   :  { %v4468_v42 = vpop.permute.xlu0 %2924  ;;  %v2920_v10 = vpop.permute.xlu1 %2919  ;;  %v3053_v30 = vpack.i.bf16 %v2826_v53, %v5272_v12 }
 0x4f0   :  { %v5230_v45 = vunpack.i.l.bf16 %v4468_v42  ;;  %v2922_v46 = vunpack.i.h.bf16 %v2920_v10  ;;  %v2921_v3 = vunpack.i.l.bf16 %v2920_v10  ;;  %3149 = vrot.lane.b32.xlu1 %v3148_v4, %s3265_s11  ;;  %v1220_v10 = vsel %vm63_vm1, %v2846_v22, %v2847_v52 }
 0x4f1   :  { %3044 = vrot.lane.b32.xlu0 %v3043_v19, %s3265_s11  ;;  %v3163_v12 = vpack.i.bf16 %v1221_v20, %v1220_v10  ;;  %v2867_v52 = vunpack.i.h.bf16 %v4375_v56  ;;  %v5275_v20 = vunpack.i.h.bf16 %v4156_v44 }
 0x4f2   :  { %v4490_v4 = vsel %vm299_vm8, %v2922_v46, %v5230_v45  ;;  %v1750_v43 = vsel %vm299_vm8, %v2921_v3, %v2922_v46  ;;  %v5273_v46 = vunpack.i.h.bf16 %v4119_v47  ;;  %v2871_v47 = vunpack.i.l.bf16 %v4361_v5 }
 0x4f3   :  { %v2930_v53 = vpop.permute.xlu1 %2929  ;;  %v2203_v34 = vpack.c.bf16 %v1750_v43, %v1747_v60  ;;  %v5274_v60 = vunpack.i.h.bf16 %v3994_v2  ;;  %v1019_v56 = vsel %vm51_vm0, %v5275_v20, %v2761_v32  ;;  %v5279_v32 = vunpack.i.h.bf16 %v4163_v40 }
 0x4f4   :  { %v2932_v19 = vunpack.i.h.bf16 %v2930_v53  ;;  %v2931_v55 = vunpack.i.l.bf16 %v2930_v53  ;;  %3159 = vrot.lane.b32.xlu1 %v3158_v54, %s3265_s11  ;;  %v1244_v54 = vsel %vm75_vm2, %v2861_v9, %v2862_v57  ;;  %v1259_v2 = vsel %vm85_vm3, %v2867_v52, %v2871_v47 }
 0x4f5   :  { %2204 = vmatprep.subr.bf16.mxu0 %v2203_v34  ;;  %3054 = vrot.lane.b32.xlu0 %v3053_v30, %s3265_s11  ;;  %v3058_v43 = vpack.i.bf16 %v2762_v29, %v5274_v60  ;;  %v2877_v30 = vunpack.i.h.bf16 %v4396_v38  ;;  %v2882_v53 = vunpack.i.h.bf16 %v4377_v39  ;;  %v2881_v34 = vunpack.i.l.bf16 %v4377_v39 }
 0x4f6   :  { %v1497_v3 = vsel %vm299_vm8, %v5273_v46, %v2931_v55  ;;  %v1500_v25 = vsel %vm299_vm8, %v2887_v8, %v2932_v19  ;;  %v3178_v8 = vpack.i.bf16 %v2862_v57, %v1244_v54  ;;  %v3183_v57 = vpack.i.bf16 %v1259_v2, %v2867_v52 }
 0x4f7   :  { %v2205_v22 = vpack.c.bf16 %v1500_v25, %v1497_v3  ;;  %v4523_v25 = vpop.permute.xlu1 %2934  ;;  %v1283_v44 = vsel %vm97_vm4, %v2877_v30, %v2881_v34  ;;  %v2892_v19 = vunpack.i.h.bf16 %v4421_v1  ;;  %v2891_v55 = vunpack.i.l.bf16 %v4421_v1 }
 0x4f8   :  { %3164 = vrot.lane.b32.xlu1 %v3163_v12, %s3265_s11  ;;  %v3078_v10 = vpack.i.bf16 %v1020_v16, %v1019_v56  ;;  %v1284_v12 = vsel %vm97_vm4, %v2881_v34, %v2882_v53  ;;  %v2781_v39 = vunpack.i.l.bf16 %v4163_v40  ;;  %v5276_v60 = vunpack.i.h.bf16 %v4188_v27 }
 0x4f9   :  { %2206 = vmatpush1.bf16.msra.mxu0 %v2205_v22  ;;  %3059 = vrot.lane.b32.xlu0 %v3058_v43, %s3265_s11  ;;  %v3198_v29 = vpack.i.bf16 %v1284_v12, %v1283_v44  ;;  %v1304_v3 = vsel %vm109_vm6, %v2891_v55, %v2892_v19  ;;  %v5277_v54 = vpack.i.bf16 %v4178_v49, %v4171_v14  ;;  %v5278_v52 = vunpack.i.h.bf16 %v4130_v58 }
 0x4fa   :  { %v1063_v43 = vsel %vm75_vm2, %v5276_v60, %v2781_v39  ;;  %v3208_v2 = vpack.i.bf16 %v1304_v3, %v2891_v55  ;;  %v2907_v27 = vunpack.i.h.bf16 %v4435_v11  ;;  %v2906_v56 = vunpack.i.l.bf16 %v4435_v11 }
 0x4fb   :  { %v4541_v46 = vpop.permute.xlu1 %2944  ;;  %v2902_v53 = vunpack.i.h.bf16 %v4437_v59  ;;  %v2912_v49 = vunpack.i.h.bf16 %v4454_v24  ;;  %v2911_v16 = vunpack.i.l.bf16 %v4454_v24  ;;  %v5280_v11 = vpack.i.bf16 %v4267_v50, %v4256_v62 }
 0x4fc   :  { %3179 = vrot.lane.b32.xlu1 %v3178_v8, %s3265_s11  ;;  %v1064_v8 = vsel %vm75_vm2, %v2781_v39, %v5279_v32  ;;  %v1328_v14 = vsel %vm121_vm5, %v2906_v56, %v2907_v27  ;;  %v2741_v44 = vunpack.i.l.bf16 %v4141_v0  ;;  %v5282_v62 = vpack.i.bf16 %v4242_v61, %v4214_v17 }
 0x4fd   :  { %3069 = vrot.lane.b32.xlu0 %v4184_v37, %s3265_s11  ;;  %v2726_v37 = vunpack.i.l.bf16 %v4130_v58  ;;  %v3098_v20 = vpack.i.bf16 %v1064_v8, %v1063_v43  ;;  %v1327_v40 = vsel %vm121_vm5, %v2902_v53, %v2906_v56  ;;  %v1348_v12 = vsel %vm133_vm7, %v2911_v16, %v2912_v49  ;;  %v4649_v56 = vpop.permute.xlu0 %2939 }
 0x4fe   :  { %v3228_v55 = vpack.i.bf16 %v1328_v14, %v1327_v40  ;;  %v3238_v50 = vpack.i.bf16 %v1348_v12, %v2911_v16  ;;  %v1199_v3 = vsel %vm51_vm0, %v2837_v13, %v2841_v33  ;;  %v2852_v17 = vunpack.i.h.bf16 %v4348_v48  ;;  %v5286_v16 = vld [vmem:[#allocation4_spill] sm:$0xff] }
 0x4ff   :  { %v1323_v22 = vsel %vm121_vm5, %v2726_v37, %v5278_v52  ;;  %v4563_v34 = vpop.permute.xlu1 %2954  ;;  %v5283_v61 = vpack.i.bf16 %v4326_v26, %v4318_v63  ;;  %v5284_v60 = vpack.i.bf16 %v4295_v21, %v4270_v51  ;;  %v4621_v26 = vld [vmem:[%s5188_s5 + $0x8] sm:$0xff]  ;;  %v5285_v51 = vld [vmem:[#allocation7_spill] sm:$0xff]  ;;  %v2901_v40 = vunpack.i.l.bf16 %v4437_v59 }
 0x500   :  { %3184 = vrot.lane.b32.xlu1 %v3183_v57, %s3265_s11  ;;  %v3103_v58 = vpack.i.bf16 %v1323_v22, %v2726_v37  ;;  %v2742_v57 = vunpack.i.h.bf16 %v4141_v0  ;;  %v1346_v37 = vsel %vm133_vm7, %v2737_v36, %v2741_v44  ;;  %v2836_v36 = vunpack.i.l.bf16 %v4305_v7  ;;  %2110 = vmatprep.mubr.msk.f32.mxu1 %vm1863_vm15, %v4621_v26 }
 0x501   :  { %3079 = vrot.lane.b32.xlu0 %v3078_v10, %s3265_s11  ;;  %v1222_v35 = vsel %vm63_vm1, %v2851_v18, %v2852_v17  ;;  %v2857_v21 = vunpack.i.h.bf16 %v5285_v51  ;;  %v2856_v63 = vunpack.i.l.bf16 %v5285_v51  ;;  %2111 = vmatprep.mubr.msk.f32.mxu0 %vm1863_vm15, %v4621_v26  ;;  %v2872_v18 = vunpack.i.h.bf16 %v4361_v5 }
 0x502   :  { %v1347_v0 = vsel %vm133_vm7, %v2741_v44, %v2742_v57  ;;  %v1198_v43 = vsel %vm51_vm0, %v2836_v36, %v2837_v13  ;;  %v3168_v48 = vpack.i.bf16 %v2852_v17, %v1222_v35  ;;  %v2897_v5 = vunpack.i.h.bf16 %v4423_v31  ;;  %v5292_v17 = vld [vmem:[#allocation5_spill] sm:$0xff] }
 0x503   :  { %v4580_v10 = vpop.permute.xlu1 %2964  ;;  %v3138_v39 = vpack.i.bf16 %v1347_v0, %v1346_v37  ;;  %v3153_v7 = vpack.i.bf16 %v1199_v3, %v1198_v43  ;;  %v1243_v33 = vsel %vm75_vm2, %v2857_v21, %v2861_v9  ;;  %v1242_v22 = vsel %vm75_vm2, %v2856_v63, %v2857_v21  ;;  %v5291_v3 = vld [vmem:[#allocation6_spill] sm:$0xff]  ;;  %v1857_v21 = vld [vmem:[%s5189_s6] sm:$0xff] }
 0x504   :  { %3199 = vrot.lane.b32.xlu1 %v3198_v29, %s3265_s11  ;;  %5281 = vst [vmem:[#allocation8_spill] sm:$0xff] %v4580_v10  ;;  %v3173_v32 = vpack.i.bf16 %v1243_v33, %v1242_v22  ;;  %v1260_v8 = vsel %vm85_vm3, %v2871_v47, %v2872_v18  ;;  %v2896_v47 = vunpack.i.l.bf16 %v4423_v31  ;;  %v1326_v1 = vsel %vm121_vm5, %v2901_v40, %v2902_v53 }
 0x505   :  { %3094 = vrot.lane.b32.xlu0 %v5277_v54, %s3265_s11  ;;  %v3188_v9 = vpack.i.bf16 %v2872_v18, %v1260_v8  ;;  %v3223_v12 = vpack.i.bf16 %v1326_v1, %v2901_v40  ;;  %v2916_v0 = vunpack.i.l.bf16 %v4456_v6 }
 0x507   :  { %v4594_v29 = vpop.permute.xlu1 %2979  ;;  %v1349_v59 = vsel %vm133_vm7, %v2912_v49, %v2916_v0 }
 0x508   :  { %3209 = vrot.lane.b32.xlu1 %v3208_v2, %s3265_s11  ;;  %v2876_v2 = vunpack.i.l.bf16 %v4396_v38  ;;  %v1305_v38 = vsel %vm109_vm6, %v2892_v19, %v2896_v47  ;;  %v5229_v13 = vunpack.i.l.bf16 %v4594_v29 }
 0x509   :  { %3099 = vrot.lane.b32.xlu0 %v3098_v20, %s3265_s11 }
 0x50a   :  { %v1282_v20 = vsel %vm97_vm4, %v2876_v2, %v2877_v30  ;;  %v1306_v30 = vsel %vm109_vm6, %v2896_v47, %v2897_v5 }
 0x50b   :  { %v4613_v54 = vpop.permute.xlu1 %2984  ;;  %v3193_v27 = vpack.i.bf16 %v1282_v20, %v2876_v2  ;;  %v3213_v44 = vpack.i.bf16 %v1306_v30, %v1305_v38 }
 0x50c   :  { %3219 = vrot.lane.b32.xlu1 %v5280_v11, %s3265_s11  ;;  %v5287_v11 = vld [vmem:[#allocation3_spill] sm:$0xff]  ;;  %v5227_v43 = vunpack.i.h.bf16 %v4613_v54 }
 0x50d   :  { %3104 = vrot.lane.b32.xlu0 %v3103_v58, %s3265_s11  ;;  %v5288_v57 = vpack.i.bf16 %v5286_v16, %v5287_v11 }
 0x50f   :  { %v4634_v52 = vpop.permute.xlu1 %2999 }
 0x510   :  { %3229 = vrot.lane.b32.xlu1 %v3228_v55, %s3265_s11 }
 0x511   :  { %3124 = vrot.lane.b32.xlu0 %v5282_v62, %s3265_s11  ;;  %v2917_v62 = vunpack.i.h.bf16 %v4456_v6  ;;  %v5293_v6 = vpack.i.bf16 %v5291_v3, %v5292_v17 }
 0x513   :  { %v4643_v28 = vpop.permute.xlu1 %3004  ;;  %v1350_v53 = vsel %vm133_vm7, %v2916_v0, %v2917_v62 }
 0x514   :  { %3239 = vrot.lane.b32.xlu1 %v3238_v50, %s3265_s11  ;;  %v3243_v49 = vpack.i.bf16 %v1350_v53, %v1349_v59 }
 0x515   :  { %3139 = vrot.lane.b32.xlu0 %v3138_v39, %s3265_s11 }
 0x517   :  { %v4653_v58 = vpop.permute.xlu1 %3019 }
 0x518   :  { %3249 = vrot.lane.b32.xlu1 %v5283_v61, %s3265_s11  ;;  %v5222_v47 = vunpack.i.l.bf16 %v4653_v58 }
 0x519   :  { %3144 = vrot.lane.b32.xlu0 %v5284_v60, %s3265_s11 }
 0x51b   :  { %v4667_v31 = vpop.permute.xlu1 %3024 }
 0x51c   :  { %v5219_v11 = vunpack.i.h.bf16 %v4667_v31 }
 0x51d   :  { %3154 = vrot.lane.b32.xlu0 %v3153_v7, %s3265_s11 }
 0x521   :  { %3169 = vrot.lane.b32.xlu0 %v3168_v48, %s3265_s11  ;;  %v5226_v48 = vunpack.i.l.bf16 %v4634_v52 }
 0x525   :  { %3174 = vrot.lane.b32.xlu0 %v3173_v32, %s3265_s11 }
 0x529   :  { %3189 = vrot.lane.b32.xlu0 %v3188_v9, %s3265_s11  ;;  %v5224_v9 = vunpack.i.h.bf16 %v4643_v28 }
 0x52d   :  { %3194 = vrot.lane.b32.xlu0 %v3193_v27, %s3265_s11 }
 0x52f   :  { %v4656_v14 = vpop.permute.xlu0 %2949 }
 0x531   :  { %3204 = vrot.lane.b32.xlu0 %v5288_v57, %s3265_s11 }
 0x532   :  { %v4675_v19 = vpop.permute.xlu1 %3039 }
 0x533   :  { %v4669_v55 = vpop.permute.xlu0 %2959 }
 0x534   :  { %5289 = vst [vmem:[#allocation7_spill] sm:$0xff] %v4669_v55 }
 0x535   :  { %3214 = vrot.lane.b32.xlu0 %v3213_v44, %s3265_s11 }
 0x537   :  { %v4677_v37 = vpop.permute.xlu0 %2969 }
 0x538   :  { %5290 = vst [vmem:[#allocation4_spill] sm:$0xff] %v4677_v37 }
 0x539   :  { %3224 = vrot.lane.b32.xlu0 %v3223_v12, %s3265_s11 }
 0x53a   :  { %v4682_v50 = vpop.permute.xlu1 %3049 }
 0x53b   :  { %v4684_v39 = vpop.permute.xlu0 %2974 }
 0x53c   :  { %v5228_v36 = vunpack.i.h.bf16 %v4684_v39 }
 0x53d   :  { %3234 = vrot.lane.b32.xlu0 %v5293_v6, %s3265_s11 }
 0x53e   :  { %v4701_v61 = vsel %vm299_vm8, %v5228_v36, %v5229_v13  ;;  %v4703_v24 = vpop.permute.xlu1 %3064 }
 0x53f   :  { %v4705_v60 = vpop.permute.xlu0 %2989 }
 0x540   :  { %v5223_v7 = vunpack.i.l.bf16 %v4705_v60 }
 0x541   :  { %3244 = vrot.lane.b32.xlu0 %v3243_v49, %s3265_s11 }
 0x542   :  { %v4715_v35 = vsel %vm299_vm8, %v5227_v43, %v5223_v7  ;;  %v4717_v51 = vpop.permute.xlu1 %3074 }
 0x543   :  { %5294 = vst [vmem:[#allocation3_spill] sm:$0xff] %v4715_v35  ;;  %v4722_v63 = vpop.permute.xlu0 %2994 }
 0x544   :  { %v5225_v33 = vunpack.i.h.bf16 %v4722_v63 }
 0x545   :  { %1860 = vperm.xlu0 %2582, %v1857_v21   ;;  %v5234_v21 = vunpack.i.h.bf16 %v4523_v25 }
 0x546   :  { %v4731_v18 = vsel %vm299_vm8, %v5225_v33, %v5226_v48  ;;  %v3085_v22 = vpop.permute.xlu1 %3084  ;;  %v2941_v48 = vunpack.i.l.bf16 %v4649_v56 }
 0x547   :  { %5295 = vst [vmem:[#allocation6_spill] sm:$0xff] %v4731_v18  ;;  %v3086_v49 = vunpack.i.l.bf16 %v3085_v22 }
 0x54a   :  { %v4733_v32 = vpop.permute.xlu1 %3089 }
 0x54b   :  { %v5304_v33 = vunpack.i.h.bf16 %v4733_v32 }
 0x54e   :  { %v4735_v8 = vpop.permute.xlu1 %3109 }
 0x552   :  { %v4752_v30 = vpop.permute.xlu1 %3114 }
 0x553   :  { %v4737_v2 = vpop.permute.xlu0 %3009 }
 0x554   :  { %v5220_v20 = vunpack.i.l.bf16 %v4737_v2 }
 0x556   :  { %v4746_v27 = vsel %vm299_vm8, %v5224_v9, %v5220_v20  ;;  %v4772_v1 = vpop.permute.xlu1 %3119  ;;  %v3091_v20 = vunpack.i.l.bf16 %v4733_v32 }
 0x557   :  { %5296 = vst [vmem:[#allocation5_spill] sm:$0xff] %v4746_v27  ;;  %v4748_v5 = vpop.permute.xlu0 %3014  ;;  %5300 = vst [vmem:[#allocation12_spill] sm:$0xff] %v4772_v1  ;;  %v2927_v27 = vunpack.i.h.bf16 %v4468_v42 }
 0x558   :  { %v5221_v38 = vunpack.i.h.bf16 %v4748_v5 }
 0x55a   :  { %v4759_v40 = vsel %vm299_vm8, %v5221_v38, %v5222_v47  ;;  %v4778_v0 = vpop.permute.xlu1 %3129  ;;  %v3087_v47 = vunpack.i.h.bf16 %v3085_v22 }
 0x55b   :  { %5297 = vst [vmem:[#allocation9_spill] sm:$0xff] %v4759_v40  ;;  %v4761_v16 = vpop.permute.xlu0 %3029  ;;  %5301 = vst [vmem:[#allocation13_spill] sm:$0xff] %v4778_v0 }
 0x55c   :  { %5298 = vst [vmem:[#allocation10_spill] sm:$0xff] %v4761_v16  ;;  %v5218_v57 = vunpack.i.l.bf16 %v4761_v16 }
 0x55e   :  { %v4770_v44 = vsel %vm299_vm8, %v5219_v11, %v5218_v57  ;;  %v4782_v53 = vpop.permute.xlu1 %3134  ;;  %v2936_v57 = vunpack.i.l.bf16 %v4523_v25 }
 0x55f   :  { %5299 = vst [vmem:[#allocation11_spill] sm:$0xff] %v4770_v44  ;;  %v4774_v12 = vpop.permute.xlu0 %3034  ;;  %5302 = vst [vmem:[#allocation14_spill] sm:$0xff] %v4782_v53  ;;  %v1511_v44 = vsel %vm299_vm8, %v3091_v20, %v5304_v33 }
 0x560   :  { %v1501_v43 = vsel %vm299_vm8, %v3086_v49, %v2936_v57  ;;  %v1502_v11 = vsel %vm299_vm8, %v2936_v57, %v5234_v21 }
 0x562   :  { %v4788_v6 = vpop.permute.xlu1 %3149 }
 0x563   :  { %v4776_v62 = vpop.permute.xlu0 %3044  ;;  %5303 = vst [vmem:[#allocation15_spill] sm:$0xff] %v4788_v6 }
 0x566   :  { %v4805_v45 = vpop.permute.xlu1 %3159 }
 0x567   :  { %v4780_v59 = vpop.permute.xlu0 %3054 }
 0x56b   :  { %v4784_v3 = vpop.permute.xlu0 %3059 }
 0x56f   :  { %v4786_v17 = vpop.permute.xlu0 %3069 }
 0x573   :  { %v4794_v38 = vpop.permute.xlu0 %3079 }
 0x574   :  { %v5233_v7 = vunpack.i.h.bf16 %v4794_v38  ;;  %v3081_v9 = vunpack.i.l.bf16 %v4794_v38 }
 0x576   :  { %v1504_v36 = vsel %vm299_vm8, %v3087_v47, %v3081_v9  ;;  %v1505_v13 = vsel %vm299_vm8, %v3081_v9, %v5233_v7  ;;  %v2752_v47 = vunpack.i.h.bf16 %v4152_v23  ;;  %v3111_v9 = vunpack.i.l.bf16 %v4735_v8 }
 0x577   :  { %v2173_v15 = vpack.c.bf16 %v1504_v36, %v1501_v43  ;;  %v3095_v22 = vpop.permute.xlu0 %3094  ;;  %v2171_v53 = vpack.c.bf16 %v1505_v13, %v1502_v11  ;;  %v5305_v36 = vunpack.i.h.bf16 %v4649_v56  ;;  %v2946_v13 = vunpack.i.l.bf16 %v4541_v46 }
 0x578   :  { %v3097_v40 = vunpack.i.h.bf16 %v3095_v22  ;;  %v3096_v49 = vunpack.i.l.bf16 %v3095_v22  ;;  %v5238_v11 = vunpack.i.h.bf16 %v4752_v30  ;;  %v3116_v22 = vunpack.i.l.bf16 %v4752_v30 }
 0x579   :  { %v1508_v43 = vsel %vm299_vm8, %v2941_v48, %v5305_v36  ;;  %2172 = vmatprep.subr.bf16.mxu1 %v2171_v53  ;;  %v3112_v7 = vunpack.i.h.bf16 %v4735_v8  ;;  %v2951_v53 = vunpack.i.l.bf16 %v4656_v14 }
 0x57a   :  { %v1507_v57 = vsel %vm299_vm8, %v3096_v49, %v2941_v48  ;;  %v1510_v21 = vsel %vm299_vm8, %v3097_v40, %v3091_v20  ;;  %v2175_v33 = vpack.c.bf16 %v1511_v44, %v1508_v43  ;;  %2174 = vmatpush1.bf16.msra.mxu1 %v2173_v15  ;;  %v2956_v40 = vunpack.i.l.bf16 %v4563_v34  ;;  %v4835_v15 = vpop.permute.xlu1 %3164 }
 0x57b   :  { %v2177_v16 = vpack.c.bf16 %v1510_v21, %v1507_v57  ;;  %v4825_v18 = vpop.permute.xlu0 %3099  ;;  %v1513_v21 = vsel %vm299_vm8, %v3111_v9, %v2946_v13  ;;  %v3037_v49 = vunpack.i.h.bf16 %v4774_v12  ;;  %v3036_v43 = vunpack.i.l.bf16 %v4774_v12 }
 0x57c   :  { %v5239_v48 = vunpack.i.h.bf16 %v4825_v18  ;;  %v3101_v20 = vunpack.i.l.bf16 %v4825_v18  ;;  %2176 = vmatprep.subr.bf16.mxu1 %v2175_v33  ;;  %v5307_v44 = vunpack.i.h.bf16 %v4541_v46  ;;  %v1523_v1 = vsel %vm299_vm8, %v3116_v22, %v5238_v11 }
 0x57d   :  { %v5308_v12 = vunpack.i.l.bf16 %v4152_v23  ;;  %v3046_v23 = vunpack.i.l.bf16 %v4776_v62 }
 0x57e   :  { %v1516_v8 = vsel %vm299_vm8, %v3112_v7, %v3101_v20  ;;  %v1517_v57 = vsel %vm299_vm8, %v3101_v20, %v5239_v48  ;;  %2178 = vmatpush1.bf16.msra.mxu1 %v2177_v16  ;;  %v1514_v9 = vsel %vm299_vm8, %v2946_v13, %v5307_v44  ;;  %v3041_v20 = vunpack.i.l.bf16 %v4675_v19 }
 0x57f   :  { %v2181_v33 = vpack.c.bf16 %v1516_v8, %v1513_v21  ;;  %v4843_v36 = vpop.permute.xlu0 %3104  ;;  %v2179_v35 = vpack.c.bf16 %v1517_v57, %v1514_v9  ;;  %v4854_v7 = vsel %vm299_vm8, %v5308_v12, %v2752_v47  ;;  %v5309_v16 = vunpack.i.h.bf16 %v4656_v14 }
 0x580   :  { %5306 = vst [vmem:[#allocation16_spill] sm:$0xff] %v4843_v36  ;;  %v5310_v8 = vunpack.i.h.bf16 %v4563_v34  ;;  %v5311_v44 = vunpack.i.l.bf16 %v4468_v42  ;;  %v1519_v47 = vsel %vm299_vm8, %v3036_v43, %v2951_v53  ;;  %v1522_v57 = vsel %vm299_vm8, %v3037_v49, %v3116_v22  ;;  %v4875_v42 = vpop.permute.xlu1 %3179 }
 0x581   :  { %v1520_v21 = vsel %vm299_vm8, %v2951_v53, %v5309_v16  ;;  %2180 = vmatprep.subr.bf16.mxu1 %v2179_v35  ;;  %v2966_v12 = vunpack.i.l.bf16 %v4580_v10  ;;  %v2982_v16 = vunpack.i.h.bf16 %v4594_v29  ;;  %v1525_v22 = vsel %vm299_vm8, %v3041_v20, %v2956_v40 }
 0x582   :  { %v1526_v13 = vsel %vm299_vm8, %v2956_v40, %v5310_v8  ;;  %v4866_v11 = vsel %vm299_vm8, %v5311_v44, %v2927_v27  ;;  %v2183_v9 = vpack.c.bf16 %v1523_v1, %v1520_v21  ;;  %v3131_v8 = vunpack.i.l.bf16 %v4778_v0  ;;  %2182 = vmatpush1.bf16.msra.mxu1 %v2181_v33 }
 0x583   :  { %v4877_v27 = vpop.permute.xlu0 %3124  ;;  %v3042_v44 = vunpack.i.h.bf16 %v4675_v19  ;;  %v2961_v49 = vunpack.i.l.bf16 %v4669_v55  ;;  %v2185_v21 = vpack.c.bf16 %v1522_v57, %v1519_v47  ;;  %v3047_v33 = vunpack.i.h.bf16 %v4776_v62 }
 0x584   :  { %v5240_v35 = vunpack.i.h.bf16 %v4877_v27  ;;  %v3126_v1 = vunpack.i.l.bf16 %v4877_v27  ;;  %2184 = vmatprep.subr.bf16.mxu1 %v2183_v9  ;;  %v2971_v48 = vunpack.i.l.bf16 %v4677_v37  ;;  %v5313_v43 = vunpack.i.h.bf16 %v4778_v0 }
 0x585   :  { %v3051_v57 = vunpack.i.l.bf16 %v4682_v50  ;;  %v3002_v36 = vunpack.i.h.bf16 %v4634_v52 }
 0x586   :  { %v1528_v19 = vsel %vm299_vm8, %v3042_v44, %v3126_v1  ;;  %v1529_v53 = vsel %vm299_vm8, %v3126_v1, %v5240_v35  ;;  %2186 = vmatpush1.bf16.msra.mxu1 %v2185_v21  ;;  %v1535_v47 = vsel %vm299_vm8, %v3131_v8, %v5313_v43  ;;  %v3151_v1 = vunpack.i.l.bf16 %v4788_v6  ;;  %v4903_v35 = vpop.permute.xlu1 %3184 }
 0x587   :  { %v2189_v9 = vpack.c.bf16 %v1528_v19, %v1525_v22  ;;  %v4893_v40 = vpop.permute.xlu0 %3139  ;;  %v2187_v20 = vpack.c.bf16 %v1529_v53, %v1526_v13  ;;  %v5314_v22 = vunpack.i.h.bf16 %v4669_v55  ;;  %v5315_v53 = vunpack.i.h.bf16 %v4580_v10 }
 0x588   :  { %5312 = vst [vmem:[#allocation17_spill] sm:$0xff] %v4893_v40  ;;  %v1531_v21 = vsel %vm299_vm8, %v3046_v23, %v2961_v49  ;;  %v1534_v19 = vsel %vm299_vm8, %v3047_v33, %v3131_v8  ;;  %v5316_v44 = vunpack.i.l.bf16 %v4594_v29  ;;  %v1537_v8 = vsel %vm299_vm8, %v3051_v57, %v2966_v12 }
 0x589   :  { %2188 = vmatprep.subr.bf16.mxu1 %v2187_v20  ;;  %v1532_v13 = vsel %vm299_vm8, %v2961_v49, %v5314_v22  ;;  %v1538_v43 = vsel %vm299_vm8, %v2966_v12, %v5315_v53  ;;  %v2986_v20 = vunpack.i.l.bf16 %v4613_v54  ;;  %v3052_v22 = vunpack.i.h.bf16 %v4682_v50 }
 0x58a   :  { %v2191_v62 = vpack.c.bf16 %v1535_v47, %v1532_v13  ;;  %v4916_v40 = vsel %vm299_vm8, %v5316_v44, %v2982_v16  ;;  %2190 = vmatpush1.bf16.msra.mxu1 %v2189_v9  ;;  %v5318_v53 = vunpack.i.h.bf16 %v4677_v37  ;;  %v2976_v29 = vunpack.i.l.bf16 %v4684_v39 }
 0x58b   :  { %v4921_v10 = vpop.permute.xlu0 %3144  ;;  %v2193_v33 = vpack.c.bf16 %v1534_v19, %v1531_v21  ;;  %v3057_v47 = vunpack.i.h.bf16 %v4780_v59  ;;  %v3056_v50 = vunpack.i.l.bf16 %v4780_v59  ;;  %v5319_v9 = vunpack.i.h.bf16 %v4788_v6  ;;  %v4943_v19 = vpop.permute.xlu1 %3199 }
 0x58c   :  { %5317 = vst [vmem:[#allocation18_spill] sm:$0xff] %v4921_v10  ;;  %v1544_v23 = vsel %vm299_vm8, %v2971_v48, %v5318_v53  ;;  %v5248_v16 = vunpack.i.h.bf16 %v4921_v10  ;;  %v3146_v49 = vunpack.i.l.bf16 %v4921_v10  ;;  %2192 = vmatprep.subr.bf16.mxu1 %v2191_v62  ;;  %v3166_v12 = vunpack.i.l.bf16 %v4835_v15 }
 0x58d   :  { %v1547_v44 = vsel %vm299_vm8, %v3151_v1, %v5319_v9  ;;  %v3062_v62 = vunpack.i.h.bf16 %v4784_v3  ;;  %v3061_v21 = vunpack.i.l.bf16 %v4784_v3  ;;  %v3066_v13 = vunpack.i.l.bf16 %v4703_v24 }
 0x58e   :  { %v1540_v57 = vsel %vm299_vm8, %v3052_v22, %v3146_v49  ;;  %v1541_v53 = vsel %vm299_vm8, %v3146_v49, %v5248_v16  ;;  %2194 = vmatpush1.bf16.msra.mxu1 %v2193_v33  ;;  %v5320_v22 = vunpack.i.h.bf16 %v4684_v39  ;;  %v3162_v49 = vunpack.i.h.bf16 %v4805_v45 }
 0x58f   :  { %v2197_v59 = vpack.c.bf16 %v1540_v57, %v1537_v8  ;;  %v3155_v6 = vpop.permute.xlu0 %3154  ;;  %v2195_v9 = vpack.c.bf16 %v1541_v53, %v1538_v43  ;;  %v3161_v16 = vunpack.i.l.bf16 %v4805_v45  ;;  %v5321_v3 = vunpack.i.h.bf16 %v4794_v38 }
 0x590   :  { %v3157_v37 = vunpack.i.h.bf16 %v3155_v6  ;;  %v3156_v0 = vunpack.i.l.bf16 %v3155_v6  ;;  %v1753_v10 = vsel %vm299_vm8, %v2976_v29, %v5320_v22  ;;  %v2199_v8 = vpack.c.bf16 %v1547_v44, %v1544_v23 }
 0x591   :  { %v1506_v55 = vsel %vm299_vm8, %v5321_v3, %v3062_v62  ;;  %2196 = vmatprep.subr.bf16.mxu1 %v2195_v9  ;;  %v1543_v43 = vsel %vm299_vm8, %v3056_v50, %v2971_v48  ;;  %v1546_v33 = vsel %vm299_vm8, %v3057_v47, %v3151_v1  ;;  %v5322_v39 = vunpack.i.h.bf16 %v4835_v15  ;;  %v4980_v62 = vpop.permute.xlu1 %3209 }
 0x592   :  { %v1756_v6 = vsel %vm299_vm8, %v3156_v0, %v3157_v37  ;;  %v3067_v57 = vunpack.i.h.bf16 %v4703_v24  ;;  %v5323_v45 = vunpack.i.h.bf16 %v4523_v25  ;;  %2198 = vmatpush1.bf16.msra.mxu1 %v2197_v59  ;;  %v5324_v48 = vunpack.i.h.bf16 %v4613_v54 }
 0x593   :  { %v1762_v29 = vsel %vm299_vm8, %v3166_v12, %v5322_v39  ;;  %v4964_v53 = vpop.permute.xlu0 %3169  ;;  %v2207_v23 = vpack.c.bf16 %v1756_v6, %v1753_v10  ;;  %v3006_v0 = vunpack.i.l.bf16 %v4643_v28  ;;  %v2992_v47 = vunpack.i.h.bf16 %v4705_v60  ;;  %2200 = vmatprep.subr.bf16.mxu1 %v2199_v8 }
 0x594   :  { %v1503_v38 = vsel %vm299_vm8, %v5323_v45, %v3061_v21  ;;  %v1759_v1 = vsel %vm299_vm8, %v2986_v20, %v5324_v48  ;;  %v5325_v24 = vunpack.i.l.bf16 %v4634_v52  ;;  %v2996_v44 = vunpack.i.l.bf16 %v4722_v63 }
 0x595   :  { %v2209_v50 = vpack.c.bf16 %v1506_v55, %v1503_v38  ;;  %v5326_v12 = vunpack.i.h.bf16 %v4733_v32  ;;  %v2201_v54 = vpack.c.bf16 %v1546_v33, %v1543_v43  ;;  %2208 = vmatprep.subr.bf16.mxu0 %v2207_v23  ;;  %v2211_v20 = vpack.c.bf16 %v1762_v29, %v1759_v1  ;;  %v5020_v48 = vpop.permute.xlu1 %3219 }
 0x596   :  { %v4974_v25 = vsel %vm299_vm8, %v5325_v24, %v3002_v36  ;;  %v5327_v21 = vunpack.i.h.bf16 %v4649_v56  ;;  %v3187_v52 = vunpack.i.h.bf16 %v4903_v35  ;;  %v3186_v36 = vunpack.i.l.bf16 %v4903_v35  ;;  %v4995_v56 = vld [vmem:[%s5188_s5] sm:$0xff] }
 0x597   :  { %v1512_v10 = vsel %vm299_vm8, %v5326_v12, %v3067_v57  ;;  %2210 = vmatpush1.bf16.msra.mxu0 %v2209_v50  ;;  %v1758_v59 = vsel %vm299_vm8, %v3161_v16, %v3162_v49  ;;  %v3072_v32 = vunpack.i.h.bf16 %v4786_v17  ;;  %v3071_v9 = vunpack.i.l.bf16 %v4786_v17  ;;  %2202 = vmatpush1.bf16.msra.mxu1 %v2201_v54  ;;  %v3175_v8 = vpop.permute.xlu0 %3174 }
 0x598   :  { %v1509_v55 = vsel %vm299_vm8, %v5327_v21, %v3066_v13  ;;  %v3172_v22 = vunpack.i.h.bf16 %v4964_v53  ;;  %v3171_v3 = vunpack.i.l.bf16 %v4964_v53  ;;  %2212 = vmatprep.subr.bf16.mxu0 %v2211_v20  ;;  %v3076_v13 = vunpack.i.l.bf16 %v4717_v51 }
 0x599   :  { %v2213_v43 = vpack.c.bf16 %v1512_v10, %v1509_v55  ;;  %v3177_v49 = vunpack.i.h.bf16 %v3175_v8  ;;  %v3176_v33 = vunpack.i.l.bf16 %v3175_v8  ;;  %v5328_v17 = vpack.c.bf16 %v4866_v11, %v4854_v7 }
 0x59a   :  { %v3182_v6 = vunpack.i.h.bf16 %v4875_v42  ;;  %v5329_v39 = vunpack.i.h.bf16 %v4825_v18  ;;  %v2243_v57 = vpack.c.bf16 %v1758_v59, %v4916_v40  ;;  %v5330_v45 = vunpack.i.h.bf16 %v4722_v63  ;;  %1932 = vmatmul.mubr.f32.vlgmr.msra.gmra.mrb[4].mxu1 %v4995_v56 }
 0x59b   :  { %2240 = vmatprep.subr.bf16.mxu1 %v5328_v17  ;;  %v3181_v53 = vunpack.i.l.bf16 %v4875_v42  ;;  %v1757_v23 = vsel %vm299_vm8, %v3157_v37, %v3161_v16  ;;  %2214 = vmatpush1.bf16.msra.mxu0 %v2213_v43  ;;  %v1768_v11 = vsel %vm299_vm8, %v3176_v33, %v3177_v49  ;;  %v1774_v18 = vsel %vm299_vm8, %v3186_v36, %v3187_v52  ;;  %v3190_v42 = vpop.permute.xlu0 %3189  ;;  %v5339_v43 = vld [vmem:[#allocation3_spill] sm:$0xff] }
 0x59c   :  { %v1518_v29 = vsel %vm299_vm8, %v5329_v39, %v3072_v32  ;;  %v1765_v38 = vsel %vm299_vm8, %v2996_v44, %v5330_v45  ;;  %v3077_v7 = vunpack.i.h.bf16 %v4717_v51  ;;  %v5331_v40 = vunpack.i.h.bf16 %v4541_v46  ;;  %2112 = vmatprep.mubr.msk.f32.mxu1 %vm1863_vm15, %v4621_v26 }
 0x59d   :  { %v5332_v37 = vpack.c.bf16 %v4490_v4, %v4477_v41  ;;  %v2215_v16 = vpack.c.bf16 %v1768_v11, %v1765_v38  ;;  %v1764_v1 = vsel %vm299_vm8, %v3171_v3, %v3172_v22  ;;  %v3022_v50 = vunpack.i.h.bf16 %v4653_v58 }
 0x59e   :  { %v1515_v63 = vsel %vm299_vm8, %v5331_v40, %v3071_v9  ;;  %v5333_v46 = vunpack.i.h.bf16 %v4643_v28  ;;  %v5334_v44 = vunpack.i.l.bf16 %v4705_v60  ;;  %v5335_v4 = vunpack.i.h.bf16 %v4752_v30 }
 0x59f   :  { %2242 = vmatpush1.bf16.msra.mxu1 %v5332_v37  ;;  %v2217_v51 = vpack.c.bf16 %v1518_v29, %v1515_v63  ;;  %v3016_v10 = vunpack.i.l.bf16 %v4748_v5  ;;  %v2245_v26 = vpack.c.bf16 %v1757_v23, %v4701_v61  ;;  %2216 = vmatprep.subr.bf16.mxu0 %v2215_v16  ;;  %v5336_v20 = vunpack.i.h.bf16 %v4656_v14  ;;  %v3195_v59 = vpop.permute.xlu0 %3194  ;;  %v5342_v63 = vld [vmem:[#allocation6_spill] sm:$0xff] }
 0x5a0   :  { %2244 = vmatprep.subr.bf16.mxu1 %v2243_v57  ;;  %v1771_v24 = vsel %vm299_vm8, %v3006_v0, %v5333_v46  ;;  %v1761_v41 = vsel %vm299_vm8, %v5334_v44, %v2992_v47  ;;  %v1524_v12 = vsel %vm299_vm8, %v5335_v4, %v3077_v7  ;;  %v5337_v0 = vunpack.i.h.bf16 %v4835_v15 }
 0x5a1   :  { %v2219_v54 = vpack.c.bf16 %v1774_v18, %v1771_v24  ;;  %v1521_v28 = vsel %vm299_vm8, %v5336_v20, %v3076_v13  ;;  %2218 = vmatpush1.bf16.msra.mxu0 %v2217_v51  ;;  %v2247_v47 = vpack.c.bf16 %v1764_v1, %v1761_v41  ;;  %v1770_v30 = vsel %vm299_vm8, %v3181_v53, %v3182_v6  ;;  %v5054_v13 = vpop.permute.xlu1 %3229 }
 0x5a2   :  { %v1763_v60 = vsel %vm299_vm8, %v5337_v0, %v3171_v3  ;;  %v3212_v21 = vunpack.i.h.bf16 %v4980_v62  ;;  %v3211_v55 = vunpack.i.l.bf16 %v4980_v62  ;;  %v3192_v36 = vunpack.i.h.bf16 %v3190_v42  ;;  %v5357_v62 = vld [vmem:[#allocation17_spill] sm:$0xff] }
 0x5a3   :  { %v3191_v61 = vunpack.i.l.bf16 %v3190_v42  ;;  %2246 = vmatpush1.bf16.msra.mxu1 %v2245_v26  ;;  %2220 = vmatprep.subr.bf16.mxu0 %v2219_v54  ;;  %v2221_v14 = vpack.c.bf16 %v1524_v12, %v1521_v28  ;;  %v3197_v32 = vunpack.i.h.bf16 %v3195_v59  ;;  %v3196_v9 = vunpack.i.l.bf16 %v3195_v59  ;;  %v3205_v38 = vpop.permute.xlu0 %3204  ;;  %v5350_v54 = vld [vmem:[#allocation13_spill] sm:$0xff] }
 0x5a4   :  { %2248 = vmatprep.subr.bf16.mxu1 %v2247_v47  ;;  %v5338_v15 = vunpack.i.l.bf16 %v4653_v58  ;;  %v3026_v3 = vunpack.i.l.bf16 %v4667_v31  ;;  %v3012_v8 = vunpack.i.h.bf16 %v4737_v2  ;;  %v2249_v33 = vpack.c.bf16 %v1763_v60, %v5339_v43  ;;  %v5352_v47 = vld [vmem:[#allocation16_spill] sm:$0xff] }
 0x5a5   :  { %v5340_v17 = vunpack.i.h.bf16 %v4748_v5  ;;  %v3202_v39 = vunpack.i.h.bf16 %v4943_v19  ;;  %v1769_v29 = vsel %vm299_vm8, %v3177_v49, %v3181_v53  ;;  %2222 = vmatpush1.bf16.msra.mxu0 %v2221_v14  ;;  %v2251_v58 = vpack.c.bf16 %v1770_v30, %v4974_v25  ;;  %v5341_v25 = vld [vmem:[#allocation12_spill] sm:$0xff]  ;;  %v5089_v4 = vpop.permute.xlu1 %3239 }
 0x5a6   :  { %v1779_v22 = vsel %vm299_vm8, %v5338_v15, %v3022_v50  ;;  %v1780_v57 = vsel %vm299_vm8, %v3196_v9, %v3197_v32  ;;  %v3201_v45 = vunpack.i.l.bf16 %v4943_v19  ;;  %v1776_v11 = vsel %vm299_vm8, %v3191_v61, %v3192_v36  ;;  %v5353_v36 = vld [vmem:[#allocation5_spill] sm:$0xff] }
 0x5a7   :  { %v1777_v6 = vsel %vm299_vm8, %v3016_v10, %v5340_v17  ;;  %2250 = vmatpush1.bf16.msra.mxu1 %v2249_v33  ;;  %v1786_v5 = vsel %vm299_vm8, %v3211_v55, %v3212_v21  ;;  %v3222_v18 = vunpack.i.h.bf16 %v5020_v48  ;;  %v3221_v49 = vunpack.i.l.bf16 %v5020_v48  ;;  %v3215_v12 = vpop.permute.xlu0 %3214 }
 0x5a8   :  { %v2223_v23 = vpack.c.bf16 %v1780_v57, %v1777_v6  ;;  %v3207_v53 = vunpack.i.h.bf16 %v3205_v38  ;;  %v3206_v7 = vunpack.i.l.bf16 %v3205_v38  ;;  %2252 = vmatprep.subr.bf16.mxu1 %v2251_v58  ;;  %v3122_v40 = vunpack.i.h.bf16 %v5341_v25  ;;  %v5355_v58 = vld [vmem:[#allocation14_spill] sm:$0xff] }
 0x5a9   :  { %v2253_v19 = vpack.c.bf16 %v1769_v29, %v5342_v63  ;;  %v5343_v37 = vunpack.i.l.bf16 %v4737_v2  ;;  %v5344_v16 = vunpack.i.h.bf16 %v4667_v31  ;;  %v1775_v48 = vsel %vm299_vm8, %v3187_v52, %v3191_v61  ;;  %v5347_v2 = vld [vmem:[#allocation10_spill] sm:$0xff]  ;;  %v5348_v52 = vld [vmem:[#allocation7_spill] sm:$0xff]  ;;  %v3250_v57 = vpop.permute.xlu1 %3249 }
 0x5aa   :  { %2224 = vmatprep.subr.bf16.mxu0 %v2223_v23  ;;  %v5345_v50 = vunpack.i.h.bf16 %v4563_v34  ;;  %v5346_v46 = vunpack.i.h.bf16 %v4877_v27  ;;  %v3032_v41 = vunpack.i.h.bf16 %v5347_v2  ;;  %v1782_v35 = vsel %vm299_vm8, %v3201_v45, %v3202_v39 }
 0x5ab   :  { %v1773_v42 = vsel %vm299_vm8, %v5343_v37, %v3012_v8  ;;  %v1783_v1 = vsel %vm299_vm8, %v3026_v3, %v5344_v16  ;;  %2254 = vmatpush1.bf16.msra.mxu1 %v2253_v19  ;;  %v5349_v26 = vunpack.i.h.bf16 %v5348_v52  ;;  %v5351_v20 = vunpack.i.h.bf16 %v5350_v54  ;;  %v3225_v33 = vpop.permute.xlu0 %3224 }
 0x5ac   :  { %v1527_v51 = vsel %vm299_vm8, %v5345_v50, %v3206_v7  ;;  %v1530_v24 = vsel %vm299_vm8, %v5346_v46, %v3207_v53  ;;  %v2255_v44 = vpack.c.bf16 %v1776_v11, %v1773_v42  ;;  %v2227_v10 = vpack.c.bf16 %v1786_v5, %v1783_v1 }
 0x5ad   :  { %v2225_v31 = vpack.c.bf16 %v1530_v24, %v1527_v51  ;;  %v1533_v34 = vsel %vm299_vm8, %v5349_v26, %v3221_v49  ;;  %v1536_v27 = vsel %vm299_vm8, %v5351_v20, %v3222_v18  ;;  %v3217_v28 = vunpack.i.h.bf16 %v3215_v12  ;;  %v5363_v26 = vld [vmem:[#allocation4_spill] sm:$0xff]  ;;  %v5365_v20 = vld [vmem:[#allocation15_spill] sm:$0xff] }
 0x5ae   :  { %v3216_v0 = vunpack.i.l.bf16 %v3215_v12  ;;  %2256 = vmatprep.subr.bf16.mxu1 %v2255_v44  ;;  %v3121_v60 = vunpack.i.l.bf16 %v5341_v25  ;;  %v3107_v30 = vunpack.i.h.bf16 %v5352_v47  ;;  %v3106_v55 = vunpack.i.l.bf16 %v5352_v47 }
 0x5af   :  { %v2257_v61 = vpack.c.bf16 %v1775_v48, %v5353_v36  ;;  %2226 = vmatpush1.bf16.msra.mxu0 %v2225_v31  ;;  %v3232_v59 = vunpack.i.h.bf16 %v5054_v13  ;;  %v3231_v14 = vunpack.i.l.bf16 %v5054_v13  ;;  %v1781_v9 = vsel %vm299_vm8, %v3197_v32, %v3201_v45  ;;  %v5356_v45 = vld [vmem:[#allocation9_spill] sm:$0xff]  ;;  %v3235_v53 = vpop.permute.xlu0 %3234 }
 0x5b0   :  { %2228 = vmatprep.subr.bf16.mxu0 %v2227_v10  ;;  %v2259_v15 = vpack.c.bf16 %v1782_v35, %v1779_v22  ;;  %v2229_v3 = vpack.c.bf16 %v1536_v27, %v1533_v34  ;;  %v3242_v8 = vunpack.i.h.bf16 %v5089_v4  ;;  %v3241_v43 = vunpack.i.l.bf16 %v5089_v4 }
 0x5b1   :  { %2258 = vmatpush1.bf16.msra.mxu1 %v2257_v61  ;;  %v1788_v17 = vsel %vm299_vm8, %v3216_v0, %v3217_v28  ;;  %v3227_v6 = vunpack.i.h.bf16 %v3225_v33  ;;  %v3226_v39 = vunpack.i.l.bf16 %v3225_v33  ;;  %v5354_v29 = vunpack.i.l.bf16 %v5347_v2 }
 0x5b2   :  { %2260 = vmatprep.subr.bf16.mxu1 %v2259_v15  ;;  %v3137_v32 = vunpack.i.h.bf16 %v5355_v58  ;;  %v3136_v22 = vunpack.i.l.bf16 %v5355_v58  ;;  %v2261_v38 = vpack.c.bf16 %v1781_v9, %v5356_v45  ;;  %v1789_v23 = vsel %vm299_vm8, %v3106_v55, %v3107_v30 }
 0x5b3   :  { %v1785_v13 = vsel %vm299_vm8, %v5354_v29, %v3032_v41  ;;  %2230 = vmatpush1.bf16.msra.mxu0 %v2229_v3  ;;  %v1787_v11 = vsel %vm299_vm8, %v3212_v21, %v3216_v0  ;;  %v1792_v18 = vsel %vm299_vm8, %v3226_v39, %v3227_v6  ;;  %v1794_v49 = vsel %vm299_vm8, %v3231_v14, %v3232_v59  ;;  %v5358_v21 = vld [vmem:[#allocation11_spill] sm:$0xff]  ;;  %v5361_v41 = vld [vmem:[#allocation18_spill] sm:$0xff]  ;;  %v3245_v35 = vpop.permute.xlu0 %3244 }
 0x5b4   :  { %v2263_v5 = vpack.c.bf16 %v1788_v17, %v1785_v13  ;;  %v2231_v7 = vpack.c.bf16 %v1792_v18, %v1789_v23  ;;  %v1791_v25 = vsel %vm299_vm8, %v3121_v60, %v3122_v40  ;;  %v1798_v63 = vsel %vm299_vm8, %v3241_v43, %v3242_v8  ;;  %v5359_v40 = vld [vmem:[#allocation8_spill] sm:$0xff]  ;;  %v2081_v17 = vld [vmem:[%s5182_s0 + $0x10] sm:$0xff]  ;;  %v2082_v13 = vld [vmem:[%s5182_s0 + $0x18] sm:$0xff] }
 0x5b5   :  { %2262 = vmatpush1.bf16.msra.mxu1 %v2261_v38  ;;  %v3252_v19 = vunpack.i.h.bf16 %v3250_v57  ;;  %v3251_v37 = vunpack.i.l.bf16 %v3250_v57  ;;  %v3237_v42 = vunpack.i.h.bf16 %v3235_v53  ;;  %v3236_v16 = vunpack.i.l.bf16 %v3235_v53  ;;  %v2114_v38 = vld [vmem:[%s5182_s0 + $0x38] sm:$0xff]  ;;  %v2115_v18 = vld [vmem:[%s5182_s0 + $0x40] sm:$0xff] }
 0x5b6   :  { %2264 = vmatprep.subr.bf16.mxu1 %v2263_v5  ;;  %v3142_v1 = vunpack.i.h.bf16 %v5357_v62  ;;  %v2265_v48 = vpack.c.bf16 %v1787_v11, %v5358_v21  ;;  %2232 = vmatprep.subr.bf16.mxu0 %v2231_v7  ;;  %v2267_v50 = vpack.c.bf16 %v1794_v49, %v1791_v25  ;;  %v1795_v51 = vsel %vm299_vm8, %v3136_v22, %v3137_v32  ;;  %v2113_v22 = vld [vmem:[%s5182_s0 + $0x30] sm:$0xff] }
 0x5b7   :  { %v3141_v46 = vunpack.i.l.bf16 %v5357_v62  ;;  %v1793_v24 = vsel %vm299_vm8, %v3227_v6, %v3231_v14  ;;  %v5360_v44 = vunpack.i.h.bf16 %v5359_v40  ;;  %v5362_v4 = vunpack.i.h.bf16 %v5361_v41 }
 0x5b8   :  { %v1790_v12 = vsel %vm299_vm8, %v3107_v30, %v3121_v60  ;;  %v2235_v52 = vpack.c.bf16 %v1798_v63, %v1795_v51  ;;  %v5364_v34 = vunpack.i.h.bf16 %v5363_v26  ;;  %v5366_v27 = vunpack.i.h.bf16 %v5365_v20 }
 0x5b9   :  { %v1539_v2 = vsel %vm299_vm8, %v5360_v44, %v3236_v16  ;;  %v1542_v31 = vsel %vm299_vm8, %v5362_v4, %v3237_v42  ;;  %2266 = vmatpush1.bf16.msra.mxu1 %v2265_v48  ;;  %v3247_v0 = vunpack.i.h.bf16 %v3245_v35  ;;  %v3246_v47 = vunpack.i.l.bf16 %v3245_v35 }
 0x5ba   :  { %v2233_v10 = vpack.c.bf16 %v1542_v31, %v1539_v2  ;;  %v1545_v54 = vsel %vm299_vm8, %v5364_v34, %v3251_v37  ;;  %v1548_v28 = vsel %vm299_vm8, %v5366_v27, %v3252_v19  ;;  %2268 = vmatprep.subr.bf16.mxu1 %v2267_v50  ;;  %v2269_v55 = vpack.c.bf16 %v1793_v24, %v1790_v12 }
 0x5bb   :  { %v1796_v36 = vsel %vm299_vm8, %v3137_v32, %v3141_v46  ;;  %v1799_v60 = vsel %vm299_vm8, %v3242_v8, %v3246_v47  ;;  %v1797_v30 = vsel %vm299_vm8, %v3141_v46, %v3142_v1  ;;  %v1800_v61 = vsel %vm299_vm8, %v3246_v47, %v3247_v0  ;;  %v2080_v8 = vld [vmem:[%s5182_s0 + $0x8] sm:$0xff] }
 0x5bc   :  { %2234 = vmatpush1.bf16.msra.mxu0 %v2233_v10  ;;  %v2237_v59 = vpack.c.bf16 %v1548_v28, %v1545_v54  ;;  %v2273_v14 = vpack.c.bf16 %v1799_v60, %v1796_v36  ;;  %v2271_v9 = vpack.c.bf16 %v1800_v61, %v1797_v30 }
 0x5bd   :  { %2236 = vmatprep.subr.bf16.mxu0 %v2235_v52  ;;  %2270 = vmatpush1.bf16.msra.mxu1 %v2269_v55 }
 0x5be   :  { %2272 = vmatprep.subr.bf16.mxu1 %v2271_v9 }
 0x5c0   :  { %2238 = vmatpush1.bf16.msra.mxu0 %v2237_v59 }
 0x5c1   :  { %2274 = vmatpush1.bf16.msra.mxu1 %v2273_v14 }
 0x5c3   :  { %2003 = vmatmul.mubr.f32.vlgmr.msra.gmra.mrb[8].mxu0 %v4995_v56 }
 0x5c4   :  { %2074 = vmatmul.mubr.f32.vlgmr.msra.gmra.mrb[6].mxu1 %v4995_v56  ;;  %v1861_v15 = vpop.permute.xlu0 %1860 }
 0x66d   :  { %v1933_v3 = vpop.f32.mrb[4].mxu1 }
 0x66e   :  { %v1934_v43 = vadd.f32 %v1933_v3, %v1861_v15  ;;  %v1935_v33 = vpop.f32.mrb[5].mxu1 }
 0x66f   :  { %v1936_v6 = vadd.f32 %v1935_v33, %v1861_v15 }
 0x670   :  { %v2083_v39 = vadd.f32 %v2080_v8, %v1934_v43 }
 0x671   :  { %v2084_v29 = vadd.f32 %v2081_v17, %v1936_v6 }
 0x672   :  { %2086 = vst [vmem:[%s5190_s8] sm:$0xff] %v2083_v39 }
 0x673   :  { %2087 = vst [vmem:[%s5190_s8 + $0x8] sm:$0xff] %v2084_v29 }
 0x696   :  { %v2004_v56 = vpop.f32.mrb[8].mxu0 }
 0x697   :  { %v2005_v58 = vadd.f32 %v2004_v56, %v1861_v15  ;;  %v2006_v32 = vpop.f32.mrb[9].mxu0  ;;  %v2075_v45 = vpop.f32.mrb[6].mxu1 }
 0x698   :  { %v2007_v57 = vadd.f32 %v2006_v32, %v1861_v15  ;;  %v2076_v11 = vadd.f32 %v2075_v45, %v1861_v15  ;;  %v2077_v5 = vpop.f32.mrb[7].mxu1 }
 0x699   :  { %v2085_v23 = vadd.f32 %v2082_v13, %v2005_v58  ;;  %v2078_v53 = vadd.f32 %v2077_v5, %v1861_v15 }
 0x69a   :  { %v2093_v49 = vadd.f32 %v2113_v22, %v2007_v57  ;;  %v2094_v7 = vadd.f32 %v2114_v38, %v2076_v11 }
 0x69b   :  { %2088 = vst [vmem:[%s5190_s8 + $0x10] sm:$0xff] %v2085_v23  ;;  %v2095_v25 = vadd.f32 %v2115_v18, %v2078_v53 }
 0x69c   :  { %2116 = vst [vmem:[%s5190_s8 + $0x18] sm:$0xff] %v2093_v49  ;;  %2117 = vst [vmem:[%s5190_s8 + $0x20] sm:$0xff] %v2094_v7 }
 0x69d   :  { %2118 = vst [vmem:[%s5190_s8 + $0x28] sm:$0xff] %v2095_v25 }

</bundles_post_ra>
